<compile_context>
chip_gen: v7x
topology: tpu7x:2x2x1
jax: 0.10.0
libtpu: 0.0.40
codegen_flags: <defaults>
</compile_context>

<pallas_src>
import functools

import numpy as np
import jax
import jax.numpy as jnp
from jax import lax
from jax.experimental import pallas as pl
from jax.experimental.pallas import tpu as pltpu


# ----------------------------------------------------------------------------
# Kernel
# ----------------------------------------------------------------------------
def _spin_attention_kernel(x_ref, w_ref, b_ref, J_ref, o_ref, *,
                           batch_tile, num_spins, dim, beta, n_iters, tol):
    Bt, N, D = batch_tile, num_spins, dim

    x = x_ref[...]            # (Bt, N, D)  Bt batch elements
    ln_w = w_ref[...]         # (1, 1, D)
    ln_b = b_ref[...]         # (1, 1, D)
    J = J_ref[...]            # (1, N, N)   symmetric, traceless couplings

    # ---- pre_norm: LayerNorm over features, then / sqrt(dim) -----------------
    mu = jnp.mean(x, axis=-1, keepdims=True)
    xc = x - mu
    var = jnp.mean(xc * xc, axis=-1, keepdims=True)
    h = (xc * lax.rsqrt(var + 1e-5) * ln_w + ln_b) * (1.0 / np.sqrt(D))  # (Bt, N, D)

    # Loop-invariant constants (hoisted once; JAX does not CSE broadcasts).
    riota_nn = lax.broadcasted_iota(jnp.int32, (Bt, N, N), 1)
    ciota_nn = lax.broadcasted_iota(jnp.int32, (Bt, N, N), 2)
    riota_nd = lax.broadcasted_iota(jnp.int32, (Bt, N, D), 1)
    riota_n1 = riota_nn[:, :, 0:1]                                # (Bt, N, 1)
    eye = (riota_nn == ciota_nn).astype(jnp.float32)              # (Bt, N, N)
    Jb = jnp.broadcast_to(J, (Bt, N, N))

    def solve_state(t):
        """For V = diag(t) - J (per batch) return (V^-1, V^-1 h, g, max|g|).

        One lockstep Gauss-Jordan elimination (no pivoting: V is well conditioned
        for the afem defaults) yields the inverse and the solve against h
        simultaneously -- no separate matmul.  Pivot reciprocal is an exact divide.
        """
        M = eye * t - Jb       # (Bt, N, N)
        E = eye                # -> V^{-1}
        A = h                  # -> V^{-1} h
        for k in range(N):
            inv_p = 1.0 / M[:, k:k + 1, k:k + 1]                  # (Bt, 1, 1)
            prow_m = jnp.broadcast_to(M[:, k:k + 1, :] * inv_p, (Bt, N, N))
            prow_e = jnp.broadcast_to(E[:, k:k + 1, :] * inv_p, (Bt, N, N))
            prow_a = jnp.broadcast_to(A[:, k:k + 1, :] * inv_p, (Bt, N, D))
            col = M[:, :, k:k + 1]                                # (Bt, N, 1)
            on_piv_nn = riota_nn == k
            on_piv_nd = riota_nd == k
            M = jnp.where(on_piv_nn, prow_m, M - col * prow_m)
            E = jnp.where(on_piv_nn, prow_e, E - col * prow_e)
            A = jnp.where(on_piv_nd, prow_a, A - col * prow_a)
        v_diag = jnp.sum(E * eye, axis=2, keepdims=True)          # (Bt, N, 1)
        a_sq = jnp.sum(A * A, axis=2, keepdims=True)              # (Bt, N, 1)
        g = beta - 0.5 * v_diag - 0.25 * beta * a_sq              # (Bt, N, 1)
        gmax = jnp.max(jnp.abs(g))                                # tile-wide scalar
        return E, A, g, gmax

    def gj_solve(Hm, y):
        """Solve Hm @ step = y per batch by eliminating [H | y] in lockstep
        (H^{-1} is never formed)."""
        for k in range(N):
            inv_p = 1.0 / Hm[:, k:k + 1, k:k + 1]
            prow_h = jnp.broadcast_to(Hm[:, k:k + 1, :] * inv_p, (Bt, N, N))
            prow_y = jnp.broadcast_to(y[:, k:k + 1, :] * inv_p, (Bt, N, 1))
            col = Hm[:, :, k:k + 1]
            Hm = jnp.where(riota_nn == k, prow_h, Hm - col * prow_h)
            y = jnp.where(riota_n1 == k, prow_y, y - col * prow_y)
        return y

    def newton_cond(state):
        it, gmax = state[0], state[1]
        return jnp.logical_and(it < n_iters, gmax > tol)

    def newton_body(state):
        it, _, t, V_inv, a, g = state
        # Analytical Jacobian H_ij = d g_i / d t_j.
        aaT = jnp.einsum('bnd,bmd->bnm', a, a,
                         preferred_element_type=jnp.float32)      # (Bt, N, N)
        Hm = 0.5 * V_inv * V_inv + (0.5 * beta) * V_inv * aaT
        step = gj_solve(Hm, g)                                    # (Bt, N, 1)
        gmax_b = jnp.max(jnp.abs(g), axis=1, keepdims=True)       # (Bt, 1, 1)
        t_new = jnp.where(gmax_b > tol, t - step, t)              # per-batch freeze
        V_inv_n, a_n, g_n, gmax_n = solve_state(t_new)            # state for new t
        return it + 1, gmax_n, t_new, V_inv_n, a_n, g_n

    t0 = jnp.ones((Bt, N, 1), jnp.float32)                        # t0 = ones
    V_inv0, a0, g0, gmax0 = solve_state(t0)
    state0 = (jnp.int32(0), gmax0, t0, V_inv0, a0, g0)
    # Real early exit: loop stops as soon as every batch element in the tile
    # satisfies max|g| <= tol (or after n_iters).  Carried state always matches
    # the carried t, so no post-loop re-solve is needed.
    final = lax.while_loop(newton_cond, newton_body, state0)
    a_star = final[4]                                             # V(t*)^{-1} h

    # Magnetizations; post_norm = Identity.
    o_ref[...] = ((0.5 * beta) * a_star).astype(o_ref.dtype)


# ----------------------------------------------------------------------------
# Wrapper (glue: parameter prep + pallas_call)
# ----------------------------------------------------------------------------
def _pick_batch_tile(batch, max_tile=8):
    """Largest divisor of `batch` <= max_tile that still leaves >= 2 grid steps
    (keeps both v7x TensorCores busy).  Falls back to 1."""
    best = 1
    for bt in range(1, min(max_tile, batch) + 1):
        if batch % bt:
            continue
        if batch // bt >= 2 or batch == 1:
            best = bt
    return best


def vector_spin_attention(x, J0, ln_w, ln_b, *, beta=1.0, n_iters=40, tol=1e-5,
                          max_batch_tile=8):
    B, N, D = x.shape
    # J_symmetric + J_traceless parameter setup stays in plain JAX (outside the kernel).
    J = 0.5 * (J0 + J0.T)
    J = (J * (1.0 - jnp.eye(N, dtype=J.dtype))).reshape(1, N, N)

    Bt = _pick_batch_tile(B, max_batch_tile)
    kernel = functools.partial(
        _spin_attention_kernel, batch_tile=Bt, num_spins=N, dim=D,
        beta=float(beta), n_iters=int(n_iters), tol=float(tol))

    return pl.pallas_call(
        kernel,
        out_shape=jax.ShapeDtypeStruct((B, N, D), jnp.float32),
        grid=(B // Bt,),
        in_specs=[
            pl.BlockSpec((Bt, N, D), lambda b: (b, 0, 0)),   # x: Bt batch elems / step
            pl.BlockSpec((1, 1, D), lambda b: (0, 0, 0)),    # LayerNorm weight (resident)
            pl.BlockSpec((1, 1, D), lambda b: (0, 0, 0)),    # LayerNorm bias   (resident)
            pl.BlockSpec((1, N, N), lambda b: (0, 0, 0)),    # couplings J      (resident)
        ],
        out_specs=pl.BlockSpec((Bt, N, D), lambda b: (b, 0, 0)),
        compiler_params=pltpu.CompilerParams(dimension_semantics=("parallel",)),
    )(x, ln_w.reshape(1, 1, D), ln_b.reshape(1, 1, D), J)


# ----------------------------------------------------------------------------
# Pure-JAX reference (same math) for verification
# ----------------------------------------------------------------------------
def vector_spin_attention_reference(x, J0, ln_w, ln_b, beta=1.0, n_iters=40, tol=1e-5):
    B, N, D = x.shape
    J = 0.5 * (J0 + J0.T)
    J = J * (1.0 - jnp.eye(N, dtype=J.dtype))

    mu = x.mean(-1, keepdims=True)
    var = ((x - mu) ** 2).mean(-1, keepdims=True)
    h = ((x - mu) / jnp.sqrt(var + 1e-5) * ln_w + ln_b) / np.sqrt(D)
    eye = jnp.eye(N, dtype=x.dtype)

    def state(t):                                         # t: (B, N)
        V = eye * t[:, :, None] - J[None]
        V_inv = jnp.linalg.inv(V)
        a = jnp.einsum('bij,bjd->bid', V_inv, h)
        return V_inv, a

    def body(_, t):
        V_inv, a = state(t)
        v_diag = jnp.diagonal(V_inv, axis1=-2, axis2=-1)
        g = beta - 0.5 * v_diag - 0.25 * beta * jnp.sum(a * a, -1)
        aaT = jnp.einsum('bid,bjd->bij', a, a)
        H = 0.5 * V_inv * V_inv + 0.5 * beta * V_inv * aaT
        step = jnp.linalg.solve(H, g[..., None])[..., 0]
        not_conv = jnp.max(jnp.abs(g), axis=-1, keepdims=True) > tol
        return jnp.where(not_conv, t - step, t)

    t = lax.fori_loop(0, n_iters, body, jnp.ones((B, N), x.dtype))
    _, a = state(t)
    return 0.5 * beta * a


# ----------------------------------------------------------------------------
if __name__ == "__main__":
    key = jax.random.PRNGKey(0)
    B, N, D = 4, 8, 32              # batch, num_spins, dim  (Bt=2 -> grid of 2 steps)
    kx, kj = jax.random.split(key)

    x = jax.random.normal(kx, (B, N, D), dtype=jnp.float32)
    # Deterministic parameter init; couplings ~ N(0, 1/sqrt(N*sqrt(D))) (afem default scale)
    J0 = (1.0 / np.sqrt(N * np.sqrt(D))) * jax.random.normal(kj, (N, N), dtype=jnp.float32)
    ln_w = jnp.ones((1, D), jnp.float32)   # LayerNorm default init (gamma = 1)
    ln_b = jnp.zeros((1, D), jnp.float32)  # LayerNorm default init (beta  = 0)

    out = jax.block_until_ready(vector_spin_attention(x, J0, ln_w, ln_b))
    ref = jax.block_until_ready(vector_spin_attention_reference(x, J0, ln_w, ln_b))

    np.testing.assert_allclose(np.asarray(out), np.asarray(ref), rtol=5e-3, atol=5e-3)
    print("KERNEL_OK")
</pallas_src>

<mosaic_0001>
module attributes {stable_mosaic.version = 11 : i64} {
  func.func @_spin_attention_kernel(%arg0: i32, %arg1: memref<2x8x32xf32, #tpu.memory_space<vmem>>, %arg2: memref<1x1x32xf32, #tpu.memory_space<vmem>>, %arg3: memref<1x1x32xf32, #tpu.memory_space<vmem>>, %arg4: memref<1x8x8xf32, #tpu.memory_space<vmem>>, %arg5: memref<2x8x32xf32, #tpu.memory_space<vmem>>) attributes {dimension_semantics = [#tpu.dimension_semantics<parallel>], iteration_bounds = array<i64: 2>, scalar_prefetch = 0 : i64, scratch_operands = 0 : i64, tpu.core_type = #tpu.core_type<tc>, window_params = [{transform_indices = @transform_0, window_bounds = array<i64: 2, 8, 32>}, {pipeline_mode = #tpu.pipeline_mode<synchronous>, transform_indices = @transform_1, window_bounds = array<i64: 1, 1, 32>}, {pipeline_mode = #tpu.pipeline_mode<synchronous>, transform_indices = @transform_2, window_bounds = array<i64: 1, 1, 32>}, {pipeline_mode = #tpu.pipeline_mode<synchronous>, transform_indices = @transform_3, window_bounds = array<i64: 1, 8, 8>}, {transform_indices = @transform_4, window_bounds = array<i64: 2, 8, 32>}]} {
    %c0 = arith.constant 0 : index
    %c0_0 = arith.constant 0 : index
    %c0_1 = arith.constant 0 : index
    %0 = vector.load %arg1[%c0, %c0_0, %c0_1] : memref<2x8x32xf32, #tpu.memory_space<vmem>>, vector<2x8x32xf32>
    %c0_2 = arith.constant 0 : index
    %c0_3 = arith.constant 0 : index
    %c0_4 = arith.constant 0 : index
    %1 = vector.load %arg2[%c0_2, %c0_3, %c0_4] : memref<1x1x32xf32, #tpu.memory_space<vmem>>, vector<1x1x32xf32>
    %c0_5 = arith.constant 0 : index
    %c0_6 = arith.constant 0 : index
    %c0_7 = arith.constant 0 : index
    %2 = vector.load %arg3[%c0_5, %c0_6, %c0_7] : memref<1x1x32xf32, #tpu.memory_space<vmem>>, vector<1x1x32xf32>
    %c0_8 = arith.constant 0 : index
    %c0_9 = arith.constant 0 : index
    %c0_10 = arith.constant 0 : index
    %3 = vector.load %arg4[%c0_8, %c0_9, %c0_10] : memref<1x8x8xf32, #tpu.memory_space<vmem>>, vector<1x8x8xf32>
    %cst = arith.constant dense<0.000000e+00> : vector<2x8xf32>
    %4 = vector.multi_reduction <add>, %0, %cst [2] : vector<2x8x32xf32> to vector<2x8xf32>
    %5 = vector.shape_cast %4 : vector<2x8xf32> to vector<2x8x1xf32>
    %cst_11 = arith.constant 3.200000e+01 : f32
    %6 = vector.broadcast %cst_11 : f32 to vector<2x8x1xf32>
    %7 = arith.divf %5, %6 : vector<2x8x1xf32>
    %8 = vector.broadcast %7 : vector<2x8x1xf32> to vector<2x8x32xf32>
    %9 = arith.subf %0, %8 : vector<2x8x32xf32>
    %10 = arith.mulf %9, %9 : vector<2x8x32xf32>
    %cst_12 = arith.constant dense<0.000000e+00> : vector<2x8xf32>
    %11 = vector.multi_reduction <add>, %10, %cst_12 [2] : vector<2x8x32xf32> to vector<2x8xf32>
    %12 = vector.shape_cast %11 : vector<2x8xf32> to vector<2x8x1xf32>
    %cst_13 = arith.constant 3.200000e+01 : f32
    %13 = vector.broadcast %cst_13 : f32 to vector<2x8x1xf32>
    %14 = arith.divf %12, %13 : vector<2x8x1xf32>
    %cst_14 = arith.constant 9.99999974E-6 : f32
    %15 = vector.broadcast %cst_14 : f32 to vector<2x8x1xf32>
    %16 = arith.addf %14, %15 : vector<2x8x1xf32>
    %17 = math.rsqrt %16 : vector<2x8x1xf32>
    %18 = vector.broadcast %17 : vector<2x8x1xf32> to vector<2x8x32xf32>
    %19 = arith.mulf %9, %18 : vector<2x8x32xf32>
    %20 = vector.broadcast %1 : vector<1x1x32xf32> to vector<2x8x32xf32>
    %21 = arith.mulf %19, %20 : vector<2x8x32xf32>
    %22 = vector.broadcast %2 : vector<1x1x32xf32> to vector<2x8x32xf32>
    %23 = arith.addf %21, %22 : vector<2x8x32xf32>
    %cst_15 = arith.constant 0.176776692 : f32
    %24 = vector.broadcast %cst_15 : f32 to vector<2x8x32xf32>
    %25 = arith.mulf %23, %24 : vector<2x8x32xf32>
    %26 = tpu.iota {dimensions = array<i32: 1>} : vector<2x8x8xi32>
    %27 = tpu.iota {dimensions = array<i32: 2>} : vector<2x8x8xi32>
    %28 = tpu.iota {dimensions = array<i32: 1>} : vector<2x8x32xi32>
    %29 = vector.extract_strided_slice %26 {offsets = [0, 0, 0], sizes = [2, 8, 1], strides = [1, 1, 1]} : vector<2x8x8xi32> to vector<2x8x1xi32>
    %30 = arith.cmpi eq, %26, %27 : vector<2x8x8xi32>
    %31 = arith.extui %30 : vector<2x8x8xi1> to vector<2x8x8xi32>
    %32 = arith.sitofp %31 : vector<2x8x8xi32> to vector<2x8x8xf32>
    %33 = vector.shape_cast %3 : vector<1x8x8xf32> to vector<1x8x8xf32>
    %34 = vector.broadcast %33 : vector<1x8x8xf32> to vector<2x8x8xf32>
    %cst_16 = arith.constant 1.000000e+00 : f32
    %35 = vector.broadcast %cst_16 : f32 to vector<2x8x1xf32>
    %36 = vector.broadcast %35 : vector<2x8x1xf32> to vector<2x8x8xf32>
    %37 = arith.mulf %32, %36 : vector<2x8x8xf32>
    %38 = arith.subf %37, %34 : vector<2x8x8xf32>
    %39 = vector.extract_strided_slice %38 {offsets = [0, 0, 0], sizes = [2, 1, 1], strides = [1, 1, 1]} : vector<2x8x8xf32> to vector<2x1x1xf32>
    %cst_17 = arith.constant 1.000000e+00 : f32
    %40 = vector.broadcast %cst_17 : f32 to vector<2x1x1xf32>
    %41 = arith.divf %40, %39 : vector<2x1x1xf32>
    %42 = vector.extract_strided_slice %38 {offsets = [0, 0, 0], sizes = [2, 1, 8], strides = [1, 1, 1]} : vector<2x8x8xf32> to vector<2x1x8xf32>
    %43 = vector.broadcast %41 : vector<2x1x1xf32> to vector<2x1x8xf32>
    %44 = arith.mulf %42, %43 : vector<2x1x8xf32>
    %45 = vector.shape_cast %44 : vector<2x1x8xf32> to vector<2x1x8xf32>
    %46 = vector.broadcast %45 : vector<2x1x8xf32> to vector<2x8x8xf32>
    %47 = vector.extract_strided_slice %32 {offsets = [0, 0, 0], sizes = [2, 1, 8], strides = [1, 1, 1]} : vector<2x8x8xf32> to vector<2x1x8xf32>
    %48 = vector.broadcast %41 : vector<2x1x1xf32> to vector<2x1x8xf32>
    %49 = arith.mulf %47, %48 : vector<2x1x8xf32>
    %50 = vector.shape_cast %49 : vector<2x1x8xf32> to vector<2x1x8xf32>
    %51 = vector.broadcast %50 : vector<2x1x8xf32> to vector<2x8x8xf32>
    %52 = vector.extract_strided_slice %25 {offsets = [0, 0, 0], sizes = [2, 1, 32], strides = [1, 1, 1]} : vector<2x8x32xf32> to vector<2x1x32xf32>
    %53 = vector.broadcast %41 : vector<2x1x1xf32> to vector<2x1x32xf32>
    %54 = arith.mulf %52, %53 : vector<2x1x32xf32>
    %55 = vector.shape_cast %54 : vector<2x1x32xf32> to vector<2x1x32xf32>
    %56 = vector.broadcast %55 : vector<2x1x32xf32> to vector<2x8x32xf32>
    %57 = vector.extract_strided_slice %38 {offsets = [0, 0, 0], sizes = [2, 8, 1], strides = [1, 1, 1]} : vector<2x8x8xf32> to vector<2x8x1xf32>
    %c0_i32 = arith.constant 0 : i32
    %58 = vector.broadcast %c0_i32 : i32 to vector<2x8x8xi32>
    %59 = arith.cmpi eq, %26, %58 : vector<2x8x8xi32>
    %c0_i32_18 = arith.constant 0 : i32
    %60 = vector.broadcast %c0_i32_18 : i32 to vector<2x8x32xi32>
    %61 = arith.cmpi eq, %28, %60 : vector<2x8x32xi32>
    %62 = vector.broadcast %57 : vector<2x8x1xf32> to vector<2x8x8xf32>
    %63 = arith.mulf %62, %46 : vector<2x8x8xf32>
    %64 = arith.subf %38, %63 : vector<2x8x8xf32>
    %65 = arith.select %59, %46, %64 : vector<2x8x8xi1>, vector<2x8x8xf32>
    %66 = vector.broadcast %57 : vector<2x8x1xf32> to vector<2x8x8xf32>
    %67 = arith.mulf %66, %51 : vector<2x8x8xf32>
    %68 = arith.subf %32, %67 : vector<2x8x8xf32>
    %69 = arith.select %59, %51, %68 : vector<2x8x8xi1>, vector<2x8x8xf32>
    %70 = vector.broadcast %57 : vector<2x8x1xf32> to vector<2x8x32xf32>
    %71 = arith.mulf %70, %56 : vector<2x8x32xf32>
    %72 = arith.subf %25, %71 : vector<2x8x32xf32>
    %73 = arith.select %61, %56, %72 : vector<2x8x32xi1>, vector<2x8x32xf32>
    %74 = vector.extract_strided_slice %65 {offsets = [0, 1, 1], sizes = [2, 1, 1], strides = [1, 1, 1]} : vector<2x8x8xf32> to vector<2x1x1xf32>
    %cst_19 = arith.constant 1.000000e+00 : f32
    %75 = vector.broadcast %cst_19 : f32 to vector<2x1x1xf32>
    %76 = arith.divf %75, %74 : vector<2x1x1xf32>
    %77 = vector.extract_strided_slice %65 {offsets = [0, 1, 0], sizes = [2, 1, 8], strides = [1, 1, 1]} : vector<2x8x8xf32> to vector<2x1x8xf32>
    %78 = vector.broadcast %76 : vector<2x1x1xf32> to vector<2x1x8xf32>
    %79 = arith.mulf %77, %78 : vector<2x1x8xf32>
    %80 = vector.shape_cast %79 : vector<2x1x8xf32> to vector<2x1x8xf32>
    %81 = vector.broadcast %80 : vector<2x1x8xf32> to vector<2x8x8xf32>
    %82 = vector.extract_strided_slice %69 {offsets = [0, 1, 0], sizes = [2, 1, 8], strides = [1, 1, 1]} : vector<2x8x8xf32> to vector<2x1x8xf32>
    %83 = vector.broadcast %76 : vector<2x1x1xf32> to vector<2x1x8xf32>
    %84 = arith.mulf %82, %83 : vector<2x1x8xf32>
    %85 = vector.shape_cast %84 : vector<2x1x8xf32> to vector<2x1x8xf32>
    %86 = vector.broadcast %85 : vector<2x1x8xf32> to vector<2x8x8xf32>
    %87 = vector.extract_strided_slice %73 {offsets = [0, 1, 0], sizes = [2, 1, 32], strides = [1, 1, 1]} : vector<2x8x32xf32> to vector<2x1x32xf32>
    %88 = vector.broadcast %76 : vector<2x1x1xf32> to vector<2x1x32xf32>
    %89 = arith.mulf %87, %88 : vector<2x1x32xf32>
    %90 = vector.shape_cast %89 : vector<2x1x32xf32> to vector<2x1x32xf32>
    %91 = vector.broadcast %90 : vector<2x1x32xf32> to vector<2x8x32xf32>
    %92 = vector.extract_strided_slice %65 {offsets = [0, 0, 1], sizes = [2, 8, 1], strides = [1, 1, 1]} : vector<2x8x8xf32> to vector<2x8x1xf32>
    %c1_i32 = arith.constant 1 : i32
    %93 = vector.broadcast %c1_i32 : i32 to vector<2x8x8xi32>
    %94 = arith.cmpi eq, %26, %93 : vector<2x8x8xi32>
    %c1_i32_20 = arith.constant 1 : i32
    %95 = vector.broadcast %c1_i32_20 : i32 to vector<2x8x32xi32>
    %96 = arith.cmpi eq, %28, %95 : vector<2x8x32xi32>
    %97 = vector.broadcast %92 : vector<2x8x1xf32> to vector<2x8x8xf32>
    %98 = arith.mulf %97, %81 : vector<2x8x8xf32>
    %99 = arith.subf %65, %98 : vector<2x8x8xf32>
    %100 = arith.select %94, %81, %99 : vector<2x8x8xi1>, vector<2x8x8xf32>
    %101 = vector.broadcast %92 : vector<2x8x1xf32> to vector<2x8x8xf32>
    %102 = arith.mulf %101, %86 : vector<2x8x8xf32>
    %103 = arith.subf %69, %102 : vector<2x8x8xf32>
    %104 = arith.select %94, %86, %103 : vector<2x8x8xi1>, vector<2x8x8xf32>
    %105 = vector.broadcast %92 : vector<2x8x1xf32> to vector<2x8x32xf32>
    %106 = arith.mulf %105, %91 : vector<2x8x32xf32>
    %107 = arith.subf %73, %106 : vector<2x8x32xf32>
    %108 = arith.select %96, %91, %107 : vector<2x8x32xi1>, vector<2x8x32xf32>
    %109 = vector.extract_strided_slice %100 {offsets = [0, 2, 2], sizes = [2, 1, 1], strides = [1, 1, 1]} : vector<2x8x8xf32> to vector<2x1x1xf32>
    %cst_21 = arith.constant 1.000000e+00 : f32
    %110 = vector.broadcast %cst_21 : f32 to vector<2x1x1xf32>
    %111 = arith.divf %110, %109 : vector<2x1x1xf32>
    %112 = vector.extract_strided_slice %100 {offsets = [0, 2, 0], sizes = [2, 1, 8], strides = [1, 1, 1]} : vector<2x8x8xf32> to vector<2x1x8xf32>
    %113 = vector.broadcast %111 : vector<2x1x1xf32> to vector<2x1x8xf32>
    %114 = arith.mulf %112, %113 : vector<2x1x8xf32>
    %115 = vector.shape_cast %114 : vector<2x1x8xf32> to vector<2x1x8xf32>
    %116 = vector.broadcast %115 : vector<2x1x8xf32> to vector<2x8x8xf32>
    %117 = vector.extract_strided_slice %104 {offsets = [0, 2, 0], sizes = [2, 1, 8], strides = [1, 1, 1]} : vector<2x8x8xf32> to vector<2x1x8xf32>
    %118 = vector.broadcast %111 : vector<2x1x1xf32> to vector<2x1x8xf32>
    %119 = arith.mulf %117, %118 : vector<2x1x8xf32>
    %120 = vector.shape_cast %119 : vector<2x1x8xf32> to vector<2x1x8xf32>
    %121 = vector.broadcast %120 : vector<2x1x8xf32> to vector<2x8x8xf32>
    %122 = vector.extract_strided_slice %108 {offsets = [0, 2, 0], sizes = [2, 1, 32], strides = [1, 1, 1]} : vector<2x8x32xf32> to vector<2x1x32xf32>
    %123 = vector.broadcast %111 : vector<2x1x1xf32> to vector<2x1x32xf32>
    %124 = arith.mulf %122, %123 : vector<2x1x32xf32>
    %125 = vector.shape_cast %124 : vector<2x1x32xf32> to vector<2x1x32xf32>
    %126 = vector.broadcast %125 : vector<2x1x32xf32> to vector<2x8x32xf32>
    %127 = vector.extract_strided_slice %100 {offsets = [0, 0, 2], sizes = [2, 8, 1], strides = [1, 1, 1]} : vector<2x8x8xf32> to vector<2x8x1xf32>
    %c2_i32 = arith.constant 2 : i32
    %128 = vector.broadcast %c2_i32 : i32 to vector<2x8x8xi32>
    %129 = arith.cmpi eq, %26, %128 : vector<2x8x8xi32>
    %c2_i32_22 = arith.constant 2 : i32
    %130 = vector.broadcast %c2_i32_22 : i32 to vector<2x8x32xi32>
    %131 = arith.cmpi eq, %28, %130 : vector<2x8x32xi32>
    %132 = vector.broadcast %127 : vector<2x8x1xf32> to vector<2x8x8xf32>
    %133 = arith.mulf %132, %116 : vector<2x8x8xf32>
    %134 = arith.subf %100, %133 : vector<2x8x8xf32>
    %135 = arith.select %129, %116, %134 : vector<2x8x8xi1>, vector<2x8x8xf32>
    %136 = vector.broadcast %127 : vector<2x8x1xf32> to vector<2x8x8xf32>
    %137 = arith.mulf %136, %121 : vector<2x8x8xf32>
    %138 = arith.subf %104, %137 : vector<2x8x8xf32>
    %139 = arith.select %129, %121, %138 : vector<2x8x8xi1>, vector<2x8x8xf32>
    %140 = vector.broadcast %127 : vector<2x8x1xf32> to vector<2x8x32xf32>
    %141 = arith.mulf %140, %126 : vector<2x8x32xf32>
    %142 = arith.subf %108, %141 : vector<2x8x32xf32>
    %143 = arith.select %131, %126, %142 : vector<2x8x32xi1>, vector<2x8x32xf32>
    %144 = vector.extract_strided_slice %135 {offsets = [0, 3, 3], sizes = [2, 1, 1], strides = [1, 1, 1]} : vector<2x8x8xf32> to vector<2x1x1xf32>
    %cst_23 = arith.constant 1.000000e+00 : f32
    %145 = vector.broadcast %cst_23 : f32 to vector<2x1x1xf32>
    %146 = arith.divf %145, %144 : vector<2x1x1xf32>
    %147 = vector.extract_strided_slice %135 {offsets = [0, 3, 0], sizes = [2, 1, 8], strides = [1, 1, 1]} : vector<2x8x8xf32> to vector<2x1x8xf32>
    %148 = vector.broadcast %146 : vector<2x1x1xf32> to vector<2x1x8xf32>
    %149 = arith.mulf %147, %148 : vector<2x1x8xf32>
    %150 = vector.shape_cast %149 : vector<2x1x8xf32> to vector<2x1x8xf32>
    %151 = vector.broadcast %150 : vector<2x1x8xf32> to vector<2x8x8xf32>
    %152 = vector.extract_strided_slice %139 {offsets = [0, 3, 0], sizes = [2, 1, 8], strides = [1, 1, 1]} : vector<2x8x8xf32> to vector<2x1x8xf32>
    %153 = vector.broadcast %146 : vector<2x1x1xf32> to vector<2x1x8xf32>
    %154 = arith.mulf %152, %153 : vector<2x1x8xf32>
    %155 = vector.shape_cast %154 : vector<2x1x8xf32> to vector<2x1x8xf32>
    %156 = vector.broadcast %155 : vector<2x1x8xf32> to vector<2x8x8xf32>
    %157 = vector.extract_strided_slice %143 {offsets = [0, 3, 0], sizes = [2, 1, 32], strides = [1, 1, 1]} : vector<2x8x32xf32> to vector<2x1x32xf32>
    %158 = vector.broadcast %146 : vector<2x1x1xf32> to vector<2x1x32xf32>
    %159 = arith.mulf %157, %158 : vector<2x1x32xf32>
    %160 = vector.shape_cast %159 : vector<2x1x32xf32> to vector<2x1x32xf32>
    %161 = vector.broadcast %160 : vector<2x1x32xf32> to vector<2x8x32xf32>
    %162 = vector.extract_strided_slice %135 {offsets = [0, 0, 3], sizes = [2, 8, 1], strides = [1, 1, 1]} : vector<2x8x8xf32> to vector<2x8x1xf32>
    %c3_i32 = arith.constant 3 : i32
    %163 = vector.broadcast %c3_i32 : i32 to vector<2x8x8xi32>
    %164 = arith.cmpi eq, %26, %163 : vector<2x8x8xi32>
    %c3_i32_24 = arith.constant 3 : i32
    %165 = vector.broadcast %c3_i32_24 : i32 to vector<2x8x32xi32>
    %166 = arith.cmpi eq, %28, %165 : vector<2x8x32xi32>
    %167 = vector.broadcast %162 : vector<2x8x1xf32> to vector<2x8x8xf32>
    %168 = arith.mulf %167, %151 : vector<2x8x8xf32>
    %169 = arith.subf %135, %168 : vector<2x8x8xf32>
    %170 = arith.select %164, %151, %169 : vector<2x8x8xi1>, vector<2x8x8xf32>
    %171 = vector.broadcast %162 : vector<2x8x1xf32> to vector<2x8x8xf32>
    %172 = arith.mulf %171, %156 : vector<2x8x8xf32>
    %173 = arith.subf %139, %172 : vector<2x8x8xf32>
    %174 = arith.select %164, %156, %173 : vector<2x8x8xi1>, vector<2x8x8xf32>
    %175 = vector.broadcast %162 : vector<2x8x1xf32> to vector<2x8x32xf32>
    %176 = arith.mulf %175, %161 : vector<2x8x32xf32>
    %177 = arith.subf %143, %176 : vector<2x8x32xf32>
    %178 = arith.select %166, %161, %177 : vector<2x8x32xi1>, vector<2x8x32xf32>
    %179 = vector.extract_strided_slice %170 {offsets = [0, 4, 4], sizes = [2, 1, 1], strides = [1, 1, 1]} : vector<2x8x8xf32> to vector<2x1x1xf32>
    %cst_25 = arith.constant 1.000000e+00 : f32
    %180 = vector.broadcast %cst_25 : f32 to vector<2x1x1xf32>
    %181 = arith.divf %180, %179 : vector<2x1x1xf32>
    %182 = vector.extract_strided_slice %170 {offsets = [0, 4, 0], sizes = [2, 1, 8], strides = [1, 1, 1]} : vector<2x8x8xf32> to vector<2x1x8xf32>
    %183 = vector.broadcast %181 : vector<2x1x1xf32> to vector<2x1x8xf32>
    %184 = arith.mulf %182, %183 : vector<2x1x8xf32>
    %185 = vector.shape_cast %184 : vector<2x1x8xf32> to vector<2x1x8xf32>
    %186 = vector.broadcast %185 : vector<2x1x8xf32> to vector<2x8x8xf32>
    %187 = vector.extract_strided_slice %174 {offsets = [0, 4, 0], sizes = [2, 1, 8], strides = [1, 1, 1]} : vector<2x8x8xf32> to vector<2x1x8xf32>
    %188 = vector.broadcast %181 : vector<2x1x1xf32> to vector<2x1x8xf32>
    %189 = arith.mulf %187, %188 : vector<2x1x8xf32>
    %190 = vector.shape_cast %189 : vector<2x1x8xf32> to vector<2x1x8xf32>
    %191 = vector.broadcast %190 : vector<2x1x8xf32> to vector<2x8x8xf32>
    %192 = vector.extract_strided_slice %178 {offsets = [0, 4, 0], sizes = [2, 1, 32], strides = [1, 1, 1]} : vector<2x8x32xf32> to vector<2x1x32xf32>
    %193 = vector.broadcast %181 : vector<2x1x1xf32> to vector<2x1x32xf32>
    %194 = arith.mulf %192, %193 : vector<2x1x32xf32>
    %195 = vector.shape_cast %194 : vector<2x1x32xf32> to vector<2x1x32xf32>
    %196 = vector.broadcast %195 : vector<2x1x32xf32> to vector<2x8x32xf32>
    %197 = vector.extract_strided_slice %170 {offsets = [0, 0, 4], sizes = [2, 8, 1], strides = [1, 1, 1]} : vector<2x8x8xf32> to vector<2x8x1xf32>
    %c4_i32 = arith.constant 4 : i32
    %198 = vector.broadcast %c4_i32 : i32 to vector<2x8x8xi32>
    %199 = arith.cmpi eq, %26, %198 : vector<2x8x8xi32>
    %c4_i32_26 = arith.constant 4 : i32
    %200 = vector.broadcast %c4_i32_26 : i32 to vector<2x8x32xi32>
    %201 = arith.cmpi eq, %28, %200 : vector<2x8x32xi32>
    %202 = vector.broadcast %197 : vector<2x8x1xf32> to vector<2x8x8xf32>
    %203 = arith.mulf %202, %186 : vector<2x8x8xf32>
    %204 = arith.subf %170, %203 : vector<2x8x8xf32>
    %205 = arith.select %199, %186, %204 : vector<2x8x8xi1>, vector<2x8x8xf32>
    %206 = vector.broadcast %197 : vector<2x8x1xf32> to vector<2x8x8xf32>
    %207 = arith.mulf %206, %191 : vector<2x8x8xf32>
    %208 = arith.subf %174, %207 : vector<2x8x8xf32>
    %209 = arith.select %199, %191, %208 : vector<2x8x8xi1>, vector<2x8x8xf32>
    %210 = vector.broadcast %197 : vector<2x8x1xf32> to vector<2x8x32xf32>
    %211 = arith.mulf %210, %196 : vector<2x8x32xf32>
    %212 = arith.subf %178, %211 : vector<2x8x32xf32>
    %213 = arith.select %201, %196, %212 : vector<2x8x32xi1>, vector<2x8x32xf32>
    %214 = vector.extract_strided_slice %205 {offsets = [0, 5, 5], sizes = [2, 1, 1], strides = [1, 1, 1]} : vector<2x8x8xf32> to vector<2x1x1xf32>
    %cst_27 = arith.constant 1.000000e+00 : f32
    %215 = vector.broadcast %cst_27 : f32 to vector<2x1x1xf32>
    %216 = arith.divf %215, %214 : vector<2x1x1xf32>
    %217 = vector.extract_strided_slice %205 {offsets = [0, 5, 0], sizes = [2, 1, 8], strides = [1, 1, 1]} : vector<2x8x8xf32> to vector<2x1x8xf32>
    %218 = vector.broadcast %216 : vector<2x1x1xf32> to vector<2x1x8xf32>
    %219 = arith.mulf %217, %218 : vector<2x1x8xf32>
    %220 = vector.shape_cast %219 : vector<2x1x8xf32> to vector<2x1x8xf32>
    %221 = vector.broadcast %220 : vector<2x1x8xf32> to vector<2x8x8xf32>
    %222 = vector.extract_strided_slice %209 {offsets = [0, 5, 0], sizes = [2, 1, 8], strides = [1, 1, 1]} : vector<2x8x8xf32> to vector<2x1x8xf32>
    %223 = vector.broadcast %216 : vector<2x1x1xf32> to vector<2x1x8xf32>
    %224 = arith.mulf %222, %223 : vector<2x1x8xf32>
    %225 = vector.shape_cast %224 : vector<2x1x8xf32> to vector<2x1x8xf32>
    %226 = vector.broadcast %225 : vector<2x1x8xf32> to vector<2x8x8xf32>
    %227 = vector.extract_strided_slice %213 {offsets = [0, 5, 0], sizes = [2, 1, 32], strides = [1, 1, 1]} : vector<2x8x32xf32> to vector<2x1x32xf32>
    %228 = vector.broadcast %216 : vector<2x1x1xf32> to vector<2x1x32xf32>
    %229 = arith.mulf %227, %228 : vector<2x1x32xf32>
    %230 = vector.shape_cast %229 : vector<2x1x32xf32> to vector<2x1x32xf32>
    %231 = vector.broadcast %230 : vector<2x1x32xf32> to vector<2x8x32xf32>
    %232 = vector.extract_strided_slice %205 {offsets = [0, 0, 5], sizes = [2, 8, 1], strides = [1, 1, 1]} : vector<2x8x8xf32> to vector<2x8x1xf32>
    %c5_i32 = arith.constant 5 : i32
    %233 = vector.broadcast %c5_i32 : i32 to vector<2x8x8xi32>
    %234 = arith.cmpi eq, %26, %233 : vector<2x8x8xi32>
    %c5_i32_28 = arith.constant 5 : i32
    %235 = vector.broadcast %c5_i32_28 : i32 to vector<2x8x32xi32>
    %236 = arith.cmpi eq, %28, %235 : vector<2x8x32xi32>
    %237 = vector.broadcast %232 : vector<2x8x1xf32> to vector<2x8x8xf32>
    %238 = arith.mulf %237, %221 : vector<2x8x8xf32>
    %239 = arith.subf %205, %238 : vector<2x8x8xf32>
    %240 = arith.select %234, %221, %239 : vector<2x8x8xi1>, vector<2x8x8xf32>
    %241 = vector.broadcast %232 : vector<2x8x1xf32> to vector<2x8x8xf32>
    %242 = arith.mulf %241, %226 : vector<2x8x8xf32>
    %243 = arith.subf %209, %242 : vector<2x8x8xf32>
    %244 = arith.select %234, %226, %243 : vector<2x8x8xi1>, vector<2x8x8xf32>
    %245 = vector.broadcast %232 : vector<2x8x1xf32> to vector<2x8x32xf32>
    %246 = arith.mulf %245, %231 : vector<2x8x32xf32>
    %247 = arith.subf %213, %246 : vector<2x8x32xf32>
    %248 = arith.select %236, %231, %247 : vector<2x8x32xi1>, vector<2x8x32xf32>
    %249 = vector.extract_strided_slice %240 {offsets = [0, 6, 6], sizes = [2, 1, 1], strides = [1, 1, 1]} : vector<2x8x8xf32> to vector<2x1x1xf32>
    %cst_29 = arith.constant 1.000000e+00 : f32
    %250 = vector.broadcast %cst_29 : f32 to vector<2x1x1xf32>
    %251 = arith.divf %250, %249 : vector<2x1x1xf32>
    %252 = vector.extract_strided_slice %240 {offsets = [0, 6, 0], sizes = [2, 1, 8], strides = [1, 1, 1]} : vector<2x8x8xf32> to vector<2x1x8xf32>
    %253 = vector.broadcast %251 : vector<2x1x1xf32> to vector<2x1x8xf32>
    %254 = arith.mulf %252, %253 : vector<2x1x8xf32>
    %255 = vector.shape_cast %254 : vector<2x1x8xf32> to vector<2x1x8xf32>
    %256 = vector.broadcast %255 : vector<2x1x8xf32> to vector<2x8x8xf32>
    %257 = vector.extract_strided_slice %244 {offsets = [0, 6, 0], sizes = [2, 1, 8], strides = [1, 1, 1]} : vector<2x8x8xf32> to vector<2x1x8xf32>
    %258 = vector.broadcast %251 : vector<2x1x1xf32> to vector<2x1x8xf32>
    %259 = arith.mulf %257, %258 : vector<2x1x8xf32>
    %260 = vector.shape_cast %259 : vector<2x1x8xf32> to vector<2x1x8xf32>
    %261 = vector.broadcast %260 : vector<2x1x8xf32> to vector<2x8x8xf32>
    %262 = vector.extract_strided_slice %248 {offsets = [0, 6, 0], sizes = [2, 1, 32], strides = [1, 1, 1]} : vector<2x8x32xf32> to vector<2x1x32xf32>
    %263 = vector.broadcast %251 : vector<2x1x1xf32> to vector<2x1x32xf32>
    %264 = arith.mulf %262, %263 : vector<2x1x32xf32>
    %265 = vector.shape_cast %264 : vector<2x1x32xf32> to vector<2x1x32xf32>
    %266 = vector.broadcast %265 : vector<2x1x32xf32> to vector<2x8x32xf32>
    %267 = vector.extract_strided_slice %240 {offsets = [0, 0, 6], sizes = [2, 8, 1], strides = [1, 1, 1]} : vector<2x8x8xf32> to vector<2x8x1xf32>
    %c6_i32 = arith.constant 6 : i32
    %268 = vector.broadcast %c6_i32 : i32 to vector<2x8x8xi32>
    %269 = arith.cmpi eq, %26, %268 : vector<2x8x8xi32>
    %c6_i32_30 = arith.constant 6 : i32
    %270 = vector.broadcast %c6_i32_30 : i32 to vector<2x8x32xi32>
    %271 = arith.cmpi eq, %28, %270 : vector<2x8x32xi32>
    %272 = vector.broadcast %267 : vector<2x8x1xf32> to vector<2x8x8xf32>
    %273 = arith.mulf %272, %256 : vector<2x8x8xf32>
    %274 = arith.subf %240, %273 : vector<2x8x8xf32>
    %275 = arith.select %269, %256, %274 : vector<2x8x8xi1>, vector<2x8x8xf32>
    %276 = vector.broadcast %267 : vector<2x8x1xf32> to vector<2x8x8xf32>
    %277 = arith.mulf %276, %261 : vector<2x8x8xf32>
    %278 = arith.subf %244, %277 : vector<2x8x8xf32>
    %279 = arith.select %269, %261, %278 : vector<2x8x8xi1>, vector<2x8x8xf32>
    %280 = vector.broadcast %267 : vector<2x8x1xf32> to vector<2x8x32xf32>
    %281 = arith.mulf %280, %266 : vector<2x8x32xf32>
    %282 = arith.subf %248, %281 : vector<2x8x32xf32>
    %283 = arith.select %271, %266, %282 : vector<2x8x32xi1>, vector<2x8x32xf32>
    %284 = vector.extract_strided_slice %275 {offsets = [0, 7, 7], sizes = [2, 1, 1], strides = [1, 1, 1]} : vector<2x8x8xf32> to vector<2x1x1xf32>
    %cst_31 = arith.constant 1.000000e+00 : f32
    %285 = vector.broadcast %cst_31 : f32 to vector<2x1x1xf32>
    %286 = arith.divf %285, %284 : vector<2x1x1xf32>
    %287 = vector.extract_strided_slice %279 {offsets = [0, 7, 0], sizes = [2, 1, 8], strides = [1, 1, 1]} : vector<2x8x8xf32> to vector<2x1x8xf32>
    %288 = vector.broadcast %286 : vector<2x1x1xf32> to vector<2x1x8xf32>
    %289 = arith.mulf %287, %288 : vector<2x1x8xf32>
    %290 = vector.shape_cast %289 : vector<2x1x8xf32> to vector<2x1x8xf32>
    %291 = vector.broadcast %290 : vector<2x1x8xf32> to vector<2x8x8xf32>
    %292 = vector.extract_strided_slice %283 {offsets = [0, 7, 0], sizes = [2, 1, 32], strides = [1, 1, 1]} : vector<2x8x32xf32> to vector<2x1x32xf32>
    %293 = vector.broadcast %286 : vector<2x1x1xf32> to vector<2x1x32xf32>
    %294 = arith.mulf %292, %293 : vector<2x1x32xf32>
    %295 = vector.shape_cast %294 : vector<2x1x32xf32> to vector<2x1x32xf32>
    %296 = vector.broadcast %295 : vector<2x1x32xf32> to vector<2x8x32xf32>
    %297 = vector.extract_strided_slice %275 {offsets = [0, 0, 7], sizes = [2, 8, 1], strides = [1, 1, 1]} : vector<2x8x8xf32> to vector<2x8x1xf32>
    %c7_i32 = arith.constant 7 : i32
    %298 = vector.broadcast %c7_i32 : i32 to vector<2x8x8xi32>
    %299 = arith.cmpi eq, %26, %298 : vector<2x8x8xi32>
    %c7_i32_32 = arith.constant 7 : i32
    %300 = vector.broadcast %c7_i32_32 : i32 to vector<2x8x32xi32>
    %301 = arith.cmpi eq, %28, %300 : vector<2x8x32xi32>
    %302 = vector.broadcast %297 : vector<2x8x1xf32> to vector<2x8x8xf32>
    %303 = arith.mulf %302, %291 : vector<2x8x8xf32>
    %304 = arith.subf %279, %303 : vector<2x8x8xf32>
    %305 = arith.select %299, %291, %304 : vector<2x8x8xi1>, vector<2x8x8xf32>
    %306 = vector.broadcast %297 : vector<2x8x1xf32> to vector<2x8x32xf32>
    %307 = arith.mulf %306, %296 : vector<2x8x32xf32>
    %308 = arith.subf %283, %307 : vector<2x8x32xf32>
    %309 = arith.select %301, %296, %308 : vector<2x8x32xi1>, vector<2x8x32xf32>
    %310 = arith.mulf %305, %32 : vector<2x8x8xf32>
    %cst_33 = arith.constant dense<0.000000e+00> : vector<2x8xf32>
    %311 = vector.multi_reduction <add>, %310, %cst_33 [2] : vector<2x8x8xf32> to vector<2x8xf32>
    %312 = vector.shape_cast %311 : vector<2x8xf32> to vector<2x8x1xf32>
    %313 = arith.mulf %309, %309 : vector<2x8x32xf32>
    %cst_34 = arith.constant dense<0.000000e+00> : vector<2x8xf32>
    %314 = vector.multi_reduction <add>, %313, %cst_34 [2] : vector<2x8x32xf32> to vector<2x8xf32>
    %315 = vector.shape_cast %314 : vector<2x8xf32> to vector<2x8x1xf32>
    %cst_35 = arith.constant 5.000000e-01 : f32
    %316 = vector.broadcast %cst_35 : f32 to vector<2x8x1xf32>
    %317 = arith.mulf %316, %312 : vector<2x8x1xf32>
    %cst_36 = arith.constant 1.000000e+00 : f32
    %318 = vector.broadcast %cst_36 : f32 to vector<2x8x1xf32>
    %319 = arith.subf %318, %317 : vector<2x8x1xf32>
    %cst_37 = arith.constant 2.500000e-01 : f32
    %320 = vector.broadcast %cst_37 : f32 to vector<2x8x1xf32>
    %321 = arith.mulf %320, %315 : vector<2x8x1xf32>
    %322 = arith.subf %319, %321 : vector<2x8x1xf32>
    %323 = math.absf %322 : vector<2x8x1xf32>
    %324 = vector.shape_cast %323 : vector<2x8x1xf32> to vector<1x2x8x1xf32>
    %cst_38 = arith.constant dense<0xFF800000> : vector<1xf32>
    %325 = vector.multi_reduction <maximumf>, %324, %cst_38 [1, 2, 3] : vector<1x2x8x1xf32> to vector<1xf32>
    %326 = vector.shape_cast %325 : vector<1xf32> to vector<1x1x1x1xf32>
    %327 = vector.extract %326[0, 0, 0, 0] : f32 from vector<1x1x1x1xf32>
    %c0_i32_39 = arith.constant 0 : i32
    %328:6 = scf.while (%arg6 = %c0_i32_39, %arg7 = %327, %arg8 = %35, %arg9 = %305, %arg10 = %309, %arg11 = %322) : (i32, f32, vector<2x8x1xf32>, vector<2x8x8xf32>, vector<2x8x32xf32>, vector<2x8x1xf32>) -> (i32, f32, vector<2x8x1xf32>, vector<2x8x8xf32>, vector<2x8x32xf32>, vector<2x8x1xf32>) {
      %c40_i32 = arith.constant 40 : i32
      %332 = arith.cmpi slt, %arg6, %c40_i32 : i32
      %cst_44 = arith.constant 9.99999974E-6 : f32
      %333 = arith.cmpf ogt, %arg7, %cst_44 : f32
      %334 = arith.andi %332, %333 : i1
      scf.condition(%334) %arg6, %arg7, %arg8, %arg9, %arg10, %arg11 : i32, f32, vector<2x8x1xf32>, vector<2x8x8xf32>, vector<2x8x32xf32>, vector<2x8x1xf32>
    } do {
    ^bb0(%arg6: i32, %arg7: f32, %arg8: vector<2x8x1xf32>, %arg9: vector<2x8x8xf32>, %arg10: vector<2x8x32xf32>, %arg11: vector<2x8x1xf32>):
      "tpu.trace_start"() <{level = 10 : i32, message = "bnd,bmd->bnm"}> : () -> ()
      %cst_44 = arith.constant dense<0.000000e+00> : vector<2x8x8xf32>
      %332 = tpu.matmul %arg10, %arg10, %cst_44 {dimension_numbers = #tpu.dot_dimension_numbers<[2], [2], [1], [1], [0, 0, 0, 1, 1, 1], [0], [0]>} : vector<2x8x32xf32>, vector<2x8x32xf32>, vector<2x8x8xf32> -> vector<2x8x8xf32>
      "tpu.trace_stop"() : () -> ()
      %cst_45 = arith.constant 5.000000e-01 : f32
      %333 = vector.broadcast %cst_45 : f32 to vector<2x8x8xf32>
      %334 = arith.mulf %333, %arg9 : vector<2x8x8xf32>
      %335 = arith.mulf %334, %arg9 : vector<2x8x8xf32>
      %cst_46 = arith.constant 5.000000e-01 : f32
      %336 = vector.broadcast %cst_46 : f32 to vector<2x8x8xf32>
      %337 = arith.mulf %336, %arg9 : vector<2x8x8xf32>
      %338 = arith.mulf %337, %332 : vector<2x8x8xf32>
      %339 = arith.addf %335, %338 : vector<2x8x8xf32>
      %340 = vector.extract_strided_slice %339 {offsets = [0, 0, 0], sizes = [2, 1, 1], strides = [1, 1, 1]} : vector<2x8x8xf32> to vector<2x1x1xf32>
      %cst_47 = arith.constant 1.000000e+00 : f32
      %341 = vector.broadcast %cst_47 : f32 to vector<2x1x1xf32>
      %342 = arith.divf %341, %340 : vector<2x1x1xf32>
      %343 = vector.extract_strided_slice %339 {offsets = [0, 0, 0], sizes = [2, 1, 8], strides = [1, 1, 1]} : vector<2x8x8xf32> to vector<2x1x8xf32>
      %344 = vector.broadcast %342 : vector<2x1x1xf32> to vector<2x1x8xf32>
      %345 = arith.mulf %343, %344 : vector<2x1x8xf32>
      %346 = vector.shape_cast %345 : vector<2x1x8xf32> to vector<2x1x8xf32>
      %347 = vector.broadcast %346 : vector<2x1x8xf32> to vector<2x8x8xf32>
      %348 = vector.extract_strided_slice %arg11 {offsets = [0, 0, 0], sizes = [2, 1, 1], strides = [1, 1, 1]} : vector<2x8x1xf32> to vector<2x1x1xf32>
      %349 = arith.mulf %348, %342 : vector<2x1x1xf32>
      %350 = vector.shape_cast %349 : vector<2x1x1xf32> to vector<2x1x1xf32>
      %351 = vector.broadcast %350 : vector<2x1x1xf32> to vector<2x8x1xf32>
      %352 = vector.extract_strided_slice %339 {offsets = [0, 0, 0], sizes = [2, 8, 1], strides = [1, 1, 1]} : vector<2x8x8xf32> to vector<2x8x1xf32>
      %c0_i32_48 = arith.constant 0 : i32
      %353 = vector.broadcast %c0_i32_48 : i32 to vector<2x8x8xi32>
      %354 = arith.cmpi eq, %26, %353 : vector<2x8x8xi32>
      %355 = vector.broadcast %352 : vector<2x8x1xf32> to vector<2x8x8xf32>
      %356 = arith.mulf %355, %347 : vector<2x8x8xf32>
      %357 = arith.subf %339, %356 : vector<2x8x8xf32>
      %358 = arith.select %354, %347, %357 : vector<2x8x8xi1>, vector<2x8x8xf32>
      %c0_i32_49 = arith.constant 0 : i32
      %359 = vector.broadcast %c0_i32_49 : i32 to vector<2x8x1xi32>
      %360 = arith.cmpi eq, %29, %359 : vector<2x8x1xi32>
      %361 = arith.mulf %352, %351 : vector<2x8x1xf32>
      %362 = arith.subf %arg11, %361 : vector<2x8x1xf32>
      %363 = arith.select %360, %351, %362 : vector<2x8x1xi1>, vector<2x8x1xf32>
      %364 = vector.extract_strided_slice %358 {offsets = [0, 1, 1], sizes = [2, 1, 1], strides = [1, 1, 1]} : vector<2x8x8xf32> to vector<2x1x1xf32>
      %cst_50 = arith.constant 1.000000e+00 : f32
      %365 = vector.broadcast %cst_50 : f32 to vector<2x1x1xf32>
      %366 = arith.divf %365, %364 : vector<2x1x1xf32>
      %367 = vector.extract_strided_slice %358 {offsets = [0, 1, 0], sizes = [2, 1, 8], strides = [1, 1, 1]} : vector<2x8x8xf32> to vector<2x1x8xf32>
      %368 = vector.broadcast %366 : vector<2x1x1xf32> to vector<2x1x8xf32>
      %369 = arith.mulf %367, %368 : vector<2x1x8xf32>
      %370 = vector.shape_cast %369 : vector<2x1x8xf32> to vector<2x1x8xf32>
      %371 = vector.broadcast %370 : vector<2x1x8xf32> to vector<2x8x8xf32>
      %372 = vector.extract_strided_slice %363 {offsets = [0, 1, 0], sizes = [2, 1, 1], strides = [1, 1, 1]} : vector<2x8x1xf32> to vector<2x1x1xf32>
      %373 = arith.mulf %372, %366 : vector<2x1x1xf32>
      %374 = vector.shape_cast %373 : vector<2x1x1xf32> to vector<2x1x1xf32>
      %375 = vector.broadcast %374 : vector<2x1x1xf32> to vector<2x8x1xf32>
      %376 = vector.extract_strided_slice %358 {offsets = [0, 0, 1], sizes = [2, 8, 1], strides = [1, 1, 1]} : vector<2x8x8xf32> to vector<2x8x1xf32>
      %c1_i32_51 = arith.constant 1 : i32
      %377 = vector.broadcast %c1_i32_51 : i32 to vector<2x8x8xi32>
      %378 = arith.cmpi eq, %26, %377 : vector<2x8x8xi32>
      %379 = vector.broadcast %376 : vector<2x8x1xf32> to vector<2x8x8xf32>
      %380 = arith.mulf %379, %371 : vector<2x8x8xf32>
      %381 = arith.subf %358, %380 : vector<2x8x8xf32>
      %382 = arith.select %378, %371, %381 : vector<2x8x8xi1>, vector<2x8x8xf32>
      %c1_i32_52 = arith.constant 1 : i32
      %383 = vector.broadcast %c1_i32_52 : i32 to vector<2x8x1xi32>
      %384 = arith.cmpi eq, %29, %383 : vector<2x8x1xi32>
      %385 = arith.mulf %376, %375 : vector<2x8x1xf32>
      %386 = arith.subf %363, %385 : vector<2x8x1xf32>
      %387 = arith.select %384, %375, %386 : vector<2x8x1xi1>, vector<2x8x1xf32>
      %388 = vector.extract_strided_slice %382 {offsets = [0, 2, 2], sizes = [2, 1, 1], strides = [1, 1, 1]} : vector<2x8x8xf32> to vector<2x1x1xf32>
      %cst_53 = arith.constant 1.000000e+00 : f32
      %389 = vector.broadcast %cst_53 : f32 to vector<2x1x1xf32>
      %390 = arith.divf %389, %388 : vector<2x1x1xf32>
      %391 = vector.extract_strided_slice %382 {offsets = [0, 2, 0], sizes = [2, 1, 8], strides = [1, 1, 1]} : vector<2x8x8xf32> to vector<2x1x8xf32>
      %392 = vector.broadcast %390 : vector<2x1x1xf32> to vector<2x1x8xf32>
      %393 = arith.mulf %391, %392 : vector<2x1x8xf32>
      %394 = vector.shape_cast %393 : vector<2x1x8xf32> to vector<2x1x8xf32>
      %395 = vector.broadcast %394 : vector<2x1x8xf32> to vector<2x8x8xf32>
      %396 = vector.extract_strided_slice %387 {offsets = [0, 2, 0], sizes = [2, 1, 1], strides = [1, 1, 1]} : vector<2x8x1xf32> to vector<2x1x1xf32>
      %397 = arith.mulf %396, %390 : vector<2x1x1xf32>
      %398 = vector.shape_cast %397 : vector<2x1x1xf32> to vector<2x1x1xf32>
      %399 = vector.broadcast %398 : vector<2x1x1xf32> to vector<2x8x1xf32>
      %400 = vector.extract_strided_slice %382 {offsets = [0, 0, 2], sizes = [2, 8, 1], strides = [1, 1, 1]} : vector<2x8x8xf32> to vector<2x8x1xf32>
      %c2_i32_54 = arith.constant 2 : i32
      %401 = vector.broadcast %c2_i32_54 : i32 to vector<2x8x8xi32>
      %402 = arith.cmpi eq, %26, %401 : vector<2x8x8xi32>
      %403 = vector.broadcast %400 : vector<2x8x1xf32> to vector<2x8x8xf32>
      %404 = arith.mulf %403, %395 : vector<2x8x8xf32>
      %405 = arith.subf %382, %404 : vector<2x8x8xf32>
      %406 = arith.select %402, %395, %405 : vector<2x8x8xi1>, vector<2x8x8xf32>
      %c2_i32_55 = arith.constant 2 : i32
      %407 = vector.broadcast %c2_i32_55 : i32 to vector<2x8x1xi32>
      %408 = arith.cmpi eq, %29, %407 : vector<2x8x1xi32>
      %409 = arith.mulf %400, %399 : vector<2x8x1xf32>
      %410 = arith.subf %387, %409 : vector<2x8x1xf32>
      %411 = arith.select %408, %399, %410 : vector<2x8x1xi1>, vector<2x8x1xf32>
      %412 = vector.extract_strided_slice %406 {offsets = [0, 3, 3], sizes = [2, 1, 1], strides = [1, 1, 1]} : vector<2x8x8xf32> to vector<2x1x1xf32>
      %cst_56 = arith.constant 1.000000e+00 : f32
      %413 = vector.broadcast %cst_56 : f32 to vector<2x1x1xf32>
      %414 = arith.divf %413, %412 : vector<2x1x1xf32>
      %415 = vector.extract_strided_slice %406 {offsets = [0, 3, 0], sizes = [2, 1, 8], strides = [1, 1, 1]} : vector<2x8x8xf32> to vector<2x1x8xf32>
      %416 = vector.broadcast %414 : vector<2x1x1xf32> to vector<2x1x8xf32>
      %417 = arith.mulf %415, %416 : vector<2x1x8xf32>
      %418 = vector.shape_cast %417 : vector<2x1x8xf32> to vector<2x1x8xf32>
      %419 = vector.broadcast %418 : vector<2x1x8xf32> to vector<2x8x8xf32>
      %420 = vector.extract_strided_slice %411 {offsets = [0, 3, 0], sizes = [2, 1, 1], strides = [1, 1, 1]} : vector<2x8x1xf32> to vector<2x1x1xf32>
      %421 = arith.mulf %420, %414 : vector<2x1x1xf32>
      %422 = vector.shape_cast %421 : vector<2x1x1xf32> to vector<2x1x1xf32>
      %423 = vector.broadcast %422 : vector<2x1x1xf32> to vector<2x8x1xf32>
      %424 = vector.extract_strided_slice %406 {offsets = [0, 0, 3], sizes = [2, 8, 1], strides = [1, 1, 1]} : vector<2x8x8xf32> to vector<2x8x1xf32>
      %c3_i32_57 = arith.constant 3 : i32
      %425 = vector.broadcast %c3_i32_57 : i32 to vector<2x8x8xi32>
      %426 = arith.cmpi eq, %26, %425 : vector<2x8x8xi32>
      %427 = vector.broadcast %424 : vector<2x8x1xf32> to vector<2x8x8xf32>
      %428 = arith.mulf %427, %419 : vector<2x8x8xf32>
      %429 = arith.subf %406, %428 : vector<2x8x8xf32>
      %430 = arith.select %426, %419, %429 : vector<2x8x8xi1>, vector<2x8x8xf32>
      %c3_i32_58 = arith.constant 3 : i32
      %431 = vector.broadcast %c3_i32_58 : i32 to vector<2x8x1xi32>
      %432 = arith.cmpi eq, %29, %431 : vector<2x8x1xi32>
      %433 = arith.mulf %424, %423 : vector<2x8x1xf32>
      %434 = arith.subf %411, %433 : vector<2x8x1xf32>
      %435 = arith.select %432, %423, %434 : vector<2x8x1xi1>, vector<2x8x1xf32>
      %436 = vector.extract_strided_slice %430 {offsets = [0, 4, 4], sizes = [2, 1, 1], strides = [1, 1, 1]} : vector<2x8x8xf32> to vector<2x1x1xf32>
      %cst_59 = arith.constant 1.000000e+00 : f32
      %437 = vector.broadcast %cst_59 : f32 to vector<2x1x1xf32>
      %438 = arith.divf %437, %436 : vector<2x1x1xf32>
      %439 = vector.extract_strided_slice %430 {offsets = [0, 4, 0], sizes = [2, 1, 8], strides = [1, 1, 1]} : vector<2x8x8xf32> to vector<2x1x8xf32>
      %440 = vector.broadcast %438 : vector<2x1x1xf32> to vector<2x1x8xf32>
      %441 = arith.mulf %439, %440 : vector<2x1x8xf32>
      %442 = vector.shape_cast %441 : vector<2x1x8xf32> to vector<2x1x8xf32>
      %443 = vector.broadcast %442 : vector<2x1x8xf32> to vector<2x8x8xf32>
      %444 = vector.extract_strided_slice %435 {offsets = [0, 4, 0], sizes = [2, 1, 1], strides = [1, 1, 1]} : vector<2x8x1xf32> to vector<2x1x1xf32>
      %445 = arith.mulf %444, %438 : vector<2x1x1xf32>
      %446 = vector.shape_cast %445 : vector<2x1x1xf32> to vector<2x1x1xf32>
      %447 = vector.broadcast %446 : vector<2x1x1xf32> to vector<2x8x1xf32>
      %448 = vector.extract_strided_slice %430 {offsets = [0, 0, 4], sizes = [2, 8, 1], strides = [1, 1, 1]} : vector<2x8x8xf32> to vector<2x8x1xf32>
      %c4_i32_60 = arith.constant 4 : i32
      %449 = vector.broadcast %c4_i32_60 : i32 to vector<2x8x8xi32>
      %450 = arith.cmpi eq, %26, %449 : vector<2x8x8xi32>
      %451 = vector.broadcast %448 : vector<2x8x1xf32> to vector<2x8x8xf32>
      %452 = arith.mulf %451, %443 : vector<2x8x8xf32>
      %453 = arith.subf %430, %452 : vector<2x8x8xf32>
      %454 = arith.select %450, %443, %453 : vector<2x8x8xi1>, vector<2x8x8xf32>
      %c4_i32_61 = arith.constant 4 : i32
      %455 = vector.broadcast %c4_i32_61 : i32 to vector<2x8x1xi32>
      %456 = arith.cmpi eq, %29, %455 : vector<2x8x1xi32>
      %457 = arith.mulf %448, %447 : vector<2x8x1xf32>
      %458 = arith.subf %435, %457 : vector<2x8x1xf32>
      %459 = arith.select %456, %447, %458 : vector<2x8x1xi1>, vector<2x8x1xf32>
      %460 = vector.extract_strided_slice %454 {offsets = [0, 5, 5], sizes = [2, 1, 1], strides = [1, 1, 1]} : vector<2x8x8xf32> to vector<2x1x1xf32>
      %cst_62 = arith.constant 1.000000e+00 : f32
      %461 = vector.broadcast %cst_62 : f32 to vector<2x1x1xf32>
      %462 = arith.divf %461, %460 : vector<2x1x1xf32>
      %463 = vector.extract_strided_slice %454 {offsets = [0, 5, 0], sizes = [2, 1, 8], strides = [1, 1, 1]} : vector<2x8x8xf32> to vector<2x1x8xf32>
      %464 = vector.broadcast %462 : vector<2x1x1xf32> to vector<2x1x8xf32>
      %465 = arith.mulf %463, %464 : vector<2x1x8xf32>
      %466 = vector.shape_cast %465 : vector<2x1x8xf32> to vector<2x1x8xf32>
      %467 = vector.broadcast %466 : vector<2x1x8xf32> to vector<2x8x8xf32>
      %468 = vector.extract_strided_slice %459 {offsets = [0, 5, 0], sizes = [2, 1, 1], strides = [1, 1, 1]} : vector<2x8x1xf32> to vector<2x1x1xf32>
      %469 = arith.mulf %468, %462 : vector<2x1x1xf32>
      %470 = vector.shape_cast %469 : vector<2x1x1xf32> to vector<2x1x1xf32>
      %471 = vector.broadcast %470 : vector<2x1x1xf32> to vector<2x8x1xf32>
      %472 = vector.extract_strided_slice %454 {offsets = [0, 0, 5], sizes = [2, 8, 1], strides = [1, 1, 1]} : vector<2x8x8xf32> to vector<2x8x1xf32>
      %c5_i32_63 = arith.constant 5 : i32
      %473 = vector.broadcast %c5_i32_63 : i32 to vector<2x8x8xi32>
      %474 = arith.cmpi eq, %26, %473 : vector<2x8x8xi32>
      %475 = vector.broadcast %472 : vector<2x8x1xf32> to vector<2x8x8xf32>
      %476 = arith.mulf %475, %467 : vector<2x8x8xf32>
      %477 = arith.subf %454, %476 : vector<2x8x8xf32>
      %478 = arith.select %474, %467, %477 : vector<2x8x8xi1>, vector<2x8x8xf32>
      %c5_i32_64 = arith.constant 5 : i32
      %479 = vector.broadcast %c5_i32_64 : i32 to vector<2x8x1xi32>
      %480 = arith.cmpi eq, %29, %479 : vector<2x8x1xi32>
      %481 = arith.mulf %472, %471 : vector<2x8x1xf32>
      %482 = arith.subf %459, %481 : vector<2x8x1xf32>
      %483 = arith.select %480, %471, %482 : vector<2x8x1xi1>, vector<2x8x1xf32>
      %484 = vector.extract_strided_slice %478 {offsets = [0, 6, 6], sizes = [2, 1, 1], strides = [1, 1, 1]} : vector<2x8x8xf32> to vector<2x1x1xf32>
      %cst_65 = arith.constant 1.000000e+00 : f32
      %485 = vector.broadcast %cst_65 : f32 to vector<2x1x1xf32>
      %486 = arith.divf %485, %484 : vector<2x1x1xf32>
      %487 = vector.extract_strided_slice %478 {offsets = [0, 6, 0], sizes = [2, 1, 8], strides = [1, 1, 1]} : vector<2x8x8xf32> to vector<2x1x8xf32>
      %488 = vector.broadcast %486 : vector<2x1x1xf32> to vector<2x1x8xf32>
      %489 = arith.mulf %487, %488 : vector<2x1x8xf32>
      %490 = vector.shape_cast %489 : vector<2x1x8xf32> to vector<2x1x8xf32>
      %491 = vector.broadcast %490 : vector<2x1x8xf32> to vector<2x8x8xf32>
      %492 = vector.extract_strided_slice %483 {offsets = [0, 6, 0], sizes = [2, 1, 1], strides = [1, 1, 1]} : vector<2x8x1xf32> to vector<2x1x1xf32>
      %493 = arith.mulf %492, %486 : vector<2x1x1xf32>
      %494 = vector.shape_cast %493 : vector<2x1x1xf32> to vector<2x1x1xf32>
      %495 = vector.broadcast %494 : vector<2x1x1xf32> to vector<2x8x1xf32>
      %496 = vector.extract_strided_slice %478 {offsets = [0, 0, 6], sizes = [2, 8, 1], strides = [1, 1, 1]} : vector<2x8x8xf32> to vector<2x8x1xf32>
      %c6_i32_66 = arith.constant 6 : i32
      %497 = vector.broadcast %c6_i32_66 : i32 to vector<2x8x8xi32>
      %498 = arith.cmpi eq, %26, %497 : vector<2x8x8xi32>
      %499 = vector.broadcast %496 : vector<2x8x1xf32> to vector<2x8x8xf32>
      %500 = arith.mulf %499, %491 : vector<2x8x8xf32>
      %501 = arith.subf %478, %500 : vector<2x8x8xf32>
      %502 = arith.select %498, %491, %501 : vector<2x8x8xi1>, vector<2x8x8xf32>
      %c6_i32_67 = arith.constant 6 : i32
      %503 = vector.broadcast %c6_i32_67 : i32 to vector<2x8x1xi32>
      %504 = arith.cmpi eq, %29, %503 : vector<2x8x1xi32>
      %505 = arith.mulf %496, %495 : vector<2x8x1xf32>
      %506 = arith.subf %483, %505 : vector<2x8x1xf32>
      %507 = arith.select %504, %495, %506 : vector<2x8x1xi1>, vector<2x8x1xf32>
      %508 = vector.extract_strided_slice %502 {offsets = [0, 7, 7], sizes = [2, 1, 1], strides = [1, 1, 1]} : vector<2x8x8xf32> to vector<2x1x1xf32>
      %cst_68 = arith.constant 1.000000e+00 : f32
      %509 = vector.broadcast %cst_68 : f32 to vector<2x1x1xf32>
      %510 = arith.divf %509, %508 : vector<2x1x1xf32>
      %511 = vector.extract_strided_slice %502 {offsets = [0, 7, 0], sizes = [2, 1, 8], strides = [1, 1, 1]} : vector<2x8x8xf32> to vector<2x1x8xf32>
      %512 = vector.broadcast %510 : vector<2x1x1xf32> to vector<2x1x8xf32>
      %513 = arith.mulf %511, %512 : vector<2x1x8xf32>
      %514 = vector.shape_cast %513 : vector<2x1x8xf32> to vector<2x1x8xf32>
      %515 = vector.broadcast %514 : vector<2x1x8xf32> to vector<2x8x8xf32>
      %516 = vector.extract_strided_slice %507 {offsets = [0, 7, 0], sizes = [2, 1, 1], strides = [1, 1, 1]} : vector<2x8x1xf32> to vector<2x1x1xf32>
      %517 = arith.mulf %516, %510 : vector<2x1x1xf32>
      %518 = vector.shape_cast %517 : vector<2x1x1xf32> to vector<2x1x1xf32>
      %519 = vector.broadcast %518 : vector<2x1x1xf32> to vector<2x8x1xf32>
      %520 = vector.extract_strided_slice %502 {offsets = [0, 0, 7], sizes = [2, 8, 1], strides = [1, 1, 1]} : vector<2x8x8xf32> to vector<2x8x1xf32>
      %c7_i32_69 = arith.constant 7 : i32
      %521 = vector.broadcast %c7_i32_69 : i32 to vector<2x8x8xi32>
      %522 = arith.cmpi eq, %26, %521 : vector<2x8x8xi32>
      %523 = vector.broadcast %520 : vector<2x8x1xf32> to vector<2x8x8xf32>
      %524 = arith.mulf %523, %515 : vector<2x8x8xf32>
      %525 = arith.subf %502, %524 : vector<2x8x8xf32>
      %526 = arith.select %522, %515, %525 : vector<2x8x8xi1>, vector<2x8x8xf32>
      %c7_i32_70 = arith.constant 7 : i32
      %527 = vector.broadcast %c7_i32_70 : i32 to vector<2x8x1xi32>
      %528 = arith.cmpi eq, %29, %527 : vector<2x8x1xi32>
      %529 = arith.mulf %520, %519 : vector<2x8x1xf32>
      %530 = arith.subf %507, %529 : vector<2x8x1xf32>
      %531 = arith.select %528, %519, %530 : vector<2x8x1xi1>, vector<2x8x1xf32>
      %532 = math.absf %arg11 : vector<2x8x1xf32>
      %cst_71 = arith.constant dense<0xFF800000> : vector<2x1xf32>
      %533 = vector.multi_reduction <maximumf>, %532, %cst_71 [1] : vector<2x8x1xf32> to vector<2x1xf32>
      %534 = vector.shape_cast %533 : vector<2x1xf32> to vector<2x1x1xf32>
      %cst_72 = arith.constant 9.99999974E-6 : f32
      %535 = vector.broadcast %cst_72 : f32 to vector<2x1x1xf32>
      %536 = arith.cmpf ogt, %534, %535 : vector<2x1x1xf32>
      %537 = arith.subf %arg8, %531 : vector<2x8x1xf32>
      %538 = vector.shape_cast %536 : vector<2x1x1xi1> to vector<2x1x1xi1>
      %539 = vector.broadcast %538 : vector<2x1x1xi1> to vector<2x8x1xi1>
      %540 = arith.select %539, %537, %arg8 : vector<2x8x1xi1>, vector<2x8x1xf32>
      %541 = vector.broadcast %540 : vector<2x8x1xf32> to vector<2x8x8xf32>
      %542 = arith.mulf %32, %541 : vector<2x8x8xf32>
      %543 = arith.subf %542, %34 : vector<2x8x8xf32>
      %544 = vector.extract_strided_slice %543 {offsets = [0, 0, 0], sizes = [2, 1, 1], strides = [1, 1, 1]} : vector<2x8x8xf32> to vector<2x1x1xf32>
      %cst_73 = arith.constant 1.000000e+00 : f32
      %545 = vector.broadcast %cst_73 : f32 to vector<2x1x1xf32>
      %546 = arith.divf %545, %544 : vector<2x1x1xf32>
      %547 = vector.extract_strided_slice %543 {offsets = [0, 0, 0], sizes = [2, 1, 8], strides = [1, 1, 1]} : vector<2x8x8xf32> to vector<2x1x8xf32>
      %548 = vector.broadcast %546 : vector<2x1x1xf32> to vector<2x1x8xf32>
      %549 = arith.mulf %547, %548 : vector<2x1x8xf32>
      %550 = vector.shape_cast %549 : vector<2x1x8xf32> to vector<2x1x8xf32>
      %551 = vector.broadcast %550 : vector<2x1x8xf32> to vector<2x8x8xf32>
      %552 = vector.extract_strided_slice %32 {offsets = [0, 0, 0], sizes = [2, 1, 8], strides = [1, 1, 1]} : vector<2x8x8xf32> to vector<2x1x8xf32>
      %553 = vector.broadcast %546 : vector<2x1x1xf32> to vector<2x1x8xf32>
      %554 = arith.mulf %552, %553 : vector<2x1x8xf32>
      %555 = vector.shape_cast %554 : vector<2x1x8xf32> to vector<2x1x8xf32>
      %556 = vector.broadcast %555 : vector<2x1x8xf32> to vector<2x8x8xf32>
      %557 = vector.extract_strided_slice %25 {offsets = [0, 0, 0], sizes = [2, 1, 32], strides = [1, 1, 1]} : vector<2x8x32xf32> to vector<2x1x32xf32>
      %558 = vector.broadcast %546 : vector<2x1x1xf32> to vector<2x1x32xf32>
      %559 = arith.mulf %557, %558 : vector<2x1x32xf32>
      %560 = vector.shape_cast %559 : vector<2x1x32xf32> to vector<2x1x32xf32>
      %561 = vector.broadcast %560 : vector<2x1x32xf32> to vector<2x8x32xf32>
      %562 = vector.extract_strided_slice %543 {offsets = [0, 0, 0], sizes = [2, 8, 1], strides = [1, 1, 1]} : vector<2x8x8xf32> to vector<2x8x1xf32>
      %c0_i32_74 = arith.constant 0 : i32
      %563 = vector.broadcast %c0_i32_74 : i32 to vector<2x8x8xi32>
      %564 = arith.cmpi eq, %26, %563 : vector<2x8x8xi32>
      %c0_i32_75 = arith.constant 0 : i32
      %565 = vector.broadcast %c0_i32_75 : i32 to vector<2x8x32xi32>
      %566 = arith.cmpi eq, %28, %565 : vector<2x8x32xi32>
      %567 = vector.broadcast %562 : vector<2x8x1xf32> to vector<2x8x8xf32>
      %568 = arith.mulf %567, %551 : vector<2x8x8xf32>
      %569 = arith.subf %543, %568 : vector<2x8x8xf32>
      %570 = arith.select %564, %551, %569 : vector<2x8x8xi1>, vector<2x8x8xf32>
      %571 = vector.broadcast %562 : vector<2x8x1xf32> to vector<2x8x8xf32>
      %572 = arith.mulf %571, %556 : vector<2x8x8xf32>
      %573 = arith.subf %32, %572 : vector<2x8x8xf32>
      %574 = arith.select %564, %556, %573 : vector<2x8x8xi1>, vector<2x8x8xf32>
      %575 = vector.broadcast %562 : vector<2x8x1xf32> to vector<2x8x32xf32>
      %576 = arith.mulf %575, %561 : vector<2x8x32xf32>
      %577 = arith.subf %25, %576 : vector<2x8x32xf32>
      %578 = arith.select %566, %561, %577 : vector<2x8x32xi1>, vector<2x8x32xf32>
      %579 = vector.extract_strided_slice %570 {offsets = [0, 1, 1], sizes = [2, 1, 1], strides = [1, 1, 1]} : vector<2x8x8xf32> to vector<2x1x1xf32>
      %cst_76 = arith.constant 1.000000e+00 : f32
      %580 = vector.broadcast %cst_76 : f32 to vector<2x1x1xf32>
      %581 = arith.divf %580, %579 : vector<2x1x1xf32>
      %582 = vector.extract_strided_slice %570 {offsets = [0, 1, 0], sizes = [2, 1, 8], strides = [1, 1, 1]} : vector<2x8x8xf32> to vector<2x1x8xf32>
      %583 = vector.broadcast %581 : vector<2x1x1xf32> to vector<2x1x8xf32>
      %584 = arith.mulf %582, %583 : vector<2x1x8xf32>
      %585 = vector.shape_cast %584 : vector<2x1x8xf32> to vector<2x1x8xf32>
      %586 = vector.broadcast %585 : vector<2x1x8xf32> to vector<2x8x8xf32>
      %587 = vector.extract_strided_slice %574 {offsets = [0, 1, 0], sizes = [2, 1, 8], strides = [1, 1, 1]} : vector<2x8x8xf32> to vector<2x1x8xf32>
      %588 = vector.broadcast %581 : vector<2x1x1xf32> to vector<2x1x8xf32>
      %589 = arith.mulf %587, %588 : vector<2x1x8xf32>
      %590 = vector.shape_cast %589 : vector<2x1x8xf32> to vector<2x1x8xf32>
      %591 = vector.broadcast %590 : vector<2x1x8xf32> to vector<2x8x8xf32>
      %592 = vector.extract_strided_slice %578 {offsets = [0, 1, 0], sizes = [2, 1, 32], strides = [1, 1, 1]} : vector<2x8x32xf32> to vector<2x1x32xf32>
      %593 = vector.broadcast %581 : vector<2x1x1xf32> to vector<2x1x32xf32>
      %594 = arith.mulf %592, %593 : vector<2x1x32xf32>
      %595 = vector.shape_cast %594 : vector<2x1x32xf32> to vector<2x1x32xf32>
      %596 = vector.broadcast %595 : vector<2x1x32xf32> to vector<2x8x32xf32>
      %597 = vector.extract_strided_slice %570 {offsets = [0, 0, 1], sizes = [2, 8, 1], strides = [1, 1, 1]} : vector<2x8x8xf32> to vector<2x8x1xf32>
      %c1_i32_77 = arith.constant 1 : i32
      %598 = vector.broadcast %c1_i32_77 : i32 to vector<2x8x8xi32>
      %599 = arith.cmpi eq, %26, %598 : vector<2x8x8xi32>
      %c1_i32_78 = arith.constant 1 : i32
      %600 = vector.broadcast %c1_i32_78 : i32 to vector<2x8x32xi32>
      %601 = arith.cmpi eq, %28, %600 : vector<2x8x32xi32>
      %602 = vector.broadcast %597 : vector<2x8x1xf32> to vector<2x8x8xf32>
      %603 = arith.mulf %602, %586 : vector<2x8x8xf32>
      %604 = arith.subf %570, %603 : vector<2x8x8xf32>
      %605 = arith.select %599, %586, %604 : vector<2x8x8xi1>, vector<2x8x8xf32>
      %606 = vector.broadcast %597 : vector<2x8x1xf32> to vector<2x8x8xf32>
      %607 = arith.mulf %606, %591 : vector<2x8x8xf32>
      %608 = arith.subf %574, %607 : vector<2x8x8xf32>
      %609 = arith.select %599, %591, %608 : vector<2x8x8xi1>, vector<2x8x8xf32>
      %610 = vector.broadcast %597 : vector<2x8x1xf32> to vector<2x8x32xf32>
      %611 = arith.mulf %610, %596 : vector<2x8x32xf32>
      %612 = arith.subf %578, %611 : vector<2x8x32xf32>
      %613 = arith.select %601, %596, %612 : vector<2x8x32xi1>, vector<2x8x32xf32>
      %614 = vector.extract_strided_slice %605 {offsets = [0, 2, 2], sizes = [2, 1, 1], strides = [1, 1, 1]} : vector<2x8x8xf32> to vector<2x1x1xf32>
      %cst_79 = arith.constant 1.000000e+00 : f32
      %615 = vector.broadcast %cst_79 : f32 to vector<2x1x1xf32>
      %616 = arith.divf %615, %614 : vector<2x1x1xf32>
      %617 = vector.extract_strided_slice %605 {offsets = [0, 2, 0], sizes = [2, 1, 8], strides = [1, 1, 1]} : vector<2x8x8xf32> to vector<2x1x8xf32>
      %618 = vector.broadcast %616 : vector<2x1x1xf32> to vector<2x1x8xf32>
      %619 = arith.mulf %617, %618 : vector<2x1x8xf32>
      %620 = vector.shape_cast %619 : vector<2x1x8xf32> to vector<2x1x8xf32>
      %621 = vector.broadcast %620 : vector<2x1x8xf32> to vector<2x8x8xf32>
      %622 = vector.extract_strided_slice %609 {offsets = [0, 2, 0], sizes = [2, 1, 8], strides = [1, 1, 1]} : vector<2x8x8xf32> to vector<2x1x8xf32>
      %623 = vector.broadcast %616 : vector<2x1x1xf32> to vector<2x1x8xf32>
      %624 = arith.mulf %622, %623 : vector<2x1x8xf32>
      %625 = vector.shape_cast %624 : vector<2x1x8xf32> to vector<2x1x8xf32>
      %626 = vector.broadcast %625 : vector<2x1x8xf32> to vector<2x8x8xf32>
      %627 = vector.extract_strided_slice %613 {offsets = [0, 2, 0], sizes = [2, 1, 32], strides = [1, 1, 1]} : vector<2x8x32xf32> to vector<2x1x32xf32>
      %628 = vector.broadcast %616 : vector<2x1x1xf32> to vector<2x1x32xf32>
      %629 = arith.mulf %627, %628 : vector<2x1x32xf32>
      %630 = vector.shape_cast %629 : vector<2x1x32xf32> to vector<2x1x32xf32>
      %631 = vector.broadcast %630 : vector<2x1x32xf32> to vector<2x8x32xf32>
      %632 = vector.extract_strided_slice %605 {offsets = [0, 0, 2], sizes = [2, 8, 1], strides = [1, 1, 1]} : vector<2x8x8xf32> to vector<2x8x1xf32>
      %c2_i32_80 = arith.constant 2 : i32
      %633 = vector.broadcast %c2_i32_80 : i32 to vector<2x8x8xi32>
      %634 = arith.cmpi eq, %26, %633 : vector<2x8x8xi32>
      %c2_i32_81 = arith.constant 2 : i32
      %635 = vector.broadcast %c2_i32_81 : i32 to vector<2x8x32xi32>
      %636 = arith.cmpi eq, %28, %635 : vector<2x8x32xi32>
      %637 = vector.broadcast %632 : vector<2x8x1xf32> to vector<2x8x8xf32>
      %638 = arith.mulf %637, %621 : vector<2x8x8xf32>
      %639 = arith.subf %605, %638 : vector<2x8x8xf32>
      %640 = arith.select %634, %621, %639 : vector<2x8x8xi1>, vector<2x8x8xf32>
      %641 = vector.broadcast %632 : vector<2x8x1xf32> to vector<2x8x8xf32>
      %642 = arith.mulf %641, %626 : vector<2x8x8xf32>
      %643 = arith.subf %609, %642 : vector<2x8x8xf32>
      %644 = arith.select %634, %626, %643 : vector<2x8x8xi1>, vector<2x8x8xf32>
      %645 = vector.broadcast %632 : vector<2x8x1xf32> to vector<2x8x32xf32>
      %646 = arith.mulf %645, %631 : vector<2x8x32xf32>
      %647 = arith.subf %613, %646 : vector<2x8x32xf32>
      %648 = arith.select %636, %631, %647 : vector<2x8x32xi1>, vector<2x8x32xf32>
      %649 = vector.extract_strided_slice %640 {offsets = [0, 3, 3], sizes = [2, 1, 1], strides = [1, 1, 1]} : vector<2x8x8xf32> to vector<2x1x1xf32>
      %cst_82 = arith.constant 1.000000e+00 : f32
      %650 = vector.broadcast %cst_82 : f32 to vector<2x1x1xf32>
      %651 = arith.divf %650, %649 : vector<2x1x1xf32>
      %652 = vector.extract_strided_slice %640 {offsets = [0, 3, 0], sizes = [2, 1, 8], strides = [1, 1, 1]} : vector<2x8x8xf32> to vector<2x1x8xf32>
      %653 = vector.broadcast %651 : vector<2x1x1xf32> to vector<2x1x8xf32>
      %654 = arith.mulf %652, %653 : vector<2x1x8xf32>
      %655 = vector.shape_cast %654 : vector<2x1x8xf32> to vector<2x1x8xf32>
      %656 = vector.broadcast %655 : vector<2x1x8xf32> to vector<2x8x8xf32>
      %657 = vector.extract_strided_slice %644 {offsets = [0, 3, 0], sizes = [2, 1, 8], strides = [1, 1, 1]} : vector<2x8x8xf32> to vector<2x1x8xf32>
      %658 = vector.broadcast %651 : vector<2x1x1xf32> to vector<2x1x8xf32>
      %659 = arith.mulf %657, %658 : vector<2x1x8xf32>
      %660 = vector.shape_cast %659 : vector<2x1x8xf32> to vector<2x1x8xf32>
      %661 = vector.broadcast %660 : vector<2x1x8xf32> to vector<2x8x8xf32>
      %662 = vector.extract_strided_slice %648 {offsets = [0, 3, 0], sizes = [2, 1, 32], strides = [1, 1, 1]} : vector<2x8x32xf32> to vector<2x1x32xf32>
      %663 = vector.broadcast %651 : vector<2x1x1xf32> to vector<2x1x32xf32>
      %664 = arith.mulf %662, %663 : vector<2x1x32xf32>
      %665 = vector.shape_cast %664 : vector<2x1x32xf32> to vector<2x1x32xf32>
      %666 = vector.broadcast %665 : vector<2x1x32xf32> to vector<2x8x32xf32>
      %667 = vector.extract_strided_slice %640 {offsets = [0, 0, 3], sizes = [2, 8, 1], strides = [1, 1, 1]} : vector<2x8x8xf32> to vector<2x8x1xf32>
      %c3_i32_83 = arith.constant 3 : i32
      %668 = vector.broadcast %c3_i32_83 : i32 to vector<2x8x8xi32>
      %669 = arith.cmpi eq, %26, %668 : vector<2x8x8xi32>
      %c3_i32_84 = arith.constant 3 : i32
      %670 = vector.broadcast %c3_i32_84 : i32 to vector<2x8x32xi32>
      %671 = arith.cmpi eq, %28, %670 : vector<2x8x32xi32>
      %672 = vector.broadcast %667 : vector<2x8x1xf32> to vector<2x8x8xf32>
      %673 = arith.mulf %672, %656 : vector<2x8x8xf32>
      %674 = arith.subf %640, %673 : vector<2x8x8xf32>
      %675 = arith.select %669, %656, %674 : vector<2x8x8xi1>, vector<2x8x8xf32>
      %676 = vector.broadcast %667 : vector<2x8x1xf32> to vector<2x8x8xf32>
      %677 = arith.mulf %676, %661 : vector<2x8x8xf32>
      %678 = arith.subf %644, %677 : vector<2x8x8xf32>
      %679 = arith.select %669, %661, %678 : vector<2x8x8xi1>, vector<2x8x8xf32>
      %680 = vector.broadcast %667 : vector<2x8x1xf32> to vector<2x8x32xf32>
      %681 = arith.mulf %680, %666 : vector<2x8x32xf32>
      %682 = arith.subf %648, %681 : vector<2x8x32xf32>
      %683 = arith.select %671, %666, %682 : vector<2x8x32xi1>, vector<2x8x32xf32>
      %684 = vector.extract_strided_slice %675 {offsets = [0, 4, 4], sizes = [2, 1, 1], strides = [1, 1, 1]} : vector<2x8x8xf32> to vector<2x1x1xf32>
      %cst_85 = arith.constant 1.000000e+00 : f32
      %685 = vector.broadcast %cst_85 : f32 to vector<2x1x1xf32>
      %686 = arith.divf %685, %684 : vector<2x1x1xf32>
      %687 = vector.extract_strided_slice %675 {offsets = [0, 4, 0], sizes = [2, 1, 8], strides = [1, 1, 1]} : vector<2x8x8xf32> to vector<2x1x8xf32>
      %688 = vector.broadcast %686 : vector<2x1x1xf32> to vector<2x1x8xf32>
      %689 = arith.mulf %687, %688 : vector<2x1x8xf32>
      %690 = vector.shape_cast %689 : vector<2x1x8xf32> to vector<2x1x8xf32>
      %691 = vector.broadcast %690 : vector<2x1x8xf32> to vector<2x8x8xf32>
      %692 = vector.extract_strided_slice %679 {offsets = [0, 4, 0], sizes = [2, 1, 8], strides = [1, 1, 1]} : vector<2x8x8xf32> to vector<2x1x8xf32>
      %693 = vector.broadcast %686 : vector<2x1x1xf32> to vector<2x1x8xf32>
      %694 = arith.mulf %692, %693 : vector<2x1x8xf32>
      %695 = vector.shape_cast %694 : vector<2x1x8xf32> to vector<2x1x8xf32>
      %696 = vector.broadcast %695 : vector<2x1x8xf32> to vector<2x8x8xf32>
      %697 = vector.extract_strided_slice %683 {offsets = [0, 4, 0], sizes = [2, 1, 32], strides = [1, 1, 1]} : vector<2x8x32xf32> to vector<2x1x32xf32>
      %698 = vector.broadcast %686 : vector<2x1x1xf32> to vector<2x1x32xf32>
      %699 = arith.mulf %697, %698 : vector<2x1x32xf32>
      %700 = vector.shape_cast %699 : vector<2x1x32xf32> to vector<2x1x32xf32>
      %701 = vector.broadcast %700 : vector<2x1x32xf32> to vector<2x8x32xf32>
      %702 = vector.extract_strided_slice %675 {offsets = [0, 0, 4], sizes = [2, 8, 1], strides = [1, 1, 1]} : vector<2x8x8xf32> to vector<2x8x1xf32>
      %c4_i32_86 = arith.constant 4 : i32
      %703 = vector.broadcast %c4_i32_86 : i32 to vector<2x8x8xi32>
      %704 = arith.cmpi eq, %26, %703 : vector<2x8x8xi32>
      %c4_i32_87 = arith.constant 4 : i32
      %705 = vector.broadcast %c4_i32_87 : i32 to vector<2x8x32xi32>
      %706 = arith.cmpi eq, %28, %705 : vector<2x8x32xi32>
      %707 = vector.broadcast %702 : vector<2x8x1xf32> to vector<2x8x8xf32>
      %708 = arith.mulf %707, %691 : vector<2x8x8xf32>
      %709 = arith.subf %675, %708 : vector<2x8x8xf32>
      %710 = arith.select %704, %691, %709 : vector<2x8x8xi1>, vector<2x8x8xf32>
      %711 = vector.broadcast %702 : vector<2x8x1xf32> to vector<2x8x8xf32>
      %712 = arith.mulf %711, %696 : vector<2x8x8xf32>
      %713 = arith.subf %679, %712 : vector<2x8x8xf32>
      %714 = arith.select %704, %696, %713 : vector<2x8x8xi1>, vector<2x8x8xf32>
      %715 = vector.broadcast %702 : vector<2x8x1xf32> to vector<2x8x32xf32>
      %716 = arith.mulf %715, %701 : vector<2x8x32xf32>
      %717 = arith.subf %683, %716 : vector<2x8x32xf32>
      %718 = arith.select %706, %701, %717 : vector<2x8x32xi1>, vector<2x8x32xf32>
      %719 = vector.extract_strided_slice %710 {offsets = [0, 5, 5], sizes = [2, 1, 1], strides = [1, 1, 1]} : vector<2x8x8xf32> to vector<2x1x1xf32>
      %cst_88 = arith.constant 1.000000e+00 : f32
      %720 = vector.broadcast %cst_88 : f32 to vector<2x1x1xf32>
      %721 = arith.divf %720, %719 : vector<2x1x1xf32>
      %722 = vector.extract_strided_slice %710 {offsets = [0, 5, 0], sizes = [2, 1, 8], strides = [1, 1, 1]} : vector<2x8x8xf32> to vector<2x1x8xf32>
      %723 = vector.broadcast %721 : vector<2x1x1xf32> to vector<2x1x8xf32>
      %724 = arith.mulf %722, %723 : vector<2x1x8xf32>
      %725 = vector.shape_cast %724 : vector<2x1x8xf32> to vector<2x1x8xf32>
      %726 = vector.broadcast %725 : vector<2x1x8xf32> to vector<2x8x8xf32>
      %727 = vector.extract_strided_slice %714 {offsets = [0, 5, 0], sizes = [2, 1, 8], strides = [1, 1, 1]} : vector<2x8x8xf32> to vector<2x1x8xf32>
      %728 = vector.broadcast %721 : vector<2x1x1xf32> to vector<2x1x8xf32>
      %729 = arith.mulf %727, %728 : vector<2x1x8xf32>
      %730 = vector.shape_cast %729 : vector<2x1x8xf32> to vector<2x1x8xf32>
      %731 = vector.broadcast %730 : vector<2x1x8xf32> to vector<2x8x8xf32>
      %732 = vector.extract_strided_slice %718 {offsets = [0, 5, 0], sizes = [2, 1, 32], strides = [1, 1, 1]} : vector<2x8x32xf32> to vector<2x1x32xf32>
      %733 = vector.broadcast %721 : vector<2x1x1xf32> to vector<2x1x32xf32>
      %734 = arith.mulf %732, %733 : vector<2x1x32xf32>
      %735 = vector.shape_cast %734 : vector<2x1x32xf32> to vector<2x1x32xf32>
      %736 = vector.broadcast %735 : vector<2x1x32xf32> to vector<2x8x32xf32>
      %737 = vector.extract_strided_slice %710 {offsets = [0, 0, 5], sizes = [2, 8, 1], strides = [1, 1, 1]} : vector<2x8x8xf32> to vector<2x8x1xf32>
      %c5_i32_89 = arith.constant 5 : i32
      %738 = vector.broadcast %c5_i32_89 : i32 to vector<2x8x8xi32>
      %739 = arith.cmpi eq, %26, %738 : vector<2x8x8xi32>
      %c5_i32_90 = arith.constant 5 : i32
      %740 = vector.broadcast %c5_i32_90 : i32 to vector<2x8x32xi32>
      %741 = arith.cmpi eq, %28, %740 : vector<2x8x32xi32>
      %742 = vector.broadcast %737 : vector<2x8x1xf32> to vector<2x8x8xf32>
      %743 = arith.mulf %742, %726 : vector<2x8x8xf32>
      %744 = arith.subf %710, %743 : vector<2x8x8xf32>
      %745 = arith.select %739, %726, %744 : vector<2x8x8xi1>, vector<2x8x8xf32>
      %746 = vector.broadcast %737 : vector<2x8x1xf32> to vector<2x8x8xf32>
      %747 = arith.mulf %746, %731 : vector<2x8x8xf32>
      %748 = arith.subf %714, %747 : vector<2x8x8xf32>
      %749 = arith.select %739, %731, %748 : vector<2x8x8xi1>, vector<2x8x8xf32>
      %750 = vector.broadcast %737 : vector<2x8x1xf32> to vector<2x8x32xf32>
      %751 = arith.mulf %750, %736 : vector<2x8x32xf32>
      %752 = arith.subf %718, %751 : vector<2x8x32xf32>
      %753 = arith.select %741, %736, %752 : vector<2x8x32xi1>, vector<2x8x32xf32>
      %754 = vector.extract_strided_slice %745 {offsets = [0, 6, 6], sizes = [2, 1, 1], strides = [1, 1, 1]} : vector<2x8x8xf32> to vector<2x1x1xf32>
      %cst_91 = arith.constant 1.000000e+00 : f32
      %755 = vector.broadcast %cst_91 : f32 to vector<2x1x1xf32>
      %756 = arith.divf %755, %754 : vector<2x1x1xf32>
      %757 = vector.extract_strided_slice %745 {offsets = [0, 6, 0], sizes = [2, 1, 8], strides = [1, 1, 1]} : vector<2x8x8xf32> to vector<2x1x8xf32>
      %758 = vector.broadcast %756 : vector<2x1x1xf32> to vector<2x1x8xf32>
      %759 = arith.mulf %757, %758 : vector<2x1x8xf32>
      %760 = vector.shape_cast %759 : vector<2x1x8xf32> to vector<2x1x8xf32>
      %761 = vector.broadcast %760 : vector<2x1x8xf32> to vector<2x8x8xf32>
      %762 = vector.extract_strided_slice %749 {offsets = [0, 6, 0], sizes = [2, 1, 8], strides = [1, 1, 1]} : vector<2x8x8xf32> to vector<2x1x8xf32>
      %763 = vector.broadcast %756 : vector<2x1x1xf32> to vector<2x1x8xf32>
      %764 = arith.mulf %762, %763 : vector<2x1x8xf32>
      %765 = vector.shape_cast %764 : vector<2x1x8xf32> to vector<2x1x8xf32>
      %766 = vector.broadcast %765 : vector<2x1x8xf32> to vector<2x8x8xf32>
      %767 = vector.extract_strided_slice %753 {offsets = [0, 6, 0], sizes = [2, 1, 32], strides = [1, 1, 1]} : vector<2x8x32xf32> to vector<2x1x32xf32>
      %768 = vector.broadcast %756 : vector<2x1x1xf32> to vector<2x1x32xf32>
      %769 = arith.mulf %767, %768 : vector<2x1x32xf32>
      %770 = vector.shape_cast %769 : vector<2x1x32xf32> to vector<2x1x32xf32>
      %771 = vector.broadcast %770 : vector<2x1x32xf32> to vector<2x8x32xf32>
      %772 = vector.extract_strided_slice %745 {offsets = [0, 0, 6], sizes = [2, 8, 1], strides = [1, 1, 1]} : vector<2x8x8xf32> to vector<2x8x1xf32>
      %c6_i32_92 = arith.constant 6 : i32
      %773 = vector.broadcast %c6_i32_92 : i32 to vector<2x8x8xi32>
      %774 = arith.cmpi eq, %26, %773 : vector<2x8x8xi32>
      %c6_i32_93 = arith.constant 6 : i32
      %775 = vector.broadcast %c6_i32_93 : i32 to vector<2x8x32xi32>
      %776 = arith.cmpi eq, %28, %775 : vector<2x8x32xi32>
      %777 = vector.broadcast %772 : vector<2x8x1xf32> to vector<2x8x8xf32>
      %778 = arith.mulf %777, %761 : vector<2x8x8xf32>
      %779 = arith.subf %745, %778 : vector<2x8x8xf32>
      %780 = arith.select %774, %761, %779 : vector<2x8x8xi1>, vector<2x8x8xf32>
      %781 = vector.broadcast %772 : vector<2x8x1xf32> to vector<2x8x8xf32>
      %782 = arith.mulf %781, %766 : vector<2x8x8xf32>
      %783 = arith.subf %749, %782 : vector<2x8x8xf32>
      %784 = arith.select %774, %766, %783 : vector<2x8x8xi1>, vector<2x8x8xf32>
      %785 = vector.broadcast %772 : vector<2x8x1xf32> to vector<2x8x32xf32>
      %786 = arith.mulf %785, %771 : vector<2x8x32xf32>
      %787 = arith.subf %753, %786 : vector<2x8x32xf32>
      %788 = arith.select %776, %771, %787 : vector<2x8x32xi1>, vector<2x8x32xf32>
      %789 = vector.extract_strided_slice %780 {offsets = [0, 7, 7], sizes = [2, 1, 1], strides = [1, 1, 1]} : vector<2x8x8xf32> to vector<2x1x1xf32>
      %cst_94 = arith.constant 1.000000e+00 : f32
      %790 = vector.broadcast %cst_94 : f32 to vector<2x1x1xf32>
      %791 = arith.divf %790, %789 : vector<2x1x1xf32>
      %792 = vector.extract_strided_slice %780 {offsets = [0, 7, 0], sizes = [2, 1, 8], strides = [1, 1, 1]} : vector<2x8x8xf32> to vector<2x1x8xf32>
      %793 = vector.broadcast %791 : vector<2x1x1xf32> to vector<2x1x8xf32>
      %794 = arith.mulf %792, %793 : vector<2x1x8xf32>
      %795 = vector.shape_cast %794 : vector<2x1x8xf32> to vector<2x1x8xf32>
      %796 = vector.broadcast %795 : vector<2x1x8xf32> to vector<2x8x8xf32>
      %797 = vector.extract_strided_slice %784 {offsets = [0, 7, 0], sizes = [2, 1, 8], strides = [1, 1, 1]} : vector<2x8x8xf32> to vector<2x1x8xf32>
      %798 = vector.broadcast %791 : vector<2x1x1xf32> to vector<2x1x8xf32>
      %799 = arith.mulf %797, %798 : vector<2x1x8xf32>
      %800 = vector.shape_cast %799 : vector<2x1x8xf32> to vector<2x1x8xf32>
      %801 = vector.broadcast %800 : vector<2x1x8xf32> to vector<2x8x8xf32>
      %802 = vector.extract_strided_slice %788 {offsets = [0, 7, 0], sizes = [2, 1, 32], strides = [1, 1, 1]} : vector<2x8x32xf32> to vector<2x1x32xf32>
      %803 = vector.broadcast %791 : vector<2x1x1xf32> to vector<2x1x32xf32>
      %804 = arith.mulf %802, %803 : vector<2x1x32xf32>
      %805 = vector.shape_cast %804 : vector<2x1x32xf32> to vector<2x1x32xf32>
      %806 = vector.broadcast %805 : vector<2x1x32xf32> to vector<2x8x32xf32>
      %807 = vector.extract_strided_slice %780 {offsets = [0, 0, 7], sizes = [2, 8, 1], strides = [1, 1, 1]} : vector<2x8x8xf32> to vector<2x8x1xf32>
      %c7_i32_95 = arith.constant 7 : i32
      %808 = vector.broadcast %c7_i32_95 : i32 to vector<2x8x8xi32>
      %809 = arith.cmpi eq, %26, %808 : vector<2x8x8xi32>
      %c7_i32_96 = arith.constant 7 : i32
      %810 = vector.broadcast %c7_i32_96 : i32 to vector<2x8x32xi32>
      %811 = arith.cmpi eq, %28, %810 : vector<2x8x32xi32>
      %812 = vector.broadcast %807 : vector<2x8x1xf32> to vector<2x8x8xf32>
      %813 = arith.mulf %812, %796 : vector<2x8x8xf32>
      %814 = arith.subf %780, %813 : vector<2x8x8xf32>
      %815 = arith.select %809, %796, %814 : vector<2x8x8xi1>, vector<2x8x8xf32>
      %816 = vector.broadcast %807 : vector<2x8x1xf32> to vector<2x8x8xf32>
      %817 = arith.mulf %816, %801 : vector<2x8x8xf32>
      %818 = arith.subf %784, %817 : vector<2x8x8xf32>
      %819 = arith.select %809, %801, %818 : vector<2x8x8xi1>, vector<2x8x8xf32>
      %820 = vector.broadcast %807 : vector<2x8x1xf32> to vector<2x8x32xf32>
      %821 = arith.mulf %820, %806 : vector<2x8x32xf32>
      %822 = arith.subf %788, %821 : vector<2x8x32xf32>
      %823 = arith.select %811, %806, %822 : vector<2x8x32xi1>, vector<2x8x32xf32>
      %824 = arith.mulf %819, %32 : vector<2x8x8xf32>
      %cst_97 = arith.constant dense<0.000000e+00> : vector<2x8xf32>
      %825 = vector.multi_reduction <add>, %824, %cst_97 [2] : vector<2x8x8xf32> to vector<2x8xf32>
      %826 = vector.shape_cast %825 : vector<2x8xf32> to vector<2x8x1xf32>
      %827 = arith.mulf %823, %823 : vector<2x8x32xf32>
      %cst_98 = arith.constant dense<0.000000e+00> : vector<2x8xf32>
      %828 = vector.multi_reduction <add>, %827, %cst_98 [2] : vector<2x8x32xf32> to vector<2x8xf32>
      %829 = vector.shape_cast %828 : vector<2x8xf32> to vector<2x8x1xf32>
      %cst_99 = arith.constant 5.000000e-01 : f32
      %830 = vector.broadcast %cst_99 : f32 to vector<2x8x1xf32>
      %831 = arith.mulf %830, %826 : vector<2x8x1xf32>
      %cst_100 = arith.constant 1.000000e+00 : f32
      %832 = vector.broadcast %cst_100 : f32 to vector<2x8x1xf32>
      %833 = arith.subf %832, %831 : vector<2x8x1xf32>
      %cst_101 = arith.constant 2.500000e-01 : f32
      %834 = vector.broadcast %cst_101 : f32 to vector<2x8x1xf32>
      %835 = arith.mulf %834, %829 : vector<2x8x1xf32>
      %836 = arith.subf %833, %835 : vector<2x8x1xf32>
      %837 = math.absf %836 : vector<2x8x1xf32>
      %838 = vector.shape_cast %837 : vector<2x8x1xf32> to vector<1x2x8x1xf32>
      %cst_102 = arith.constant dense<0xFF800000> : vector<1xf32>
      %839 = vector.multi_reduction <maximumf>, %838, %cst_102 [1, 2, 3] : vector<1x2x8x1xf32> to vector<1xf32>
      %840 = vector.shape_cast %839 : vector<1xf32> to vector<1x1x1x1xf32>
      %841 = vector.extract %840[0, 0, 0, 0] : f32 from vector<1x1x1x1xf32>
      %c1_i32_103 = arith.constant 1 : i32
      %842 = arith.addi %arg6, %c1_i32_103 : i32
      scf.yield %842, %841, %540, %819, %823, %836 : i32, f32, vector<2x8x1xf32>, vector<2x8x8xf32>, vector<2x8x32xf32>, vector<2x8x1xf32>
    }
    %cst_40 = arith.constant 5.000000e-01 : f32
    %329 = vector.broadcast %cst_40 : f32 to vector<2x8x32xf32>
    %330 = arith.mulf %329, %328#4 : vector<2x8x32xf32>
    %c0_41 = arith.constant 0 : index
    %c0_42 = arith.constant 0 : index
    %c0_43 = arith.constant 0 : index
    %331 = vector.load %arg5[%c0_41, %c0_42, %c0_43] : memref<2x8x32xf32, #tpu.memory_space<vmem>>, vector<2x8x32xf32>
    tpu.vector_store %arg5[%c0_41, %c0_42, %c0_43], %330 {strides = array<i32>} : memref<2x8x32xf32, #tpu.memory_space<vmem>>, vector<2x8x32xf32>,
    return
  }
  func.func @transform_0(%arg0: i32) -> (i32, i32, i32) {
    %c0_i32 = arith.constant 0 : i32
    %c0_i32_0 = arith.constant 0 : i32
    %c0_i32_1 = arith.constant 0 : i32
    return %arg0, %c0_i32, %c0_i32_0 : i32, i32, i32
  }
  func.func @transform_1(%arg0: i32) -> (i32, i32, i32) {
    %c0_i32 = arith.constant 0 : i32
    %c0_i32_0 = arith.constant 0 : i32
    %c0_i32_1 = arith.constant 0 : i32
    %c0_i32_2 = arith.constant 0 : i32
    return %c0_i32, %c0_i32_0, %c0_i32_1 : i32, i32, i32
  }
  func.func @transform_2(%arg0: i32) -> (i32, i32, i32) {
    %c0_i32 = arith.constant 0 : i32
    %c0_i32_0 = arith.constant 0 : i32
    %c0_i32_1 = arith.constant 0 : i32
    %c0_i32_2 = arith.constant 0 : i32
    return %c0_i32, %c0_i32_0, %c0_i32_1 : i32, i32, i32
  }
  func.func @transform_3(%arg0: i32) -> (i32, i32, i32) {
    %c0_i32 = arith.constant 0 : i32
    %c0_i32_0 = arith.constant 0 : i32
    %c0_i32_1 = arith.constant 0 : i32
    %c0_i32_2 = arith.constant 0 : i32
    return %c0_i32, %c0_i32_0, %c0_i32_1 : i32, i32, i32
  }
  func.func @transform_4(%arg0: i32) -> (i32, i32, i32) {
    %c0_i32 = arith.constant 0 : i32
    %c0_i32_0 = arith.constant 0 : i32
    %c0_i32_1 = arith.constant 0 : i32
    return %arg0, %c0_i32, %c0_i32_0 : i32, i32, i32
  }
}

</mosaic_0001>

<bundles_post_ra>
// kernel: tpu_custom_call.1
= control target key start
LH: loop header
LB: loop body
LE: loop exit
PB: predicated region body
PF: predicated region fallthrough
CT: control target
= control target key end

     0   :  { %9 = vsyncpa [#allocation3], 0  ;;  %s3581_s0 = inlined_call_operand.hbm [shape: f32[4,8,32], index: 0, kind: input, shape index: {}]   ;;  %s3582_s1 = inlined_call_operand.vmem [shape: f32[1,1,32], index: 1, kind: input, shape index: {}]   ;;  %s3583_s2 = inlined_call_operand.vmem [shape: f32[1,1,32], index: 2, kind: input, shape index: {}]   ;;  %s3584_s3 = inlined_call_operand.vmem [shape: f32[1,8,8], index: 3, kind: input, shape index: {}]   ;;  %s3585_s4 = inlined_call_operand.hbm [shape: f32[4,8,32], index: 4, kind: output, shape index: {}]  }
   0x1   :  { %11 = vsyncpa [#allocation3 + $0x1], 0 }
   0x2   :  { %12 = vsyncpa [#allocation4], 0 }
   0x3   :  { %14 = vsyncpa [#allocation4 + $0x1], 0  ;;  %s2743_s15 = smov 0   ;;  %s2745_s16 = smov 0  }
   0x4   :  { %s2747_s17 = smov 0   ;;  %s2749_s18 = smov 0  }
   0x5 LB: > { %s2764_s19 = sadd.s32 4294967295, %s2633_s18   ;;  %s2153_s20 = sadd.s32 4294967294, %s2633_s18   ;;  %s2633_s18 = sphi %s2749_s18, %s3606_s18   ;;  %s2629_s17 = sphi %s2747_s17, %s3605_s17   ;;  %s2625_s16 = sphi %s2745_s16, %s3604_s16   ;;  %s2621_s15 = sphi %s2743_s15, %s3603_s15  }
   0x6   : > { %s2768_s21 = sadd.s32 1, %s2633_s18   ;;  %s27_s22 = sadd.s32 1, %s2629_s17 }
   0x7   : > { %s24_s23 = ssub.s32 %s2633_s18, %s2768_s21  ;;  %p34_p0 = scmp.ne.s32.totalorder %s2629_s17, %s2625_s16 }
   0x8   : > { %p25_p1 = scmp.eq.s32.totalorder %s24_s23, 0  ;;  %p35_p2 = scmp.eq.s32.totalorder %s2633_s18, 0 }
   0x9   : > { %p40_p3 = scmp.ne.s32.totalorder %s2625_s16, %s2621_s15  ;;  %p41_p4 = scmp.eq.s32.totalorder %s2764_s19, 0 }
   0xa   : > { %s2780_s24 = scalar_select %p25_p1, %s2629_s17, %s27_s22  }
   0xb   : > { %p2782_p5 = por %p35_p2, %p34_p0  ;;  %p2786_p6 = por %p41_p4, %p40_p3 }
   0xc   : > { %p127_p7 = scmp.eq.s32.totalorder %s2764_s19, 1  ;;  %p133_p8 = scmp.eq.s32.totalorder %s2153_s20, 1 }
   0xd   : > { %p2207_p10 = scmp.lt.s32.totalorder %s2633_s18, 2  ;;  %s162_s29 = sand.u32 1, %s2629_s17  }
   0xe   : > { %p2793_p11 = por %p127_p7, %p34_p0  ;;  %p2797_p12 = por %p133_p8, %p40_p3 }
   0xf   : > { %s2175_s30 = sshll.u32 %s2633_s18, 8  ;;  %s2156_s5 = sshll.u32 %s162_s29, 4 }
  0x10   : > { %s3589_s27 = scalar_select %p2793_p11, 1, 0 }
  0x11   : > { %s3590_s28 = scalar_select %p2797_p12, 1, 0 }
  0x12   : > { %s2806_s8 = scalar_lea.hbm %s3581_s0, %s2175_s30  ;;  %s166_s9 = scalar_lea.vmem [#allocation2], %s2156_s5 }
  0x13   : > { %s173_s10 = sshll.u32 %s166_s9, 4  ;;  %p2810_p13 = pnand %p2207_p10, %p2782_p5  ;;  %s2814_s10 = int_to_ptr.vmem [resolvable:$true] %s173_s10 }
  0x14   : > { %s2816_s12 = scalar_lea.sflag [#allocation3], %s162_s29  ;;  %s2493_s13 = scalar_lea.hbm %s2806_s8, 256 }
  0x15   : > { %p2494_p0 = scmp.ne.s32.totalorder %s2806_s8, %s2493_s13  ;;  %p2495_p1 = pneg %p2810_p13 }
  0x16   : > { %s2498_s22 = scalar_lea.hbm %s3581_s0, 512  ;;  %p2499_p4 = scmp.lt.u32.totalorder %s2806_s8, %s3581_s0 }
  0x17   : > { %p2496_p2 = pnand %p2495_p1, %p2494_p0  ;;  %p2500_p5 = scmp.lt.u32.totalorder %s2498_s22, %s2493_s13 }
  0x18   : > { %p2502_p8 = scmp.lt.u32.totalorder %s2493_s13, %s2806_s8 }
  0x19   : > { %p2497_p3 = pneg %p2496_p2  ;;  %p2501_p7 = por %p2500_p5, %p2499_p4 }
  0x1b   : > { %p2503_p10 = por %p2502_p8, %p2501_p7 }
  0x1d   : > { %p2504_p9 = pnand %p2503_p10, %p2497_p3 }
  0x1f   : > { %2507 = shalt.err (!%p2504_p9)
}
  0x20   : > { %s2508_s29 = scalar_lea.vmem %s2814_s10, 256  ;;  %s2679_s30 = smov [#allocation2]  }
  0x21   : > { %p2509_p0 = scmp.ne.s32.totalorder %s2814_s10, %s2508_s29  ;;  %s2513_s5 = sshll.u32 %s2679_s30, 4  ;;  %s2514_s5 = int_to_ptr.vmem [resolvable:$false] %s2513_s5 }
  0x22   : > { %s2515_s6 = scalar_lea.vmem %s2514_s5, 512  ;;  %p2516_p11 = scmp.lt.s32.totalorder %s2814_s10, %s2514_s5 }
  0x23   : > { %p2511_p2 = pnand %p2509_p0, %p2495_p1  ;;  %p2517_p4 = scmp.lt.s32.totalorder %s2515_s6, %s2508_s29 }
  0x25   : > { %p2512_p12 = pneg %p2511_p2  ;;  %p2518_p5 = por %p2517_p4, %p2516_p11 }
  0x27   : > { %p2519_p7 = pnand %p2518_p5, %p2512_p12 }
  0x29   : > { %2522 = shalt.err (!%p2519_p7)
}
  0x2a   : > { %s2680_s7 = smov 128   ;;  %s2681_s9 = smov 8  }
  0x2b   : > { %2202 = dma.hbm_to_vmem [thread:$0]  (!%p2810_p13), %s2806_s8, 256, %s2814_s10, %s2816_s12, %s2680_s7, %s2680_s7, %s2681_s9  }
  0x2c   : > { %p2159_p9 = scmp.ge.s32.totalorder %s2633_s18, 1  ;;  %p181_p1 = scmp.lt.s32.totalorder %s2633_s18, 3 }
  0x2e   : > { %p182_p3 = pnand %p2159_p9, %p181_p1 }
  0x2f   : > { %s2847_s13 = sand.u32 (!%p182_p3), 1, %s2625_s16  }
  0x30   : > { %185 = sbr.rel (%p182_p3) target bundleno = 5244 (0x147c), region = 36  ;;  %s2160_s14 = sshll.u32 (!%p182_p3), %s2847_s13, 4 }
  0x31   : > { %s188_s20 = scalar_lea.sflag (!%p182_p3), [#allocation3], %s2847_s13  ;;  %s2853_s22 = scalar_lea.vmem (!%p182_p3), [#allocation2], %s2160_s14 }
  0x37   : > { %2612 = dma.done.wait (%p2786_p6), %s188_s20, 256  }
  0x38   : > { %2614 = vsyncadd (%p2786_p6), %s188_s20, 4294967040  ;;  %v269_v0 = vlaneseq  ;;  %v2682_v1 = vmov 0   ;;  %v2683_v4 = vmov 0.0   ;;  %v2867_v6 = vld [vmem:[%s3584_s3] sm:$0xff]  ;;  %v2684_v9 = vmov 1   ;;  %v219_v52 = vld [vmem:[%s2853_s22 + $0x8] sm:$0xff] }
  0x39   : > { %2366 = vset.pattern.permute.xlu0 %v2682_v1  ;;  %2367 = vset.pattern.permute.xlu1 %v2684_v9  ;;  %v2685_v19 = vmov 2   ;;  %v2686_v29 = vmov 3   ;;  %v2687_v39 = vmov 4   ;;  %v218_v40 = vld [vmem:[%s2853_s22] sm:$0xff]  ;;  %vm223_vm4 = vcmask 261120   ;;  %s3102_s29 = scalar_lea.vmem [#allocation5], %s2160_s14 }
  0x3a   : > { %v2859_v2 = vshrl.u32 %v269_v0, 7  ;;  %v272_v3 = vand.u32 127, %v269_v0  ;;  %v224_v41 = vsel %vm223_vm4, %v218_v40, 0.0  ;;  %v2688_v51 = vmov 5  }
  0x3b   : > { %v227_v53 = vsel %vm223_vm4, %v219_v52, 0.0  ;;  %v2689_v0 = vmov 6   ;;  %vm630_vm10 = vcmask 64512  }
  0x3c   : > { %vm273_vm0 = vcmp.eq.s32.totalorder %v2859_v2, %v272_v3  ;;  %v2872_v10 = vsub.s32 0, %v2859_v2  ;;  %vm304_vm1 = vcmp.eq.s32.totalorder %v2859_v2, 0  ;;  %v2885_v20 = vsub.s32 1, %v2859_v2 }
  0x3d   : > { %v2862_v5 = vsel %vm273_vm0, 1.0, %v2683_v4  ;;  %vm349_vm2 = vcmp.eq.s32.totalorder %v2859_v2, 1  ;;  %v2898_v30 = vsub.s32 2, %v2859_v2  ;;  %vm394_vm3 = vcmp.eq.s32.totalorder %v2859_v2, 2 }
  0x3e   : > { %v276_v7 = vsub.f32 %v2862_v5, %v2867_v6  ;;  %v2913_v42 = vsub.s32 3, %v2859_v2  ;;  %vm439_vm5 = vcmp.eq.s32.totalorder %v2859_v2, 3  ;;  %v2928_v54 = vsub.s32 4, %v2859_v2 }
  0x3f   : > { %vm484_vm6 = vcmp.eq.s32.totalorder %v2859_v2, 4  ;;  %vm529_vm7 = vcmp.eq.s32.totalorder %v2859_v2, 5  ;;  %vm574_vm8 = vcmp.eq.s32.totalorder %v2859_v2, 6  ;;  %vm614_vm9 = vcmp.eq.s32.totalorder %v2859_v2, 7 }
  0x40   : > { %2379 = vrcp.f32 %v276_v7 }
  0x4a   : > { %v2380_v8 = vpop.eup %2379 }
  0x4b   : > { %281 = vperm.xlu0 %2366, %v2380_v8  }
  0x4f   : > { %307 = vperm.xlu0 %2366, %v276_v7  }
  0x53   : > { %2368 = vset.pattern.permute.xlu0 %v2685_v19 }
  0xca   : > { %v2874_v11 = vpop.permute.xlu0 %281 }
  0xcb   : > { %v284_v12 = vmul.f32 %v2874_v11, %v276_v7 }
  0xcd   : > { %v288_v13 = vrot.slane %v284_v12, %v2872_v10 }
  0xce   : > { %v2878_v14 = vpop.permute.xlu0 %307 }
  0xcf   : > { %v310_v15 = vmul.f32 %v2878_v14, %v288_v13 }
  0xd1   : > { %v311_v16 = vsub.f32 %v276_v7, %v310_v15 }
  0xd3   : > { %v312_v17 = vsel %vm304_vm1, %v288_v13, %v311_v16  ;;  %v2943_v16 = vsub.s32 5, %v2859_v2 }
  0xd4   : > { %2381 = vrcp.f32 %v312_v17 }
  0xde   : > { %v2382_v18 = vpop.eup %2381 }
  0xdf   : > { %326 = vperm.xlu1 %2367, %v2382_v18  }
  0xe3   : > { %352 = vperm.xlu1 %2367, %v312_v17  }
  0xe7   : > { %2369 = vset.pattern.permute.xlu1 %v2685_v19 }
 0x15e   : > { %v2887_v21 = vpop.permute.xlu1 %326 }
 0x15f   : > { %v329_v22 = vmul.f32 %v2887_v21, %v312_v17 }
 0x161   : > { %v333_v23 = vrot.slane %v329_v22, %v2885_v20 }
 0x162   : > { %v2891_v24 = vpop.permute.xlu1 %352 }
 0x163   : > { %v355_v25 = vmul.f32 %v2891_v24, %v333_v23 }
 0x165   : > { %v356_v26 = vsub.f32 %v312_v17, %v355_v25 }
 0x167   : > { %v357_v27 = vsel %vm349_vm2, %v333_v23, %v356_v26 }
 0x168   : > { %397 = vperm.xlu1 %2369, %v357_v27   ;;  %2383 = vrcp.f32 %v357_v27 }
 0x16c   : > { %2370 = vset.pattern.permute.xlu1 %v2686_v29 }
 0x172   : > { %v2384_v28 = vpop.eup %2383 }
 0x173   : > { %371 = vperm.xlu0 %2368, %v2384_v28   ;;  %v2690_v28 = vmov 7  }
 0x177   : > { %2371 = vset.pattern.permute.xlu0 %v2686_v29 }
 0x1e7   : > { %v2904_v34 = vpop.permute.xlu1 %397 }
 0x1f2   : > { %v2900_v31 = vpop.permute.xlu0 %371 }
 0x1f3   : > { %v374_v32 = vmul.f32 %v2900_v31, %v357_v27 }
 0x1f5   : > { %v378_v33 = vrot.slane %v374_v32, %v2898_v30 }
 0x1f7   : > { %v400_v35 = vmul.f32 %v2904_v34, %v378_v33 }
 0x1f9   : > { %v401_v36 = vsub.f32 %v357_v27, %v400_v35  ;;  %v289_v35 = vmul.f32 %v2862_v5, %v2874_v11 }
 0x1fb   : > { %v402_v37 = vsel %vm394_vm3, %v378_v33, %v401_v36  ;;  %v293_v36 = vrot.slane %v289_v35, %v2872_v10 }
 0x1fc   : > { %442 = vperm.xlu0 %2371, %v402_v37   ;;  %2385 = vrcp.f32 %v402_v37 }
 0x200   : > { %2373 = vset.pattern.permute.xlu0 %v2688_v51 }
 0x206   : > { %v2386_v38 = vpop.eup %2385 }
 0x207   : > { %416 = vperm.xlu1 %2370, %v2386_v38   ;;  %v2162_v38 = vld [vmem:[%s3582_s1] ss:$0 sm:$0xff] }
 0x20b   : > { %2372 = vset.pattern.permute.xlu1 %v2687_v39  ;;  %v313_v39 = vmul.f32 %v2878_v14, %v293_v36 }
 0x21b   : > { %225 = vadd.xlane.f32.xlu0 %v224_v41 }
 0x27b   : > { %v2919_v46 = vpop.permute.xlu0 %442 }
 0x286   : > { %v2915_v43 = vpop.permute.xlu1 %416 }
 0x287   : > { %v419_v44 = vmul.f32 %v2915_v43, %v402_v37 }
 0x289   : > { %v423_v45 = vrot.slane %v419_v44, %v2913_v42  ;;  %v2163_v44 = vld [vmem:[%s3583_s2] ss:$0 sm:$0xff] }
 0x28b   : > { %v445_v47 = vmul.f32 %v2919_v46, %v423_v45 }
 0x28d   : > { %v446_v48 = vsub.f32 %v402_v37, %v445_v47 }
 0x28f   : > { %v447_v49 = vsel %vm439_vm5, %v423_v45, %v446_v48 }
 0x290   : > { %2387 = vrcp.f32 %v447_v49 }
 0x29a   : > { %v2388_v50 = vpop.eup %2387 }
 0x29b   : > { %461 = vperm.xlu1 %2372, %v2388_v50  }
 0x29f   : > { %487 = vperm.xlu1 %2372, %v447_v49  }
 0x2a3   : > { %2374 = vset.pattern.permute.xlu1 %v2688_v51 }
 0x2a8   : > { %v226_v63 = vpop.xlane.xlu0 %225 }
 0x2a9   : > { %v231_v1 = vmul.f32 0.03125, %v226_v63 }
 0x2ab   : > { %v233_v3 = vsub.f32 %v218_v40, %v231_v1 }
 0x2ad   : > { %v235_v4 = vmul.f32 %v233_v3, %v233_v3 }
 0x2af   : > { %v237_v7 = vsel %vm223_vm4, %v235_v4, 0.0 }
 0x2c3   : > { %228 = vadd.xlane.f32.xlu1 %v227_v53 }
 0x31a   : > { %v2930_v55 = vpop.permute.xlu1 %461 }
 0x31b   : > { %v464_v56 = vmul.f32 %v2930_v55, %v447_v49 }
 0x31d   : > { %v468_v57 = vrot.slane %v464_v56, %v2928_v54 }
 0x31e   : > { %v2934_v58 = vpop.permute.xlu1 %487 }
 0x31f   : > { %v490_v59 = vmul.f32 %v2934_v58, %v468_v57 }
 0x321   : > { %v491_v60 = vsub.f32 %v447_v49, %v490_v59  ;;  %v314_v49 = vsub.f32 %v2862_v5, %v313_v39 }
 0x323   : > { %v492_v61 = vsel %vm484_vm6, %v468_v57, %v491_v60 }
 0x324   : > { %2389 = vrcp.f32 %v492_v61  ;;  %532 = vperm.xlu1 %2374, %v492_v61  }
 0x328   : > { %2375 = vset.pattern.permute.xlu1 %v2689_v0 }
 0x32e   : > { %v2390_v62 = vpop.eup %2389 }
 0x32f   : > { %506 = vperm.xlu0 %2373, %v2390_v62  }
 0x333   : > { %2376 = vset.pattern.permute.xlu0 %v2689_v0 }
 0x348   : > { %238 = vadd.xlane.f32.xlu1 %v237_v7 }
 0x350   : > { %v229_v8 = vpop.xlane.xlu1 %228 }
 0x351   : > { %v232_v9 = vmul.f32 0.03125, %v229_v8 }
 0x353   : > { %v234_v12 = vsub.f32 %v219_v52, %v232_v9  ;;  %v315_v52 = vsel %vm304_vm1, %v293_v36, %v314_v49 }
 0x354   : > { %v334_v56 = vmul.f32 %v2887_v21, %v315_v52 }
 0x355   : > { %v236_v13 = vmul.f32 %v234_v12, %v234_v12 }
 0x356   : > { %v338_v60 = vrot.slane %v334_v56, %v2885_v20 }
 0x357   : > { %v240_v15 = vsel %vm223_vm4, %v236_v13, 0.0 }
 0x358   : > { %241 = vadd.xlane.f32.xlu0 %v240_v15  ;;  %v358_v1 = vmul.f32 %v2891_v24, %v338_v60 }
 0x35a   : > { %v359_v9 = vsub.f32 %v315_v52, %v358_v1 }
 0x3a3   : > { %v2949_v22 = vpop.permute.xlu1 %532 }
 0x3ae   : > { %v2945_v17 = vpop.permute.xlu0 %506 }
 0x3af   : > { %v509_v18 = vmul.f32 %v2945_v17, %v492_v61 }
 0x3b1   : > { %v513_v19 = vrot.slane %v509_v18, %v2943_v16 }
 0x3b3   : > { %v535_v23 = vmul.f32 %v2949_v22, %v513_v19 }
 0x3b5   : > { %v536_v25 = vsub.f32 %v492_v61, %v535_v23 }
 0x3b7   : > { %v2955_v26 = vsel %vm529_vm7, %v513_v19, %v536_v25 }
 0x3b8   : > { %577 = vperm.xlu0 %2376, %v2955_v26   ;;  %2391 = vrcp.f32 %v2955_v26 }
 0x3bc   : > { %2378 = vset.pattern.permute.xlu0 %v2690_v28 }
 0x3c2   : > { %v2392_v27 = vpop.eup %2391 }
 0x3c3   : > { %551 = vperm.xlu1 %2375, %v2392_v27  }
 0x3c7   : > { %2377 = vset.pattern.permute.xlu1 %v2690_v28 }
 0x3d5   : > { %v239_v29 = vpop.xlane.xlu1 %238 }
 0x3d6   : > { %v243_v32 = vmul.f32 0.03125, %v239_v29 }
 0x3d8   : > { %v245_v33 = vadd.f32 1e-05, %v243_v32 }
 0x3da   : > { %2393 = vrsqrt.f32 %v245_v33 }
 0x3e4   : > { %v2394_v37 = vpop.eup %2393 }
 0x3e5   : > { %v249_v40 = vmul.f32 %v2394_v37, %v233_v3  ;;  %v242_v41 = vpop.xlane.xlu0 %241 }
 0x3e6   : > { %v244_v45 = vmul.f32 0.03125, %v242_v41 }
 0x3e7   : > { %v257_v47 = vmul.f32 %v2162_v38, %v249_v40 }
 0x3e8   : > { %v246_v48 = vadd.f32 1e-05, %v244_v45 }
 0x3e9   : > { %v265_v50 = vadd.f32 %v2163_v44, %v257_v47 }
 0x3ea   : > { %2395 = vrsqrt.f32 %v246_v48 }
 0x3eb   : > { %v2970_v51 = vmul.f32 0.17677669, %v265_v50 }
 0x3ed   : > { %v294_v53 = vmul.f32 %v2874_v11, %v2970_v51 }
 0x3ef   : > { %v299_v57 = vrot.slane %v294_v53, %v2872_v10 }
 0x3f1   : > { %v316_v59 = vmul.f32 %v2878_v14, %v299_v57 }
 0x3f3   : > { %v318_v61 = vsub.f32 %v2970_v51, %v316_v59 }
 0x3f4   : > { %v2396_v62 = vpop.eup %2395 }
 0x3f5   : > { %v320_v63 = vsel %vm304_vm1, %v299_v57, %v318_v61  ;;  %v250_v0 = vmul.f32 %v2396_v62, %v234_v12  ;;  %v360_v12 = vsel %vm349_vm2, %v338_v60, %v359_v9 }
 0x3f6   : > { %v339_v3 = vmul.f32 %v2887_v21, %v320_v63  ;;  %v379_v25 = vmul.f32 %v2900_v31, %v360_v12 }
 0x3f7   : > { %v258_v4 = vmul.f32 %v2162_v38, %v250_v0 }
 0x3f8   : > { %v344_v7 = vrot.slane %v339_v3, %v2885_v20  ;;  %v383_v33 = vrot.slane %v379_v25, %v2898_v30 }
 0x3f9   : > { %v266_v8 = vadd.f32 %v2163_v44, %v258_v4 }
 0x3fa   : > { %v361_v13 = vmul.f32 %v2891_v24, %v344_v7  ;;  %v403_v39 = vmul.f32 %v2904_v34, %v383_v33 }
 0x3fb   : > { %v2987_v15 = vmul.f32 0.17677669, %v266_v8 }
 0x3fc   : > { %v363_v18 = vsub.f32 %v320_v63, %v361_v13  ;;  %v404_v44 = vsub.f32 %v360_v12, %v403_v39 }
 0x3fd   : > { %v295_v19 = vmul.f32 %v2874_v11, %v2987_v15 }
 0x3fe   : > { %v365_v23 = vsel %vm349_vm2, %v344_v7, %v363_v18  ;;  %v405_v49 = vsel %vm394_vm3, %v383_v33, %v404_v44 }
 0x3ff   : > { %v303_v27 = vrot.slane %v295_v19, %v2872_v10  ;;  %v384_v28 = vmul.f32 %v2900_v31, %v365_v23  ;;  %v424_v50 = vmul.f32 %v2915_v43, %v405_v49 }
 0x401   : > { %v317_v29 = vmul.f32 %v2878_v14, %v303_v27  ;;  %v389_v32 = vrot.slane %v384_v28, %v2898_v30  ;;  %v428_v56 = vrot.slane %v424_v50, %v2913_v42 }
 0x403   : > { %v319_v11 = vsub.f32 %v2987_v15, %v317_v29  ;;  %v406_v35 = vmul.f32 %v2904_v34, %v389_v32  ;;  %v448_v61 = vmul.f32 %v2919_v46, %v428_v56 }
 0x405   : > { %v321_v36 = vsel %vm304_vm1, %v303_v27, %v319_v11  ;;  %v408_v37 = vsub.f32 %v365_v23, %v406_v35  ;;  %v449_v0 = vsub.f32 %v405_v49, %v448_v61 }
 0x406   : > { %v340_v38 = vmul.f32 %v2887_v21, %v321_v36 }
 0x407   : > { %v410_v14 = vsel %vm394_vm3, %v389_v32, %v408_v37  ;;  %v450_v7 = vsel %vm439_vm5, %v428_v56, %v449_v0 }
 0x408   : > { %v348_v40 = vrot.slane %v340_v38, %v2885_v20  ;;  %v429_v47 = vmul.f32 %v2915_v43, %v410_v14  ;;  %v469_v9 = vmul.f32 %v2930_v55, %v450_v7 }
 0x40a   : > { %v362_v41 = vmul.f32 %v2891_v24, %v348_v40  ;;  %v434_v52 = vrot.slane %v429_v47, %v2913_v42  ;;  %v473_v19 = vrot.slane %v469_v9, %v2928_v54 }
 0x40c   : > { %v364_v45 = vsub.f32 %v321_v36, %v362_v41  ;;  %v451_v57 = vmul.f32 %v2919_v46, %v434_v52  ;;  %v493_v23 = vmul.f32 %v2934_v58, %v473_v19 }
 0x40e   : > { %v366_v48 = vsel %vm349_vm2, %v348_v40, %v364_v45  ;;  %v453_v62 = vsub.f32 %v410_v14, %v451_v57  ;;  %v494_v28 = vsub.f32 %v450_v7, %v493_v23  ;;  %v3060_v45 = vsub.s32 6, %v2859_v2 }
 0x40f   : > { %v385_v21 = vmul.f32 %v2900_v31, %v366_v48 }
 0x410   : > { %v455_v1 = vsel %vm439_vm5, %v434_v52, %v453_v62  ;;  %v495_v32 = vsel %vm484_vm6, %v473_v19, %v494_v28 }
 0x411   : > { %v393_v53 = vrot.slane %v385_v21, %v2898_v30  ;;  %v474_v4 = vmul.f32 %v2930_v55, %v455_v1  ;;  %v514_v33 = vmul.f32 %v2945_v17, %v495_v32 }
 0x413   : > { %v407_v24 = vmul.f32 %v2904_v34, %v393_v53  ;;  %v479_v13 = vrot.slane %v474_v4, %v2928_v54 }
 0x415   : > { %v409_v59 = vsub.f32 %v366_v48, %v407_v24 }
 0x417   : > { %v411_v60 = vsel %vm394_vm3, %v393_v53, %v409_v59 }
 0x418   : > { %v430_v31 = vmul.f32 %v2915_v43, %v411_v60 }
 0x41a   : > { %v438_v63 = vrot.slane %v430_v31, %v2913_v42 }
 0x41c   : > { %v452_v34 = vmul.f32 %v2919_v46, %v438_v63  ;;  %v496_v46 = vmul.f32 %v2934_v58, %v479_v13 }
 0x41e   : > { %v454_v3 = vsub.f32 %v411_v60, %v452_v34  ;;  %v498_v25 = vsub.f32 %v455_v1, %v496_v46 }
 0x420   : > { %v456_v8 = vsel %vm439_vm5, %v438_v63, %v454_v3  ;;  %v500_v29 = vsel %vm484_vm6, %v479_v13, %v498_v25 }
 0x421   : > { %v475_v43 = vmul.f32 %v2930_v55, %v456_v8  ;;  %v519_v11 = vmul.f32 %v2945_v17, %v500_v29 }
 0x423   : > { %v483_v18 = vrot.slane %v475_v43, %v2928_v54  ;;  %v524_v36 = vrot.slane %v519_v11, %v2943_v16 }
 0x425   : > { %v497_v12 = vmul.f32 %v2934_v58, %v483_v18  ;;  %v518_v58 = vrot.slane %v514_v33, %v2943_v16  ;;  %v541_v39 = vmul.f32 %v2949_v22, %v524_v36 }
 0x427   : > { %v499_v27 = vsub.f32 %v456_v8, %v497_v12  ;;  %v538_v38 = vmul.f32 %v2949_v22, %v518_v58  ;;  %v543_v41 = vsub.f32 %v500_v29, %v541_v39 }
 0x429   : > { %v501_v55 = vsel %vm484_vm6, %v483_v18, %v499_v27  ;;  %v539_v14 = vsub.f32 %v495_v32, %v538_v38  ;;  %v545_v47 = vsel %vm529_vm7, %v524_v36, %v543_v41 }
 0x42a   : > { %v520_v35 = vmul.f32 %v2945_v17, %v501_v55 }
 0x42b   : > { %v540_v17 = vsel %vm529_vm7, %v518_v58, %v539_v14 }
 0x42c   : > { %v528_v37 = vrot.slane %v520_v35, %v2943_v16 }
 0x42e   : > { %v542_v40 = vmul.f32 %v2949_v22, %v528_v37 }
 0x430   : > { %v544_v44 = vsub.f32 %v501_v55, %v542_v40 }
 0x432   : > { %v546_v49 = vsel %vm529_vm7, %v528_v37, %v544_v44 }
 0x437   : > { %v578_v59 = vpop.permute.xlu0 %577 }
 0x442   : > { %v552_v48 = vpop.permute.xlu1 %551 }
 0x443   : > { %v554_v21 = vmul.f32 %v552_v48, %v2955_v26  ;;  %v559_v50 = vmul.f32 %v552_v48, %v540_v17  ;;  %v564_v22 = vmul.f32 %v552_v48, %v545_v47  ;;  %v565_v52 = vmul.f32 %v552_v48, %v546_v49 }
 0x445   : > { %v558_v53 = vrot.slane %v554_v21, %v3060_v45  ;;  %v563_v24 = vrot.slane %v559_v50, %v3060_v45  ;;  %v569_v56 = vrot.slane %v564_v22, %v3060_v45  ;;  %v573_v57 = vrot.slane %v565_v52, %v3060_v45 }
 0x447   : > { %v580_v60 = vmul.f32 %v578_v59, %v558_v53  ;;  %v583_v61 = vmul.f32 %v578_v59, %v563_v24  ;;  %v586_v62 = vmul.f32 %v578_v59, %v569_v56  ;;  %v587_v31 = vmul.f32 %v578_v59, %v573_v57 }
 0x449   : > { %v581_v63 = vsub.f32 %v2955_v26, %v580_v60  ;;  %v584_v0 = vsub.f32 %v540_v17, %v583_v61  ;;  %v588_v1 = vsub.f32 %v545_v47, %v586_v62  ;;  %v589_v34 = vsub.f32 %v546_v49, %v587_v31 }
 0x44a   : > { %v3084_v26 = vsub.s32 7, %v2859_v2 }
 0x44b   : > { %v582_v3 = vsel %vm574_vm8, %v558_v53, %v581_v63  ;;  %v585_v4 = vsel %vm574_vm8, %v563_v24, %v584_v0  ;;  %v590_v7 = vsel %vm574_vm8, %v569_v56, %v588_v1  ;;  %v591_v8 = vsel %vm574_vm8, %v573_v57, %v589_v34 }
 0x44c   : > { %2397 = vrcp.f32 %v582_v3 }
 0x456   : > { %v2398_v9 = vpop.eup %2397 }
 0x457   : > { %596 = vperm.xlu1 %2377, %v2398_v9  }
 0x45b   : > { %617 = vperm.xlu1 %2377, %v582_v3  }
 0x4d6   : > { %v597_v43 = vpop.permute.xlu1 %596 }
 0x4d7   : > { %v599_v13 = vmul.f32 %v597_v43, %v585_v4  ;;  %v604_v18 = vmul.f32 %v597_v43, %v590_v7  ;;  %v605_v19 = vmul.f32 %v597_v43, %v591_v8 }
 0x4d9   : > { %v603_v46 = vrot.slane %v599_v13, %v3084_v26  ;;  %v609_v12 = vrot.slane %v604_v18, %v3084_v26  ;;  %v613_v23 = vrot.slane %v605_v19, %v3084_v26 }
 0x4da   : > { %v618_v25 = vpop.permute.xlu1 %617 }
 0x4db   : > { %v620_v27 = vmul.f32 %v618_v25, %v603_v46  ;;  %v623_v28 = vmul.f32 %v618_v25, %v609_v12  ;;  %v624_v29 = vmul.f32 %v618_v25, %v613_v23 }
 0x4dd   : > { %v621_v55 = vsub.f32 %v585_v4, %v620_v27  ;;  %v625_v32 = vsub.f32 %v590_v7, %v623_v28  ;;  %v626_v33 = vsub.f32 %v591_v8, %v624_v29 }
 0x4df   : > { %v627_v11 = vsel %vm614_vm9, %v609_v12, %v625_v32   ;;  %v622_v35 = vsel %vm614_vm9, %v603_v46, %v621_v55   ;;  %v628_v58 = vsel %vm614_vm9, %v613_v23, %v626_v33  }
 0x4e0   : > { %v634_v36 = vmul.f32 %v627_v11, %v627_v11  ;;  %v629_v37 = vmul.f32 %v2862_v5, %v622_v35  ;;  %v635_v40 = vmul.f32 %v628_v58, %v628_v58  ;;  %v3592_v31 = vmov %v628_v58 }
 0x4e1   : > { %v3593_v63 = vmov %v627_v11 }
 0x4e2   : > { %v636_v38 = vsel %vm223_vm4, %v634_v36, 0.0  ;;  %v631_v39 = vsel %vm630_vm10, %v629_v37, 0.0  ;;  %v639_v14 = vsel %vm223_vm4, %v635_v40, 0.0 }
 0x4e3   : > { %637 = vadd.xlane.f32.xlu0 %v636_v38  ;;  %632 = vadd.xlane.f32.xlu1 %v631_v39 }
 0x4e7   : > { %640 = vadd.xlane.f32.xlu1 %v639_v14 }
 0x570   : > { %v638_v41 = vpop.xlane.xlu0 %637  ;;  %v633_v44 = vpop.xlane.xlu1 %632 }
 0x571   : > { %v642_v17 = vmul.f32 0.5, %v633_v44  ;;  %v644_v47 = vmul.f32 0.25, %v638_v41 }
 0x573   : > { %v643_v48 = vsub.f32 1.0, %v642_v17 }
 0x574   : > { %v641_v49 = vpop.xlane.xlu1 %640 }
 0x575   : > { %v646_v21 = vsub.f32 %v643_v48, %v644_v47   ;;  %v645_v50 = vmul.f32 0.25, %v641_v49 }
 0x577   : > { %v647_v22 = vsub.f32 %v643_v48, %v645_v50   ;;  %v648_v52 = vand.u32 2147483647, %v646_v21 }
 0x579   : > { %v649_v53 = vand.u32 2147483647, %v647_v22 }
 0x57b   : > { %v650_v24 = vmax.f32.f32 %v648_v52, %v649_v53 }
 0x57d   : > { %v651_v56 = vrot.slane %v650_v24, 4 }
 0x57f   : > { %v652_v57 = vmax.f32 %v650_v24, %v651_v56 }
 0x581   : > { %v653_v59 = vrot.slane %v652_v57, 2 }
 0x583   : > { %v654_v60 = vmax.f32 %v652_v57, %v653_v59 }
 0x585   : > { %v655_v61 = vrot.slane %v654_v60, 1 }
 0x587   : > { %v656_v62 = vmax.f32 %v654_v60, %v655_v61 }
 0x589   : > { %2191 = vpush %v656_v62 }
 0x5ba   : > { %s2192_s25 = spop %2191 }
 0x5bb   : > { %p2108_p6 = scmp.gt.f32.partialorder %s2192_s25, 1e-05 }
 0x5bc   : > { %v3594_v0 = vmov (%p2108_p6), %v622_v35  ;;  %v3120_v1 = vmov (%p2108_p6), 1.0   ;;  %v3122_v34 = vmov (%p2108_p6), 1.0   ;;  %s3124_s30 = smov (%p2108_p6), 0  }
 0x5bd   : > { %2110 = sbr.rel (!%p2108_p6) target bundleno = 5218 (0x1462), region = 82 }
 0x5c4 LB: >> { %v2691_v3 = vmov 0.0   ;;  %vm2692_vm11 = vmmov 0   ;;  %v2693_v4 = vmov 0   ;;  %v821_v7 = vmul.f32 0.5, %v2657_v35  ;;  %s2695_s5 = smov 127   ;;  %s2697_s6 = smov 1   ;;  %s2669_s30 = sphi %s3124_s30, %s3597_s30   ;;  %v2665_v34 = vphi %v3122_v34, %v3285_v34   ;;  %v2661_v1 = vphi %v3120_v1, %v3292_v1   ;;  %v2657_v35 = vphi %v622_v35, %v1987_v35   ;;  %v2653_v0 = vphi %v3594_v0, %v1988_v0   ;;  %v2649_v11 = vphi %v627_v11, %v3596_v11   ;;  %v2645_v58 = vphi %v628_v58, %v3595_v58   ;;  %v2641_v21 = vphi %v646_v21, %v2017_v21   ;;  %v2637_v22 = vphi %v647_v22, %v2018_v22  }
 0x5c5   : >> { %2181 = vmatprep.subr.mxu0 %v2691_v3  ;;  %2186 = vmatprep.subr.mxu1 %v2691_v3  ;;  %v822_v8 = vmul.f32 0.5, %v2653_v0  ;;  %v2694_v55 = vmov 1   ;;  %v2696_v59 = vmov 2   ;;  %s2698_s7 = smov 126   ;;  %s2700_s9 = smov 2  }
 0x5c6   : >> { %2182 = vmatpush3.xpose.msk.msra.mxu0 %vm223_vm4, %v2649_v11  ;;  %2187 = vmatpush3.xpose.msk.msra.mxu1 %vm223_vm4, %v2645_v58  ;;  %v823_v9 = vmul.f32 %v2657_v35, %v821_v7  ;;  %s2701_s14 = smov 125   ;;  %s2703_s20 = smov 3  }
 0x5c7   : >> { %2183 = vmatprep.mubr.msk.f32.mxu0 %vm2692_vm11, %v2691_v3  ;;  %2188 = vmatprep.mubr.msk.f32.mxu1 %vm2692_vm11, %v2691_v3  ;;  %v824_v12 = vmul.f32 %v2653_v0, %v822_v8  ;;  %s2704_s22 = smov 124   ;;  %s2706_s8 = smov 4  }
 0x5c8   : >> { %2400 = vset.pattern.permute.xlu1 %v2693_v4  ;;  %2399 = vset.pattern.permute.xlu0 %v2693_v4  ;;  %s2707_s10 = smov 123   ;;  %s2709_s26 = smov 5  }
 0x5c9   : >> { %2184 = vmatmul.mubr.msk.f32.vlgmr.msra.gmra.mrb[0].mxu0 %vm223_vm4, %v2649_v11  ;;  %2189 = vmatmul.mubr.msk.f32.vlgmr.msra.gmra.mrb[0].mxu1 %vm223_vm4, %v2645_v58  ;;  %s2710_s11 = smov 122   ;;  %s2711_s12 = smov 6  }
 0x5ca   : >> { %s2712_s23 = smov 121   ;;  %s2713_s25 = smov 7  }
 0x69c   : >> { %v744_v43 = vpop.f32.mrb[0].mxu0  ;;  %v817_v13 = vpop.f32.mrb[0].mxu1 }
 0x69d   : >> { %v825_v18 = vmul.f32 %v821_v7, %v744_v43  ;;  %v2185_v19 = vpop.f32.mrb[1].mxu0  ;;  %v2190_v46 = vpop.f32.mrb[1].mxu1  ;;  %v826_v23 = vmul.f32 %v822_v8, %v817_v13 }
 0x69f   : >> { %v827_v25 = vadd.f32 %v825_v18, %v823_v9  ;;  %v828_v27 = vadd.f32 %v826_v23, %v824_v12 }
 0x6a1   : >> { %865 = vperm.xlu1 %2400, %v827_v25   ;;  %2429 = vrcp.f32 %v827_v25 }
 0x6a2   : >> { %2431 = vrcp.f32 %v828_v27 }
 0x6a5   : >> { %870 = vperm.xlu1 %2400, %v828_v27  }
 0x6a9   : >> { %2402 = vset.pattern.permute.xlu1 %v2694_v55 }
 0x6ab   : >> { %v2430_v28 = vpop.eup %2429 }
 0x6ac   : >> { %835 = vperm.xlu0 %2399, %v2430_v28   ;;  %v2432_v29 = vpop.eup %2431  ;;  %v853_v49 = vmul.f32 %v2641_v21, %v2430_v28 }
 0x6ad   : >> { %v854_v52 = vmul.f32 %v2637_v22, %v2432_v29 }
 0x6ae   : >> { %v858_v50 = vrot.slane %v853_v49, %v2872_v10 }
 0x6af   : >> { %v862_v24 = vrot.slane %v854_v52, %v2872_v10 }
 0x6b0   : >> { %840 = vperm.xlu0 %2399, %v2432_v29   ;;  %v879_v53 = vmul.f32 %v858_v50, %v827_v25 }
 0x6b1   : >> { %v880_v57 = vmul.f32 %v862_v24, %v828_v27 }
 0x6b2   : >> { %v881_v56 = vsub.f32 %v2641_v21, %v879_v53 }
 0x6b3   : >> { %v882_v62 = vsub.f32 %v2637_v22, %v880_v57 }
 0x6b4   : >> { %2401 = vset.pattern.permute.xlu0 %v2694_v55  ;;  %v883_v61 = vsel %vm304_vm1, %v858_v50, %v881_v56 }
 0x6b5   : >> { %v884_v3 = vsel %vm304_vm1, %v862_v24, %v882_v62 }
 0x720   : >> { %v866_v11 = vpop.permute.xlu1 %865 }
 0x724   : >> { %v871_v40 = vpop.permute.xlu1 %870 }
 0x72b   : >> { %v836_v32 = vpop.permute.xlu0 %835 }
 0x72c   : >> { %v843_v33 = vmul.f32 %v836_v32, %v827_v25 }
 0x72e   : >> { %v848_v35 = vrot.slane %v843_v33, %v2872_v10 }
 0x72f   : >> { %v841_v58 = vpop.permute.xlu0 %840 }
 0x730   : >> { %v873_v36 = vmul.f32 %v866_v11, %v848_v35  ;;  %v844_v37 = vmul.f32 %v841_v58, %v828_v27 }
 0x732   : >> { %v875_v38 = vsub.f32 %v827_v25, %v873_v36  ;;  %v852_v39 = vrot.slane %v844_v37, %v2872_v10 }
 0x734   : >> { %v877_v14 = vsel %vm304_vm1, %v848_v35, %v875_v38  ;;  %v874_v41 = vmul.f32 %v871_v40, %v852_v39 }
 0x735   : >> { %2433 = vrcp.f32 %v877_v14 }
 0x736   : >> { %v876_v44 = vsub.f32 %v828_v27, %v874_v41  ;;  %v2699_v41 = vmov 3  }
 0x738   : >> { %v878_v17 = vsel %vm304_vm1, %v852_v39, %v876_v44 }
 0x739   : >> { %2435 = vrcp.f32 %v878_v17 }
 0x73f   : >> { %v2434_v47 = vpop.eup %2433 }
 0x740   : >> { %909 = vrot.lane.b32.xlu0 %v2434_v47, %s2695_s5 }
 0x743   : >> { %v2436_v48 = vpop.eup %2435 }
 0x744   : >> { %891 = vperm.xlu0 %2401, %v2434_v47   ;;  %911 = vrot.lane.b32.xlu1 %v2436_v48, %s2695_s5 }
 0x748   : >> { %932 = vperm.xlu0 %2401, %v878_v17   ;;  %896 = vperm.xlu1 %2402, %v2436_v48  }
 0x74c   : >> { %927 = vperm.xlu1 %2402, %v877_v14   ;;  %2404 = vset.pattern.permute.xlu0 %v2696_v59 }
 0x750   : >> { %2403 = vset.pattern.permute.xlu1 %v2696_v59 }
 0x7b2   : >> { %v910_v60 = vpop.permute.xlu0 %909 }
 0x7b3   : >> { %v915_v31 = vmul.f32 %v910_v60, %v883_v61 }
 0x7b5   : >> { %v920_v63 = vrot.slane %v915_v31, %v2885_v20 }
 0x7b6   : >> { %v912_v0 = vpop.permute.xlu1 %911 }
 0x7b7   : >> { %v916_v7 = vmul.f32 %v912_v0, %v884_v3  ;;  %943 = vrot.lane.b32.xlu1 %v920_v63, %s2697_s6 }
 0x7b9   : >> { %v924_v8 = vrot.slane %v916_v7, %v2885_v20 }
 0x7bb   : >> { %945 = vrot.lane.b32.xlu0 %v924_v8, %s2697_s6 }
 0x7c3   : >> { %v892_v9 = vpop.permute.xlu0 %891 }
 0x7c4   : >> { %v899_v13 = vmul.f32 %v892_v9, %v877_v14 }
 0x7c6   : >> { %v904_v46 = vrot.slane %v899_v13, %v2885_v20 }
 0x7c7   : >> { %v897_v43 = vpop.permute.xlu1 %896  ;;  %v933_v25 = vpop.permute.xlu0 %932 }
 0x7c8   : >> { %v900_v18 = vmul.f32 %v897_v43, %v878_v17 }
 0x7ca   : >> { %v908_v12 = vrot.slane %v900_v18, %v2885_v20 }
 0x7cb   : >> { %v928_v19 = vpop.permute.xlu1 %927 }
 0x7cc   : >> { %v935_v23 = vmul.f32 %v928_v19, %v904_v46  ;;  %v936_v27 = vmul.f32 %v933_v25, %v908_v12 }
 0x7ce   : >> { %v937_v28 = vsub.f32 %v877_v14, %v935_v23  ;;  %v938_v29 = vsub.f32 %v878_v17, %v936_v27 }
 0x7d0   : >> { %v939_v32 = vsel %vm349_vm2, %v904_v46, %v937_v28  ;;  %v940_v33 = vsel %vm349_vm2, %v908_v12, %v938_v29 }
 0x7d1   : >> { %2437 = vrcp.f32 %v939_v32 }
 0x7d2   : >> { %2439 = vrcp.f32 %v940_v33 }
 0x7db   : >> { %v2438_v37 = vpop.eup %2437 }
 0x7dc   : >> { %v2440_v38 = vpop.eup %2439 }
 0x829   : >> { %v944_v11 = vpop.permute.xlu1 %943 }
 0x82a   : >> { %v949_v35 = vmul.f32 %v944_v11, %v877_v14 }
 0x82c   : >> { %953 = vrot.lane.b32.xlu1 %v949_v35, %s2695_s5 }
 0x82d   : >> { %v946_v58 = vpop.permute.xlu0 %945 }
 0x82e   : >> { %v950_v36 = vmul.f32 %v946_v58, %v878_v17 }
 0x830   : >> { %987 = vrot.lane.b32.xlu1 %v2438_v37, %s2698_s7  ;;  %955 = vrot.lane.b32.xlu0 %v950_v36, %s2695_s5  ;;  %s2029_s5 = sadd.s32 1, %s2669_s30  }
 0x831   : >> { %p669_p11 = scmp.lt.s32.totalorder %s2029_s5, 40  ;;  %s3597_s30 = smov %s2029_s5 }
 0x834   : >> { %969 = vperm.xlu1 %2403, %v2438_v37   ;;  %989 = vrot.lane.b32.xlu0 %v2440_v38, %s2698_s7 }
 0x838   : >> { %1005 = vperm.xlu1 %2403, %v939_v32   ;;  %974 = vperm.xlu0 %2404, %v2440_v38  }
 0x83c   : >> { %1010 = vperm.xlu1 %2403, %v940_v33   ;;  %2405 = vset.pattern.permute.xlu0 %v2699_v41 }
 0x840   : >> { %2406 = vset.pattern.permute.xlu1 %v2699_v41 }
 0x89e   : >> { %v954_v39 = vpop.permute.xlu1 %953 }
 0x89f   : >> { %v959_v40 = vsub.f32 %v883_v61, %v954_v39 }
 0x8a1   : >> { %v961_v14 = vsel %vm349_vm2, %v920_v63, %v959_v40 }
 0x8a2   : >> { %v988_v44 = vpop.permute.xlu1 %987  ;;  %v956_v17 = vpop.permute.xlu0 %955 }
 0x8a3   : >> { %v993_v47 = vmul.f32 %v988_v44, %v961_v14  ;;  %v960_v48 = vsub.f32 %v884_v3, %v956_v17 }
 0x8a5   : >> { %v998_v49 = vrot.slane %v993_v47, %v2898_v30  ;;  %v962_v50 = vsel %vm349_vm2, %v924_v8, %v960_v48 }
 0x8a6   : >> { %v990_v52 = vpop.permute.xlu0 %989 }
 0x8a7   : >> { %v994_v53 = vmul.f32 %v990_v52, %v962_v50  ;;  %1021 = vrot.lane.b32.xlu0 %v998_v49, %s2700_s9 }
 0x8a9   : >> { %v1002_v24 = vrot.slane %v994_v53, %v2898_v30 }
 0x8ab   : >> { %1023 = vrot.lane.b32.xlu1 %v1002_v24, %s2700_s9 }
 0x8b3   : >> { %v970_v56 = vpop.permute.xlu1 %969 }
 0x8b4   : >> { %v977_v57 = vmul.f32 %v970_v56, %v939_v32 }
 0x8b6   : >> { %v982_v62 = vrot.slane %v977_v57, %v2898_v30 }
 0x8b7   : >> { %v975_v60 = vpop.permute.xlu0 %974  ;;  %v1006_v61 = vpop.permute.xlu1 %1005 }
 0x8b8   : >> { %v978_v31 = vmul.f32 %v975_v60, %v940_v33  ;;  %v1013_v63 = vmul.f32 %v1006_v61, %v982_v62 }
 0x8ba   : >> { %v986_v0 = vrot.slane %v978_v31, %v2898_v30  ;;  %v1015_v7 = vsub.f32 %v939_v32, %v1013_v63 }
 0x8bb   : >> { %v1011_v3 = vpop.permute.xlu1 %1010 }
 0x8bc   : >> { %v1014_v8 = vmul.f32 %v1011_v3, %v986_v0  ;;  %v1017_v9 = vsel %vm394_vm3, %v982_v62, %v1015_v7 }
 0x8bd   : >> { %2441 = vrcp.f32 %v1017_v9 }
 0x8be   : >> { %v1016_v43 = vsub.f32 %v940_v33, %v1014_v8 }
 0x8c0   : >> { %v1018_v13 = vsel %vm394_vm3, %v986_v0, %v1016_v43 }
 0x8c1   : >> { %2443 = vrcp.f32 %v1018_v13 }
 0x8c7   : >> { %v2442_v23 = vpop.eup %2441 }
 0x8cb   : >> { %v2444_v25 = vpop.eup %2443 }
 0x919   : >> { %v1022_v18 = vpop.permute.xlu0 %1021 }
 0x91a   : >> { %v1027_v19 = vmul.f32 %v1022_v18, %v939_v32  ;;  %v2702_v32 = vmov 4   ;;  %v2705_v18 = vmov 5  }
 0x91c   : >> { %1031 = vrot.lane.b32.xlu0 %v1027_v19, %s2698_s7 }
 0x91d   : >> { %v1024_v46 = vpop.permute.xlu1 %1023 }
 0x91e   : >> { %v1028_v12 = vmul.f32 %v1024_v46, %v940_v33 }
 0x920   : >> { %1033 = vrot.lane.b32.xlu1 %v1028_v12, %s2698_s7  ;;  %1065 = vrot.lane.b32.xlu0 %v2442_v23, %s2701_s14 }
 0x924   : >> { %1067 = vrot.lane.b32.xlu1 %v2444_v25, %s2701_s14  ;;  %1047 = vperm.xlu0 %2405, %v2442_v23  }
 0x928   : >> { %1052 = vperm.xlu1 %2406, %v2444_v25   ;;  %1088 = vperm.xlu0 %2405, %v1018_v13  }
 0x92c   : >> { %1083 = vperm.xlu1 %2406, %v1017_v9   ;;  %2408 = vset.pattern.permute.xlu0 %v2702_v32 }
 0x930   : >> { %2407 = vset.pattern.permute.xlu1 %v2702_v32 }
 0x98e   : >> { %v1032_v27 = vpop.permute.xlu0 %1031 }
 0x98f   : >> { %v1037_v28 = vsub.f32 %v961_v14, %v1032_v27 }
 0x991   : >> { %v1039_v29 = vsel %vm394_vm3, %v998_v49, %v1037_v28 }
 0x992   : >> { %v1034_v33 = vpop.permute.xlu1 %1033  ;;  %v1066_v11 = vpop.permute.xlu0 %1065 }
 0x993   : >> { %v1038_v35 = vsub.f32 %v962_v50, %v1034_v33  ;;  %v1071_v58 = vmul.f32 %v1066_v11, %v1039_v29 }
 0x995   : >> { %v1076_v36 = vrot.slane %v1071_v58, %v2913_v42  ;;  %v1040_v37 = vsel %vm394_vm3, %v1002_v24, %v1038_v35 }
 0x996   : >> { %v1068_v38 = vpop.permute.xlu1 %1067 }
 0x997   : >> { %v1072_v39 = vmul.f32 %v1068_v38, %v1040_v37  ;;  %1099 = vrot.lane.b32.xlu1 %v1076_v36, %s2703_s20 }
 0x999   : >> { %v1080_v40 = vrot.slane %v1072_v39, %v2913_v42 }
 0x99b   : >> { %1101 = vrot.lane.b32.xlu0 %v1080_v40, %s2703_s20 }
 0x9a3   : >> { %v1048_v14 = vpop.permute.xlu0 %1047 }
 0x9a4   : >> { %v1055_v17 = vmul.f32 %v1048_v14, %v1017_v9 }
 0x9a6   : >> { %v1060_v49 = vrot.slane %v1055_v17, %v2913_v42 }
 0x9a7   : >> { %v1053_v44 = vpop.permute.xlu1 %1052  ;;  %v1089_v53 = vpop.permute.xlu0 %1088 }
 0x9a8   : >> { %v1056_v47 = vmul.f32 %v1053_v44, %v1018_v13 }
 0x9aa   : >> { %v1064_v50 = vrot.slane %v1056_v47, %v2913_v42 }
 0x9ab   : >> { %v1084_v48 = vpop.permute.xlu1 %1083 }
 0x9ac   : >> { %v1091_v52 = vmul.f32 %v1084_v48, %v1060_v49  ;;  %v1092_v56 = vmul.f32 %v1089_v53, %v1064_v50 }
 0x9ae   : >> { %v1093_v24 = vsub.f32 %v1017_v9, %v1091_v52  ;;  %v1094_v57 = vsub.f32 %v1018_v13, %v1092_v56 }
 0x9b0   : >> { %v1095_v60 = vsel %vm439_vm5, %v1060_v49, %v1093_v24  ;;  %v1096_v61 = vsel %vm439_vm5, %v1064_v50, %v1094_v57 }
 0x9b1   : >> { %2445 = vrcp.f32 %v1095_v60 }
 0x9b2   : >> { %2447 = vrcp.f32 %v1096_v61 }
 0x9bb   : >> { %v2446_v3 = vpop.eup %2445 }
 0x9bc   : >> { %v2448_v7 = vpop.eup %2447 }
 0xa09   : >> { %v1100_v62 = vpop.permute.xlu1 %1099 }
 0xa0a   : >> { %v1105_v31 = vmul.f32 %v1100_v62, %v1017_v9 }
 0xa0c   : >> { %1109 = vrot.lane.b32.xlu1 %v1105_v31, %s2701_s14  ;;  %v2708_v31 = vmov 6  }
 0xa0d   : >> { %v1102_v63 = vpop.permute.xlu0 %1101 }
 0xa0e   : >> { %v1106_v0 = vmul.f32 %v1102_v63, %v1018_v13 }
 0xa10   : >> { %1143 = vrot.lane.b32.xlu1 %v2446_v3, %s2704_s22  ;;  %1111 = vrot.lane.b32.xlu0 %v1106_v0, %s2701_s14 }
 0xa14   : >> { %1125 = vperm.xlu1 %2407, %v2446_v3   ;;  %1145 = vrot.lane.b32.xlu0 %v2448_v7, %s2704_s22 }
 0xa18   : >> { %1161 = vperm.xlu1 %2407, %v1095_v60   ;;  %1130 = vperm.xlu0 %2408, %v2448_v7  }
 0xa1c   : >> { %1166 = vperm.xlu1 %2407, %v1096_v61   ;;  %2409 = vset.pattern.permute.xlu0 %v2705_v18 }
 0xa20   : >> { %2410 = vset.pattern.permute.xlu1 %v2705_v18 }
 0xa7e   : >> { %v1110_v8 = vpop.permute.xlu1 %1109 }
 0xa7f   : >> { %v1115_v43 = vsub.f32 %v1039_v29, %v1110_v8 }
 0xa81   : >> { %v1117_v9 = vsel %vm439_vm5, %v1076_v36, %v1115_v43 }
 0xa82   : >> { %v1144_v13 = vpop.permute.xlu1 %1143  ;;  %v1112_v19 = vpop.permute.xlu0 %1111 }
 0xa83   : >> { %v1149_v46 = vmul.f32 %v1144_v13, %v1117_v9  ;;  %v1116_v12 = vsub.f32 %v1040_v37, %v1112_v19 }
 0xa85   : >> { %v1154_v23 = vrot.slane %v1149_v46, %v2928_v54  ;;  %v1118_v25 = vsel %vm439_vm5, %v1080_v40, %v1116_v12 }
 0xa86   : >> { %v1146_v27 = vpop.permute.xlu0 %1145 }
 0xa87   : >> { %v1150_v28 = vmul.f32 %v1146_v27, %v1118_v25  ;;  %1177 = vrot.lane.b32.xlu0 %v1154_v23, %s2706_s8 }
 0xa89   : >> { %v1158_v29 = vrot.slane %v1150_v28, %v2928_v54 }
 0xa8b   : >> { %1179 = vrot.lane.b32.xlu1 %v1158_v29, %s2706_s8 }
 0xa93   : >> { %v1126_v33 = vpop.permute.xlu1 %1125 }
 0xa94   : >> { %v1133_v11 = vmul.f32 %v1126_v33, %v1095_v60 }
 0xa96   : >> { %v1138_v36 = vrot.slane %v1133_v11, %v2928_v54 }
 0xa97   : >> { %v1131_v35 = vpop.permute.xlu0 %1130  ;;  %v1162_v58 = vpop.permute.xlu1 %1161 }
 0xa98   : >> { %v1134_v38 = vmul.f32 %v1131_v35, %v1096_v61  ;;  %v1169_v37 = vmul.f32 %v1162_v58, %v1138_v36 }
 0xa9a   : >> { %v1142_v39 = vrot.slane %v1134_v38, %v2928_v54  ;;  %v1171_v44 = vsub.f32 %v1095_v60, %v1169_v37 }
 0xa9b   : >> { %v1167_v14 = vpop.permute.xlu1 %1166 }
 0xa9c   : >> { %v1170_v40 = vmul.f32 %v1167_v14, %v1142_v39  ;;  %v1173_v17 = vsel %vm484_vm6, %v1138_v36, %v1171_v44 }
 0xa9d   : >> { %2449 = vrcp.f32 %v1173_v17 }
 0xa9e   : >> { %v1172_v47 = vsub.f32 %v1096_v61, %v1170_v40 }
 0xaa0   : >> { %v1174_v48 = vsel %vm484_vm6, %v1142_v39, %v1172_v47 }
 0xaa1   : >> { %2451 = vrcp.f32 %v1174_v48 }
 0xaa7   : >> { %v2450_v56 = vpop.eup %2449 }
 0xaab   : >> { %v2452_v24 = vpop.eup %2451 }
 0xaf9   : >> { %v1178_v49 = vpop.permute.xlu0 %1177 }
 0xafa   : >> { %v1183_v50 = vmul.f32 %v1178_v49, %v1095_v60 }
 0xafc   : >> { %1187 = vrot.lane.b32.xlu0 %v1183_v50, %s2704_s22 }
 0xafd   : >> { %v1180_v52 = vpop.permute.xlu1 %1179 }
 0xafe   : >> { %v1184_v53 = vmul.f32 %v1180_v52, %v1096_v61 }
 0xb00   : >> { %1189 = vrot.lane.b32.xlu1 %v1184_v53, %s2704_s22  ;;  %1221 = vrot.lane.b32.xlu0 %v2450_v56, %s2707_s10 }
 0xb04   : >> { %1223 = vrot.lane.b32.xlu1 %v2452_v24, %s2707_s10  ;;  %1203 = vperm.xlu0 %2409, %v2450_v56  }
 0xb08   : >> { %1208 = vperm.xlu1 %2410, %v2452_v24   ;;  %1244 = vperm.xlu0 %2409, %v1174_v48  }
 0xb0c   : >> { %1239 = vperm.xlu1 %2410, %v1173_v17   ;;  %2412 = vset.pattern.permute.xlu0 %v2708_v31 }
 0xb10   : >> { %2411 = vset.pattern.permute.xlu1 %v2708_v31 }
 0xb6e   : >> { %v1188_v57 = vpop.permute.xlu0 %1187 }
 0xb6f   : >> { %v1193_v62 = vsub.f32 %v1117_v9, %v1188_v57 }
 0xb71   : >> { %v1195_v60 = vsel %vm484_vm6, %v1154_v23, %v1193_v62 }
 0xb72   : >> { %v1190_v61 = vpop.permute.xlu1 %1189  ;;  %v1222_v63 = vpop.permute.xlu0 %1221 }
 0xb73   : >> { %v1194_v0 = vsub.f32 %v1118_v25, %v1190_v61  ;;  %v1227_v3 = vmul.f32 %v1222_v63, %v1195_v60 }
 0xb75   : >> { %v1232_v7 = vrot.slane %v1227_v3, %v2943_v16  ;;  %v1196_v8 = vsel %vm484_vm6, %v1158_v29, %v1194_v0 }
 0xb76   : >> { %v1224_v43 = vpop.permute.xlu1 %1223 }
 0xb77   : >> { %v1228_v13 = vmul.f32 %v1224_v43, %v1196_v8  ;;  %1255 = vrot.lane.b32.xlu1 %v1232_v7, %s2709_s26 }
 0xb79   : >> { %v1236_v9 = vrot.slane %v1228_v13, %v2943_v16 }
 0xb7b   : >> { %1257 = vrot.lane.b32.xlu0 %v1236_v9, %s2709_s26 }
 0xb83   : >> { %v1204_v19 = vpop.permute.xlu0 %1203 }
 0xb84   : >> { %v1211_v12 = vmul.f32 %v1204_v19, %v1173_v17 }
 0xb86   : >> { %v1216_v25 = vrot.slane %v1211_v12, %v2943_v16 }
 0xb87   : >> { %v1209_v46 = vpop.permute.xlu1 %1208  ;;  %v1245_v11 = vpop.permute.xlu0 %1244 }
 0xb88   : >> { %v1212_v23 = vmul.f32 %v1209_v46, %v1174_v48 }
 0xb8a   : >> { %v1220_v28 = vrot.slane %v1212_v23, %v2943_v16 }
 0xb8b   : >> { %v1240_v27 = vpop.permute.xlu1 %1239 }
 0xb8c   : >> { %v1247_v33 = vmul.f32 %v1240_v27, %v1216_v25  ;;  %v1248_v35 = vmul.f32 %v1245_v11, %v1220_v28 }
 0xb8e   : >> { %v1249_v29 = vsub.f32 %v1173_v17, %v1247_v33  ;;  %v1250_v58 = vsub.f32 %v1174_v48, %v1248_v35 }
 0xb90   : >> { %v1251_v36 = vsel %vm529_vm7, %v1216_v25, %v1249_v29  ;;  %v1252_v38 = vsel %vm529_vm7, %v1220_v28, %v1250_v58 }
 0xb91   : >> { %2453 = vrcp.f32 %v1251_v36 }
 0xb92   : >> { %2455 = vrcp.f32 %v1252_v38 }
 0xb9b   : >> { %v2454_v40 = vpop.eup %2453 }
 0xb9c   : >> { %v2456_v47 = vpop.eup %2455 }
 0xbe9   : >> { %v1256_v37 = vpop.permute.xlu1 %1255 }
 0xbea   : >> { %v1261_v39 = vmul.f32 %v1256_v37, %v1173_v17 }
 0xbec   : >> { %1265 = vrot.lane.b32.xlu1 %v1261_v39, %s2707_s10 }
 0xbed   : >> { %v1258_v14 = vpop.permute.xlu0 %1257 }
 0xbee   : >> { %v1262_v44 = vmul.f32 %v1258_v14, %v1174_v48 }
 0xbf0   : >> { %1299 = vrot.lane.b32.xlu1 %v2454_v40, %s2710_s11  ;;  %1267 = vrot.lane.b32.xlu0 %v1262_v44, %s2707_s10 }
 0xbf4   : >> { %1281 = vperm.xlu1 %2411, %v2454_v40   ;;  %1301 = vrot.lane.b32.xlu0 %v2456_v47, %s2710_s11 }
 0xbf8   : >> { %1317 = vperm.xlu1 %2411, %v1251_v36   ;;  %1286 = vperm.xlu0 %2412, %v2456_v47  }
 0xbfc   : >> { %1322 = vperm.xlu1 %2411, %v1252_v38   ;;  %2413 = vset.pattern.permute.xlu0 %v2693_v4 }
 0xc00   : >> { %2414 = vset.pattern.permute.xlu1 %v2693_v4 }
 0xc5e   : >> { %v1266_v17 = vpop.permute.xlu1 %1265 }
 0xc5f   : >> { %v1271_v49 = vsub.f32 %v1195_v60, %v1266_v17 }
 0xc61   : >> { %v1273_v48 = vsel %vm529_vm7, %v1232_v7, %v1271_v49 }
 0xc62   : >> { %v1300_v50 = vpop.permute.xlu1 %1299  ;;  %v1268_v52 = vpop.permute.xlu0 %1267 }
 0xc63   : >> { %v1305_v53 = vmul.f32 %v1300_v50, %v1273_v48  ;;  %v1272_v56 = vsub.f32 %v1196_v8, %v1268_v52 }
 0xc65   : >> { %v1310_v24 = vrot.slane %v1305_v53, %v3060_v45  ;;  %v1274_v57 = vsel %vm529_vm7, %v1236_v9, %v1272_v56 }
 0xc66   : >> { %v1302_v62 = vpop.permute.xlu0 %1301 }
 0xc67   : >> { %v1306_v61 = vmul.f32 %v1302_v62, %v1274_v57  ;;  %1333 = vrot.lane.b32.xlu0 %v1310_v24, %s2711_s12  ;;  %v1398_v62 = vand.u32 2147483647, %v2637_v22 }
 0xc69   : >> { %v1314_v4 = vrot.slane %v1306_v61, %v3060_v45 }
 0xc6b   : >> { %1335 = vrot.lane.b32.xlu1 %v1314_v4, %s2711_s12 }
 0xc73   : >> { %v1282_v60 = vpop.permute.xlu1 %1281 }
 0xc74   : >> { %v1289_v63 = vmul.f32 %v1282_v60, %v1251_v36 }
 0xc76   : >> { %v1294_v7 = vrot.slane %v1289_v63, %v3060_v45 }
 0xc77   : >> { %v1287_v0 = vpop.permute.xlu0 %1286  ;;  %v1318_v3 = vpop.permute.xlu1 %1317 }
 0xc78   : >> { %v1290_v43 = vmul.f32 %v1287_v0, %v1252_v38  ;;  %v1325_v8 = vmul.f32 %v1318_v3, %v1294_v7 }
 0xc7a   : >> { %v1298_v13 = vrot.slane %v1290_v43, %v3060_v45  ;;  %v1327_v46 = vsub.f32 %v1251_v36, %v1325_v8 }
 0xc7b   : >> { %v1323_v19 = vpop.permute.xlu1 %1322 }
 0xc7c   : >> { %v1326_v9 = vmul.f32 %v1323_v19, %v1298_v13  ;;  %v1329_v12 = vsel %vm574_vm8, %v1294_v7, %v1327_v46 }
 0xc7d   : >> { %2457 = vrcp.f32 %v1329_v12 }
 0xc7e   : >> { %v1328_v23 = vsub.f32 %v1252_v38, %v1326_v9 }
 0xc80   : >> { %v1330_v27 = vsel %vm574_vm8, %v1298_v13, %v1328_v23 }
 0xc81   : >> { %2459 = vrcp.f32 %v1330_v27 }
 0xc87   : >> { %v2458_v35 = vpop.eup %2457 }
 0xc8b   : >> { %v2460_v29 = vpop.eup %2459 }
 0xcd9   : >> { %v1334_v25 = vpop.permute.xlu0 %1333 }
 0xcda   : >> { %v1339_v28 = vmul.f32 %v1334_v25, %v1251_v36 }
 0xcdc   : >> { %1343 = vrot.lane.b32.xlu0 %v1339_v28, %s2710_s11 }
 0xcdd   : >> { %v1336_v33 = vpop.permute.xlu1 %1335 }
 0xcde   : >> { %v1340_v11 = vmul.f32 %v1336_v33, %v1252_v38 }
 0xce0   : >> { %1345 = vrot.lane.b32.xlu1 %v1340_v11, %s2710_s11  ;;  %1359 = vrot.lane.b32.xlu0 %v2458_v35, %s2712_s23 }
 0xce4   : >> { %1361 = vrot.lane.b32.xlu1 %v2460_v29, %s2712_s23 }
 0xd4e   : >> { %v1344_v58 = vpop.permute.xlu0 %1343 }
 0xd4f   : >> { %v1349_v37 = vsub.f32 %v1273_v48, %v1344_v58 }
 0xd51   : >> { %v1351_v39 = vsel %vm574_vm8, %v1310_v24, %v1349_v37  ;;  %v1397_v24 = vand.u32 2147483647, %v2641_v21 }
 0xd52   : >> { %v1346_v14 = vpop.permute.xlu1 %1345  ;;  %v1360_v44 = vpop.permute.xlu0 %1359 }
 0xd53   : >> { %v1350_v40 = vsub.f32 %v1274_v57, %v1346_v14  ;;  %v1365_v36 = vmul.f32 %v1360_v44, %v1351_v39  ;;  %v1399_v57 = vrot.slane %v1397_v24, 4 }
 0xd55   : >> { %v1370_v47 = vrot.slane %v1365_v36, %v3084_v26  ;;  %v1352_v38 = vsel %vm574_vm8, %v1314_v4, %v1350_v40  ;;  %v1400_v61 = vmax.f32 %v1397_v24, %v1399_v57  ;;  %v1405_v4 = vrot.slane %v1398_v62, 4 }
 0xd56   : >> { %v1362_v17 = vpop.permute.xlu1 %1361 }
 0xd57   : >> { %v1366_v49 = vmul.f32 %v1362_v17, %v1352_v38  ;;  %1377 = vrot.lane.b32.xlu0 %v1370_v47, %s2713_s25  ;;  %v1401_v60 = vrot.slane %v1400_v61, 2  ;;  %v1406_v63 = vmax.f32 %v1398_v62, %v1405_v4 }
 0xd59   : >> { %v1374_v50 = vrot.slane %v1366_v49, %v3084_v26  ;;  %v1402_v0 = vmax.f32 %v1400_v61, %v1401_v60  ;;  %v1407_v3 = vrot.slane %v1406_v63, 2 }
 0xd5b   : >> { %1379 = vrot.lane.b32.xlu1 %v1374_v50, %s2713_s25  ;;  %v1403_v7 = vrot.slane %v1402_v0, 1  ;;  %v1408_v43 = vmax.f32 %v1406_v63, %v1407_v3 }
 0xd5d   : >> { %v1404_v8 = vmax.f32 %v1402_v0, %v1403_v7  ;;  %v1409_v13 = vrot.slane %v1408_v43, 1 }
 0xd5f   : >> { %vm1411_vm12 = vcmp.gt.f32.partialorder %v1404_v8, 1e-05  ;;  %v1410_v21 = vmax.f32 %v1408_v43, %v1409_v13 }
 0xd61   : >> { %vm1412_vm13 = vcmp.gt.f32.partialorder %v1410_v21, 1e-05 }
 0xdc9   : >> { %v1378_v48 = vpop.permute.xlu0 %1377 }
 0xdca   : >> { %v1383_v52 = vmul.f32 %v1378_v48, %v1329_v12 }
 0xdcc   : >> { %1387 = vrot.lane.b32.xlu0 %v1383_v52, %s2712_s23 }
 0xdcd   : >> { %v1380_v53 = vpop.permute.xlu1 %1379 }
 0xdce   : >> { %v1384_v56 = vmul.f32 %v1380_v53, %v1330_v27 }
 0xdd0   : >> { %1389 = vrot.lane.b32.xlu1 %v1384_v56, %s2712_s23 }
 0xe3e   : >> { %v1388_v19 = vpop.permute.xlu0 %1387 }
 0xe3f   : >> { %v1393_v46 = vsub.f32 %v1351_v39, %v1388_v19 }
 0xe41   : >> { %v1395_v9 = vsel %vm614_vm9, %v1370_v47, %v1393_v46 }
 0xe42   : >> { %v1413_v12 = vsub.f32 %v2665_v34, %v1395_v9  ;;  %v1390_v22 = vpop.permute.xlu1 %1389 }
 0xe43   : >> { %v1394_v23 = vsub.f32 %v1352_v38, %v1390_v22 }
 0xe44   : >> { %v3285_v34 = vsel %vm1411_vm12, %v1413_v12, %v2665_v34  }
 0xe45   : >> { %v1396_v27 = vsel %vm614_vm9, %v1374_v50, %v1394_v23  ;;  %1423 = vperm.xlu0 %2413, %v3285_v34  }
 0xe46   : >> { %v1414_v25 = vsub.f32 %v2661_v1, %v1396_v27 }
 0xe48   : >> { %v3292_v1 = vsel %vm1412_vm13, %v1414_v25, %v2661_v1  }
 0xe49   : >> { %1428 = vperm.xlu1 %2414, %v3292_v1  }
 0xec4   : >> { %v1424_v28 = vpop.permute.xlu0 %1423 }
 0xec5   : >> { %v1431_v33 = vmul.f32 %v2862_v5, %v1424_v28 }
 0xec7   : >> { %v1433_v11 = vsub.f32 %v1431_v33, %v2867_v6 }
 0xec8   : >> { %v1429_v35 = vpop.permute.xlu1 %1428 }
 0xec9   : >> { %2461 = vrcp.f32 %v1433_v11  ;;  %v1432_v29 = vmul.f32 %v2862_v5, %v1429_v35 }
 0xecb   : >> { %v1434_v58 = vsub.f32 %v1432_v29, %v2867_v6 }
 0xecd   : >> { %2463 = vrcp.f32 %v1434_v58 }
 0xed3   : >> { %v2462_v37 = vpop.eup %2461 }
 0xed4   : >> { %1441 = vperm.xlu1 %2414, %v2462_v37  }
 0xed7   : >> { %v2464_v39 = vpop.eup %2463 }
 0xed8   : >> { %1446 = vperm.xlu0 %2413, %v2464_v39   ;;  %1481 = vperm.xlu1 %2414, %v1433_v11  }
 0xedc   : >> { %1486 = vperm.xlu0 %2413, %v1434_v58   ;;  %2415 = vset.pattern.permute.xlu1 %v2694_v55 }
 0xee0   : >> { %2416 = vset.pattern.permute.xlu0 %v2694_v55 }
 0xf53   : >> { %v1442_v14 = vpop.permute.xlu1 %1441 }
 0xf54   : >> { %v1449_v44 = vmul.f32 %v1442_v14, %v1433_v11  ;;  %v1459_v62 = vmul.f32 %v2862_v5, %v1442_v14  ;;  %v1469_v61 = vmul.f32 %v1442_v14, %v2970_v51 }
 0xf56   : >> { %v1454_v40 = vrot.slane %v1449_v44, %v2872_v10  ;;  %v1464_v4 = vrot.slane %v1459_v62, %v2872_v10  ;;  %v1474_v60 = vrot.slane %v1469_v61, %v2872_v10 }
 0xf57   : >> { %v1482_v36 = vpop.permute.xlu1 %1481  ;;  %v3302_v47 = vpop.permute.xlu0 %1446 }
 0xf58   : >> { %v1489_v38 = vmul.f32 %v1482_v36, %v1454_v40  ;;  %v1450_v17 = vmul.f32 %v3302_v47, %v1434_v58  ;;  %v1495_v63 = vmul.f32 %v1482_v36, %v1464_v4  ;;  %v1501_v0 = vmul.f32 %v1482_v36, %v1474_v60 }
 0xf5a   : >> { %v1491_v49 = vsub.f32 %v1433_v11, %v1489_v38  ;;  %v1458_v50 = vrot.slane %v1450_v17, %v2872_v10  ;;  %v1497_v3 = vsub.f32 %v2862_v5, %v1495_v63  ;;  %v1503_v7 = vsub.f32 %v2970_v51, %v1501_v0 }
 0xf5b   : >> { %v3306_v48 = vpop.permute.xlu0 %1486 }
 0xf5c   : >> { %v1493_v52 = vsel %vm304_vm1, %v1454_v40, %v1491_v49  ;;  %v1490_v55 = vmul.f32 %v3306_v48, %v1458_v50  ;;  %v1499_v43 = vsel %vm304_vm1, %v1464_v4, %v1497_v3 }
 0xf5d   : >> { %2465 = vrcp.f32 %v1493_v52 }
 0xf5e   : >> { %v1492_v53 = vsub.f32 %v1434_v58, %v1490_v55 }
 0xf60   : >> { %v1494_v56 = vsel %vm304_vm1, %v1458_v50, %v1492_v53  ;;  %v1460_v50 = vmul.f32 %v2862_v5, %v3302_v47 }
 0xf61   : >> { %2467 = vrcp.f32 %v1494_v56 }
 0xf62   : >> { %v1468_v55 = vrot.slane %v1460_v50, %v2872_v10 }
 0xf67   : >> { %v2466_v24 = vpop.eup %2465 }
 0xf68   : >> { %1513 = vperm.xlu1 %2415, %v2466_v24  }
 0xf6b   : >> { %v2468_v57 = vpop.eup %2467 }
 0xf6c   : >> { %1553 = vperm.xlu1 %2415, %v1493_v52   ;;  %1518 = vperm.xlu0 %2416, %v2468_v57  }
 0xf70   : >> { %1558 = vperm.xlu1 %2415, %v1494_v56   ;;  %2417 = vset.pattern.permute.xlu0 %v2696_v59 }
 0xf74   : >> { %2418 = vset.pattern.permute.xlu1 %v2696_v59  ;;  %v1505_v59 = vsel %vm304_vm1, %v1474_v60, %v1503_v7 }
 0xfe7   : >> { %v1514_v8 = vpop.permute.xlu1 %1513 }
 0xfe8   : >> { %v1521_v13 = vmul.f32 %v1514_v8, %v1493_v52  ;;  %v1531_v19 = vmul.f32 %v1514_v8, %v1499_v43  ;;  %v1541_v46 = vmul.f32 %v1514_v8, %v1505_v59 }
 0xfea   : >> { %v1526_v9 = vrot.slane %v1521_v13, %v2885_v20  ;;  %v1536_v21 = vrot.slane %v1531_v19, %v2885_v20  ;;  %v1546_v12 = vrot.slane %v1541_v46, %v2885_v20 }
 0xfeb   : >> { %v1554_v22 = vpop.permute.xlu1 %1553  ;;  %v1519_v23 = vpop.permute.xlu0 %1518 }
 0xfec   : >> { %v1561_v27 = vmul.f32 %v1554_v22, %v1526_v9  ;;  %v1567_v25 = vmul.f32 %v1554_v22, %v1536_v21  ;;  %v1573_v28 = vmul.f32 %v1554_v22, %v1546_v12  ;;  %v1522_v33 = vmul.f32 %v1519_v23, %v1494_v56 }
 0xfee   : >> { %v1563_v11 = vsub.f32 %v1493_v52, %v1561_v27  ;;  %v1569_v35 = vsub.f32 %v1499_v43, %v1567_v25  ;;  %v1575_v29 = vsub.f32 %v1505_v59, %v1573_v28  ;;  %v1530_v58 = vrot.slane %v1522_v33, %v2885_v20 }
 0xfef   : >> { %v1559_v37 = vpop.permute.xlu1 %1558  ;;  %v1470_v52 = vmul.f32 %v3302_v47, %v2987_v15 }
 0xff0   : >> { %v3331_v39 = vsel %vm349_vm2, %v1526_v9, %v1563_v11  ;;  %v1562_v14 = vmul.f32 %v1559_v37, %v1530_v58  ;;  %v3335_v44 = vsel %vm349_vm2, %v1536_v21, %v1569_v35  ;;  %v3339_v40 = vsel %vm349_vm2, %v1546_v12, %v1575_v29 }
 0xff1   : >> { %2469 = vrcp.f32 %v3331_v39  ;;  %v1478_v53 = vrot.slane %v1470_v52, %v2872_v10 }
 0xff2   : >> { %v1564_v36 = vsub.f32 %v1494_v56, %v1562_v14  ;;  %v1496_v56 = vmul.f32 %v3306_v48, %v1468_v55 }
 0xff3   : >> { %v1502_v24 = vmul.f32 %v3306_v48, %v1478_v53 }
 0xff4   : >> { %v1566_v38 = vsel %vm349_vm2, %v1530_v58, %v1564_v36  ;;  %v1498_v57 = vsub.f32 %v2862_v5, %v1496_v56 }
 0xff5   : >> { %2471 = vrcp.f32 %v1566_v38  ;;  %v1504_v62 = vsub.f32 %v2987_v15, %v1502_v24 }
 0xff7   : >> { %v1506_v61 = vsel %vm304_vm1, %v1478_v53, %v1504_v62 }
 0xff8   : >> { %v1542_v47 = vmul.f32 %v1519_v23, %v1506_v61 }
 0xffa   : >> { %v1550_v63 = vrot.slane %v1542_v47, %v2885_v20 }
 0xffb   : >> { %v2470_v17 = vpop.eup %2469 }
 0xffc   : >> { %1585 = vperm.xlu0 %2417, %v2470_v17   ;;  %v1574_v3 = vmul.f32 %v1559_v37, %v1550_v63 }
 0xffe   : >> { %v1576_v48 = vsub.f32 %v1506_v61, %v1574_v3 }
 0xfff   : >> { %v2472_v49 = vpop.eup %2471 }
0x1000   : >> { %1630 = vperm.xlu0 %2417, %v1566_v38   ;;  %1590 = vperm.xlu1 %2418, %v2472_v49   ;;  %v1578_v46 = vsel %vm349_vm2, %v1550_v63, %v1576_v48 }
0x1004   : >> { %1625 = vperm.xlu1 %2418, %v3331_v39   ;;  %2420 = vset.pattern.permute.xlu0 %v2699_v41 }
0x1008   : >> { %2419 = vset.pattern.permute.xlu1 %v2699_v41  ;;  %v1500_v41 = vsel %vm304_vm1, %v1468_v55, %v1498_v57 }
0x1009   : >> { %v1532_v4 = vmul.f32 %v1519_v23, %v1500_v41 }
0x100b   : >> { %v1540_v60 = vrot.slane %v1532_v4, %v2885_v20 }
0x100d   : >> { %v1568_v0 = vmul.f32 %v1559_v37, %v1540_v60 }
0x100f   : >> { %v1570_v7 = vsub.f32 %v1500_v41, %v1568_v0 }
0x1011   : >> { %v1572_v19 = vsel %vm349_vm2, %v1540_v60, %v1570_v7 }
0x107b   : >> { %v1586_v43 = vpop.permute.xlu0 %1585 }
0x107c   : >> { %v1603_v59 = vmul.f32 %v1586_v43, %v3335_v44  ;;  %v1613_v8 = vmul.f32 %v1586_v43, %v3339_v40  ;;  %v1593_v13 = vmul.f32 %v1586_v43, %v3331_v39 }
0x107e   : >> { %v1598_v23 = vrot.slane %v1593_v13, %v2898_v30  ;;  %v1608_v33 = vrot.slane %v1603_v59, %v2898_v30  ;;  %v1618_v11 = vrot.slane %v1613_v8, %v2898_v30 }
0x107f   : >> { %v1591_v9 = vpop.permute.xlu1 %1590  ;;  %v1631_v35 = vpop.permute.xlu0 %1630 }
0x1080   : >> { %v1594_v21 = vmul.f32 %v1591_v9, %v1566_v38  ;;  %v1604_v12 = vmul.f32 %v1591_v9, %v1572_v19  ;;  %v1614_v22 = vmul.f32 %v1591_v9, %v1578_v46 }
0x1082   : >> { %v1602_v27 = vrot.slane %v1594_v21, %v2898_v30  ;;  %v1612_v25 = vrot.slane %v1604_v12, %v2898_v30  ;;  %v1622_v28 = vrot.slane %v1614_v22, %v2898_v30 }
0x1083   : >> { %v1626_v29 = vpop.permute.xlu1 %1625 }
0x1084   : >> { %v1634_v58 = vmul.f32 %v1631_v35, %v1602_v27  ;;  %v1640_v37 = vmul.f32 %v1631_v35, %v1612_v25  ;;  %v1646_v14 = vmul.f32 %v1631_v35, %v1622_v28  ;;  %v1633_v36 = vmul.f32 %v1626_v29, %v1598_v23 }
0x1085   : >> { %v1639_v17 = vmul.f32 %v1626_v29, %v1608_v33  ;;  %v1645_v49 = vmul.f32 %v1626_v29, %v1618_v11 }
0x1086   : >> { %v1636_v50 = vsub.f32 %v1566_v38, %v1634_v58  ;;  %v1642_v52 = vsub.f32 %v1572_v19, %v1640_v37  ;;  %v1648_v55 = vsub.f32 %v1578_v46, %v1646_v14  ;;  %v1635_v53 = vsub.f32 %v3331_v39, %v1633_v36 }
0x1087   : >> { %v1641_v56 = vsub.f32 %v3335_v44, %v1639_v17  ;;  %v1647_v24 = vsub.f32 %v3339_v40, %v1645_v49 }
0x1088   : >> { %v1638_v57 = vsel %vm394_vm3, %v1602_v27, %v1636_v50  ;;  %v1637_v62 = vsel %vm394_vm3, %v1598_v23, %v1635_v53  ;;  %v1644_v41 = vsel %vm394_vm3, %v1612_v25, %v1642_v52  ;;  %v1650_v38 = vsel %vm394_vm3, %v1622_v28, %v1648_v55 }
0x1089   : >> { %2473 = vrcp.f32 %v1638_v57  ;;  %v1643_v39 = vsel %vm394_vm3, %v1608_v33, %v1641_v56  ;;  %v1649_v44 = vsel %vm394_vm3, %v1618_v11, %v1647_v24 }
0x108a   : >> { %2475 = vrcp.f32 %v1637_v62 }
0x1093   : >> { %v2474_v40 = vpop.eup %2473 }
0x1094   : >> { %v2476_v61 = vpop.eup %2475  ;;  %1662 = vperm.xlu0 %2420, %v2474_v40  }
0x1095   : >> { %1657 = vperm.xlu1 %2419, %v2476_v61  }
0x1098   : >> { %2421 = vset.pattern.permute.xlu0 %v2702_v32 }
0x1099   : >> { %1697 = vperm.xlu1 %2419, %v1637_v62  }
0x109d   : >> { %1702 = vperm.xlu1 %2419, %v1638_v57  }
0x10a1   : >> { %2422 = vset.pattern.permute.xlu1 %v2702_v32 }
0x1113   : >> { %v1663_v47 = vpop.permute.xlu0 %1662 }
0x1114   : >> { %v1658_v4 = vpop.permute.xlu1 %1657  ;;  %v1666_v43 = vmul.f32 %v1663_v47, %v1638_v57  ;;  %v1676_v29 = vmul.f32 %v1663_v47, %v1644_v41  ;;  %v1686_v58 = vmul.f32 %v1663_v47, %v1650_v38 }
0x1115   : >> { %v1665_v60 = vmul.f32 %v1658_v4, %v1637_v62  ;;  %v1675_v63 = vmul.f32 %v1658_v4, %v1643_v39  ;;  %v1685_v0 = vmul.f32 %v1658_v4, %v1649_v44 }
0x1116   : >> { %v1674_v46 = vrot.slane %v1666_v43, %v2913_v42  ;;  %v1684_v37 = vrot.slane %v1676_v29, %v2913_v42  ;;  %v1694_v14 = vrot.slane %v1686_v58, %v2913_v42 }
0x1117   : >> { %v1670_v3 = vrot.slane %v1665_v60, %v2913_v42  ;;  %v1680_v7 = vrot.slane %v1675_v63, %v2913_v42  ;;  %v1690_v48 = vrot.slane %v1685_v0, %v2913_v42 }
0x1118   : >> { %v1698_v59 = vpop.permute.xlu1 %1697 }
0x1119   : >> { %v1705_v8 = vmul.f32 %v1698_v59, %v1670_v3  ;;  %v1711_v13 = vmul.f32 %v1698_v59, %v1680_v7  ;;  %v1717_v19 = vmul.f32 %v1698_v59, %v1690_v48 }
0x111b   : >> { %v1707_v9 = vsub.f32 %v1637_v62, %v1705_v8  ;;  %v1713_v32 = vsub.f32 %v1643_v39, %v1711_v13  ;;  %v1719_v21 = vsub.f32 %v1649_v44, %v1717_v19 }
0x111c   : >> { %v1703_v12 = vpop.permute.xlu1 %1702 }
0x111d   : >> { %v1709_v22 = vsel %vm439_vm5, %v1670_v3, %v1707_v9  ;;  %v1706_v23 = vmul.f32 %v1703_v12, %v1674_v46  ;;  %v1715_v27 = vsel %vm439_vm5, %v1680_v7, %v1713_v32  ;;  %v1721_v25 = vsel %vm439_vm5, %v1690_v48, %v1719_v21 }
0x111e   : >> { %2477 = vrcp.f32 %v1709_v22  ;;  %v1712_v36 = vmul.f32 %v1703_v12, %v1684_v37  ;;  %v1718_v17 = vmul.f32 %v1703_v12, %v1694_v14 }
0x111f   : >> { %v1708_v28 = vsub.f32 %v1638_v57, %v1706_v23 }
0x1120   : >> { %v1714_v49 = vsub.f32 %v1644_v41, %v1712_v36  ;;  %v1720_v50 = vsub.f32 %v1650_v38, %v1718_v17 }
0x1121   : >> { %v1710_v33 = vsel %vm439_vm5, %v1674_v46, %v1708_v28 }
0x1122   : >> { %2479 = vrcp.f32 %v1710_v33  ;;  %v1716_v24 = vsel %vm439_vm5, %v1684_v37, %v1714_v49 }
0x1128   : >> { %v2478_v11 = vpop.eup %2477 }
0x1129   : >> { %1729 = vperm.xlu0 %2421, %v2478_v11  }
0x112c   : >> { %v2480_v35 = vpop.eup %2479 }
0x112d   : >> { %1774 = vperm.xlu0 %2421, %v1710_v33   ;;  %1734 = vperm.xlu1 %2422, %v2480_v35  }
0x1131   : >> { %1769 = vperm.xlu1 %2422, %v1709_v22   ;;  %2424 = vset.pattern.permute.xlu0 %v2705_v18 }
0x1135   : >> { %2423 = vset.pattern.permute.xlu1 %v2705_v18  ;;  %v1722_v18 = vsel %vm439_vm5, %v1694_v14, %v1720_v50 }
0x11a8   : >> { %v1730_v52 = vpop.permute.xlu0 %1729 }
0x11a9   : >> { %v1747_v55 = vmul.f32 %v1730_v52, %v1715_v27  ;;  %v1757_v53 = vmul.f32 %v1730_v52, %v1721_v25  ;;  %v1737_v56 = vmul.f32 %v1730_v52, %v1709_v22 }
0x11ab   : >> { %v1742_v40 = vrot.slane %v1737_v56, %v2928_v54  ;;  %v1752_v4 = vrot.slane %v1747_v55, %v2928_v54  ;;  %v1762_v47 = vrot.slane %v1757_v53, %v2928_v54 }
0x11ac   : >> { %v1735_v57 = vpop.permute.xlu1 %1734  ;;  %v1775_v60 = vpop.permute.xlu0 %1774 }
0x11ad   : >> { %v1738_v62 = vmul.f32 %v1735_v57, %v1710_v33  ;;  %v1748_v39 = vmul.f32 %v1735_v57, %v1716_v24  ;;  %v1758_v44 = vmul.f32 %v1735_v57, %v1722_v18 }
0x11af   : >> { %v1746_v61 = vrot.slane %v1738_v62, %v2928_v54  ;;  %v1756_v41 = vrot.slane %v1748_v39, %v2928_v54  ;;  %v1766_v38 = vrot.slane %v1758_v44, %v2928_v54 }
0x11b0   : >> { %v1770_v63 = vpop.permute.xlu1 %1769 }
0x11b1   : >> { %v1778_v0 = vmul.f32 %v1775_v60, %v1746_v61  ;;  %v1784_v3 = vmul.f32 %v1775_v60, %v1756_v41  ;;  %v1790_v7 = vmul.f32 %v1775_v60, %v1766_v38  ;;  %v1777_v48 = vmul.f32 %v1770_v63, %v1742_v40 }
0x11b2   : >> { %v1783_v43 = vmul.f32 %v1770_v63, %v1752_v4  ;;  %v1789_v59 = vmul.f32 %v1770_v63, %v1762_v47 }
0x11b3   : >> { %v1780_v8 = vsub.f32 %v1710_v33, %v1778_v0  ;;  %v1786_v13 = vsub.f32 %v1716_v24, %v1784_v3  ;;  %v1792_v19 = vsub.f32 %v1722_v18, %v1790_v7  ;;  %v1779_v46 = vsub.f32 %v1709_v22, %v1777_v48 }
0x11b4   : >> { %v1785_v9 = vsub.f32 %v1715_v27, %v1783_v43  ;;  %v1791_v32 = vsub.f32 %v1721_v25, %v1789_v59 }
0x11b5   : >> { %v1782_v21 = vsel %vm484_vm6, %v1746_v61, %v1780_v8  ;;  %v1781_v12 = vsel %vm484_vm6, %v1742_v40, %v1779_v46  ;;  %v3425_v23 = vsel %vm484_vm6, %v1756_v41, %v1786_v13  ;;  %v3429_v28 = vsel %vm484_vm6, %v1766_v38, %v1792_v19 }
0x11b6   : >> { %2481 = vrcp.f32 %v1782_v21  ;;  %v1787_v22 = vsel %vm484_vm6, %v1752_v4, %v1785_v9  ;;  %v1793_v27 = vsel %vm484_vm6, %v1762_v47, %v1791_v32  ;;  %v2714_v47 = vmov 7  }
0x11b7   : >> { %2483 = vrcp.f32 %v1781_v12 }
0x11c0   : >> { %v2482_v25 = vpop.eup %2481 }
0x11c1   : >> { %v2484_v33 = vpop.eup %2483  ;;  %1806 = vperm.xlu0 %2424, %v2482_v25  }
0x11c2   : >> { %1801 = vperm.xlu1 %2423, %v2484_v33  }
0x11c5   : >> { %2425 = vset.pattern.permute.xlu0 %v2708_v31 }
0x11c6   : >> { %1841 = vperm.xlu1 %2423, %v1781_v12  }
0x11ca   : >> { %1846 = vperm.xlu1 %2423, %v1782_v21  }
0x11ce   : >> { %2426 = vset.pattern.permute.xlu1 %v2708_v31 }
0x1240   : >> { %v1807_v35 = vpop.permute.xlu0 %1806 }
0x1241   : >> { %v1802_v11 = vpop.permute.xlu1 %1801  ;;  %v1810_v49 = vmul.f32 %v1807_v35, %v1782_v21  ;;  %v1820_v60 = vmul.f32 %v1807_v35, %v3425_v23  ;;  %v1830_v63 = vmul.f32 %v1807_v35, %v3429_v28 }
0x1242   : >> { %v1809_v29 = vmul.f32 %v1802_v11, %v1781_v12  ;;  %v1819_v58 = vmul.f32 %v1802_v11, %v1787_v22  ;;  %v1829_v37 = vmul.f32 %v1802_v11, %v1793_v27 }
0x1243   : >> { %v1818_v56 = vrot.slane %v1810_v49, %v2943_v16  ;;  %v1828_v0 = vrot.slane %v1820_v60, %v2943_v16  ;;  %v1838_v3 = vrot.slane %v1830_v63, %v2943_v16 }
0x1244   : >> { %v1814_v14 = vrot.slane %v1809_v29, %v2943_v16  ;;  %v1824_v36 = vrot.slane %v1819_v58, %v2943_v16  ;;  %v1834_v17 = vrot.slane %v1829_v37, %v2943_v16 }
0x1245   : >> { %v1842_v50 = vpop.permute.xlu1 %1841 }
0x1246   : >> { %v1849_v52 = vmul.f32 %v1842_v50, %v1814_v14  ;;  %v1855_v55 = vmul.f32 %v1842_v50, %v1824_v36  ;;  %v1861_v53 = vmul.f32 %v1842_v50, %v1834_v17 }
0x1248   : >> { %v1851_v24 = vsub.f32 %v1781_v12, %v1849_v52  ;;  %v1857_v31 = vsub.f32 %v1787_v22, %v1855_v55  ;;  %v1863_v18 = vsub.f32 %v1793_v27, %v1861_v53 }
0x1249   : >> { %v1847_v57 = vpop.permute.xlu1 %1846 }
0x124a   : >> { %v1853_v62 = vsel %vm529_vm7, %v1814_v14, %v1851_v24  ;;  %v1850_v39 = vmul.f32 %v1847_v57, %v1818_v56  ;;  %v1859_v44 = vsel %vm529_vm7, %v1824_v36, %v1857_v31  ;;  %v1865_v40 = vsel %vm529_vm7, %v1834_v17, %v1863_v18 }
0x124b   : >> { %2485 = vrcp.f32 %v1853_v62  ;;  %v1856_v7 = vmul.f32 %v1847_v57, %v1828_v0  ;;  %v1862_v48 = vmul.f32 %v1847_v57, %v1838_v3 }
0x124c   : >> { %v1852_v61 = vsub.f32 %v1782_v21, %v1850_v39 }
0x124d   : >> { %v1858_v43 = vsub.f32 %v3425_v23, %v1856_v7  ;;  %v1864_v59 = vsub.f32 %v3429_v28, %v1862_v48 }
0x124e   : >> { %v1854_v41 = vsel %vm529_vm7, %v1818_v56, %v1852_v61 }
0x124f   : >> { %2487 = vrcp.f32 %v1854_v41  ;;  %v1860_v9 = vsel %vm529_vm7, %v1828_v0, %v1858_v43  ;;  %v1866_v32 = vsel %vm529_vm7, %v1838_v3, %v1864_v59 }
0x1255   : >> { %v2486_v38 = vpop.eup %2485 }
0x1256   : >> { %1873 = vperm.xlu0 %2425, %v2486_v38  }
0x1259   : >> { %v2488_v4 = vpop.eup %2487 }
0x125a   : >> { %1918 = vperm.xlu0 %2425, %v1854_v41   ;;  %1878 = vperm.xlu1 %2426, %v2488_v4  }
0x125e   : >> { %1913 = vperm.xlu1 %2426, %v1853_v62   ;;  %2428 = vset.pattern.permute.xlu0 %v2714_v47 }
0x1262   : >> { %2427 = vset.pattern.permute.xlu1 %v2714_v47 }
0x12d5   : >> { %v1874_v8 = vpop.permute.xlu0 %1873 }
0x12d6   : >> { %v1891_v13 = vmul.f32 %v1874_v8, %v1859_v44  ;;  %v1901_v19 = vmul.f32 %v1874_v8, %v1865_v40  ;;  %v1881_v46 = vmul.f32 %v1874_v8, %v1853_v62 }
0x12d8   : >> { %v1886_v25 = vrot.slane %v1881_v46, %v3060_v45  ;;  %v1896_v11 = vrot.slane %v1891_v13, %v3060_v45  ;;  %v1906_v35 = vrot.slane %v1901_v19, %v3060_v45 }
0x12d9   : >> { %v1879_v21 = vpop.permute.xlu1 %1878  ;;  %v1919_v29 = vpop.permute.xlu0 %1918 }
0x12da   : >> { %v1882_v12 = vmul.f32 %v1879_v21, %v1854_v41  ;;  %v1892_v22 = vmul.f32 %v1879_v21, %v1860_v9  ;;  %v1902_v27 = vmul.f32 %v1879_v21, %v1866_v32 }
0x12dc   : >> { %v1890_v23 = vrot.slane %v1882_v12, %v3060_v45  ;;  %v1900_v28 = vrot.slane %v1892_v22, %v3060_v45  ;;  %v1910_v33 = vrot.slane %v1902_v27, %v3060_v45 }
0x12dd   : >> { %v1914_v58 = vpop.permute.xlu1 %1913 }
0x12de   : >> { %v1922_v37 = vmul.f32 %v1919_v29, %v1890_v23  ;;  %v1928_v14 = vmul.f32 %v1919_v29, %v1900_v28  ;;  %v1934_v36 = vmul.f32 %v1919_v29, %v1910_v33  ;;  %v1921_v17 = vmul.f32 %v1914_v58, %v1886_v25 }
0x12df   : >> { %v1927_v49 = vmul.f32 %v1914_v58, %v1896_v11  ;;  %v1933_v50 = vmul.f32 %v1914_v58, %v1906_v35 }
0x12e0   : >> { %v1924_v52 = vsub.f32 %v1854_v41, %v1922_v37  ;;  %v1923_v55 = vsub.f32 %v1853_v62, %v1921_v17  ;;  %v1930_v53 = vsub.f32 %v1860_v9, %v1928_v14  ;;  %v1936_v56 = vsub.f32 %v1866_v32, %v1934_v36 }
0x12e1   : >> { %v1929_v24 = vsub.f32 %v1859_v44, %v1927_v49  ;;  %v1935_v31 = vsub.f32 %v1865_v40, %v1933_v50 }
0x12e2   : >> { %v1926_v18 = vsel %vm574_vm8, %v1890_v23, %v1924_v52  ;;  %v1925_v57 = vsel %vm574_vm8, %v1886_v25, %v1923_v55  ;;  %v1932_v39 = vsel %vm574_vm8, %v1900_v28, %v1930_v53  ;;  %v1938_v61 = vsel %vm574_vm8, %v1910_v33, %v1936_v56 }
0x12e3   : >> { %2489 = vrcp.f32 %v1926_v18  ;;  %v1931_v62 = vsel %vm574_vm8, %v1896_v11, %v1929_v24  ;;  %v1937_v44 = vsel %vm574_vm8, %v1906_v35, %v1935_v31 }
0x12e4   : >> { %2491 = vrcp.f32 %v1925_v57 }
0x12ed   : >> { %v2490_v40 = vpop.eup %2489 }
0x12ee   : >> { %v2492_v41 = vpop.eup %2491  ;;  %1950 = vperm.xlu0 %2428, %v2490_v40  }
0x12ef   : >> { %1945 = vperm.xlu1 %2427, %v2492_v41  }
0x12f3   : >> { %1975 = vperm.xlu1 %2427, %v1925_v57  }
0x12f7   : >> { %1980 = vperm.xlu1 %2427, %v1926_v18  }
0x136d   : >> { %v1951_v4 = vpop.permute.xlu0 %1950 }
0x136e   : >> { %v1946_v38 = vpop.permute.xlu1 %1945  ;;  %v1954_v3 = vmul.f32 %v1951_v4, %v1932_v39  ;;  %v1964_v7 = vmul.f32 %v1951_v4, %v1938_v61 }
0x136f   : >> { %v1953_v47 = vmul.f32 %v1946_v38, %v1931_v62  ;;  %v1963_v60 = vmul.f32 %v1946_v38, %v1937_v44 }
0x1370   : >> { %v1962_v8 = vrot.slane %v1954_v3, %v3084_v26  ;;  %v1972_v13 = vrot.slane %v1964_v7, %v3084_v26 }
0x1371   : >> { %v1958_v63 = vrot.slane %v1953_v47, %v3084_v26  ;;  %v1968_v0 = vrot.slane %v1963_v60, %v3084_v26 }
0x1372   : >> { %v1976_v48 = vpop.permute.xlu1 %1975 }
0x1373   : >> { %v1983_v43 = vmul.f32 %v1976_v48, %v1958_v63  ;;  %v1989_v59 = vmul.f32 %v1976_v48, %v1968_v0 }
0x1375   : >> { %v1985_v19 = vsub.f32 %v1931_v62, %v1983_v43  ;;  %v1991_v46 = vsub.f32 %v1937_v44, %v1989_v59 }
0x1376   : >> { %v1981_v9 = vpop.permute.xlu1 %1980 }
0x1377   : >> { %v1984_v32 = vmul.f32 %v1981_v9, %v1962_v8  ;;  %v1990_v21 = vmul.f32 %v1981_v9, %v1972_v13  ;;  %v1987_v35 = vsel %vm614_vm9, %v1958_v63, %v1985_v19   ;;  %v1993_v12 = vsel %vm614_vm9, %v1968_v0, %v1991_v46  }
0x1378   : >> { %v1995_v22 = vmul.f32 %v2862_v5, %v1987_v35  ;;  %v2003_v28 = vmul.f32 %v1993_v12, %v1993_v12 }
0x1379   : >> { %v1986_v27 = vsub.f32 %v1932_v39, %v1984_v32  ;;  %v1992_v25 = vsub.f32 %v1938_v61, %v1990_v21 }
0x137a   : >> { %v1997_v23 = vsel %vm630_vm10, %v1995_v22, 0.0  ;;  %v2005_v29 = vsel %vm223_vm4, %v2003_v28, 0.0 }
0x137b   : >> { %1998 = vadd.xlane.f32.xlu0 %v1997_v23  ;;  %v1988_v0 = vsel %vm614_vm9, %v1962_v8, %v1986_v27   ;;  %v1994_v33 = vsel %vm614_vm9, %v1972_v13, %v1992_v25  }
0x137c   : >> { %v1996_v11 = vmul.f32 %v2862_v5, %v1988_v0  ;;  %v2004_v37 = vmul.f32 %v1994_v33, %v1994_v33 }
0x137e   : >> { %v2000_v58 = vsel %vm630_vm10, %v1996_v11, 0.0  ;;  %v2008_v14 = vsel %vm223_vm4, %v2004_v37, 0.0  ;;  %v3596_v11 = vmov %v1993_v12 }
0x137f   : >> { %2006 = vadd.xlane.f32.xlu0 %v2005_v29  ;;  %2001 = vadd.xlane.f32.xlu1 %v2000_v58  ;;  %v3595_v58 = vmov %v1994_v33 }
0x1383   : >> { %2009 = vadd.xlane.f32.xlu0 %v2008_v14 }
0x1408   : >> { %v1999_v36 = vpop.xlane.xlu0 %1998 }
0x1409   : >> { %v2011_v17 = vmul.f32 0.5, %v1999_v36 }
0x140b   : >> { %v2013_v53 = vsub.f32 1.0, %v2011_v17 }
0x140c   : >> { %v2002_v49 = vpop.xlane.xlu1 %2001  ;;  %v2007_v50 = vpop.xlane.xlu0 %2006 }
0x140d   : >> { %v2012_v52 = vmul.f32 0.5, %v2002_v49  ;;  %v2015_v55 = vmul.f32 0.25, %v2007_v50 }
0x140f   : >> { %v2014_v24 = vsub.f32 1.0, %v2012_v52  ;;  %v2017_v21 = vsub.f32 %v2013_v53, %v2015_v55  }
0x1410   : >> { %v2010_v56 = vpop.xlane.xlu0 %2009 }
0x1411   : >> { %v2016_v31 = vmul.f32 0.25, %v2010_v56  ;;  %v2019_v18 = vand.u32 2147483647, %v2017_v21 }
0x1413   : >> { %v2018_v22 = vsub.f32 %v2014_v24, %v2016_v31  }
0x1415   : >> { %v2020_v57 = vand.u32 2147483647, %v2018_v22 }
0x1417   : >> { %v2021_v39 = vmax.f32.f32 %v2019_v18, %v2020_v57 }
0x1419   : >> { %v2022_v61 = vrot.slane %v2021_v39, 4 }
0x141b   : >> { %v2023_v62 = vmax.f32 %v2021_v39, %v2022_v61 }
0x141d   : >> { %v2024_v44 = vrot.slane %v2023_v62, 2 }
0x141f   : >> { %v2025_v40 = vmax.f32 %v2023_v62, %v2024_v44 }
0x1421   : >> { %v2026_v41 = vrot.slane %v2025_v40, 1 }
0x1423   : >> { %v2027_v38 = vmax.f32 %v2025_v40, %v2026_v41 }
0x1425   : >> { %2193 = vpush %v2027_v38 }
0x1456   : >> { %s2194_s6 = spop %2193 }
0x1457   : >> { %p670_p12 = scmp.gt.f32.partialorder %s2194_s6, 1e-05 }
0x1459   : >> { %p671_p13 = pnand %p670_p12, %p669_p11 }
0x145a   : > { %v3598_v31 = vmov (%p671_p13), %v1994_v33  ;;  %v3599_v63 = vmov (%p671_p13), %v1993_v12 }
0x145b   : > { %674 = sbr.rel (!%p671_p13) target bundleno = 1476 (0x5c4), region = 88 }
0x1462 PF: > { %v2030_v4 = vmul.f32 0.5, %v2677_v63  ;;  %v2031_v34 = vmul.f32 0.5, %v2673_v31  ;;  %s2176_s30 = sshll.u32 %s2764_s19, 8  ;;  %s2048_s20 = sshll.u32 %s3102_s29, 4  ;;  %v2677_v63 = vphi %v3593_v63, %v3599_v63   ;;  %v2673_v31 = vphi %v3592_v31, %v3598_v31   ;;  %s3537_s20 = int_to_ptr.vmem [resolvable:$true] %s2048_s20 }
0x1463   : > { %s3530_s14 = scalar_lea.hbm %s3585_s4, %s2176_s30  ;;  %s2035_s22 = scalar_lea.sflag [#allocation4], %s2847_s13 }
0x1464   : > { %2032 = vst.msk [vmem:[%s3102_s29] sm:$0xff] %vm223_vm4, %v2030_v4  ;;  %2033 = vst.msk [vmem:[%s3102_s29 + $0x8] sm:$0xff] %vm223_vm4, %v2031_v34  ;;  %s2523_s8 = scalar_lea.vmem %s3537_s20, 256  ;;  %p3600_p10 = scmp.ne.s32.totalorder %s3589_s27, 0 }
0x1465   : > { %p2524_p8 = scmp.ne.s32.totalorder %s3537_s20, %s2523_s8  ;;  %s2715_s19 = smov [#allocation5]  }
0x1466   : > { %s2527_s10 = sshll.u32 %s2715_s19, 4  ;;  %s2528_s10 = int_to_ptr.vmem [resolvable:$false] %s2527_s10 }
0x1467   : > { %p2525_p0 = pnand %p2524_p8, %p3600_p10  ;;  %s2529_s26 = scalar_lea.vmem %s2528_s10, 512 }
0x1468   : > { %p2530_p4 = scmp.lt.s32.totalorder %s3537_s20, %s2528_s10  ;;  %p2531_p5 = scmp.lt.s32.totalorder %s2529_s26, %s2523_s8 }
0x1469   : > { %p2526_p2 = pneg %p2525_p0 }
0x146a   : > { %p2532_p7 = por %p2531_p5, %p2530_p4 }
0x146c   : > { %p2533_p9 = pnand %p2532_p7, %p2526_p2 }
0x146e   : > { %2536 = shalt.err (!%p2533_p9)
}
0x146f   : > { %s2537_s29 = scalar_lea.hbm %s3530_s14, 256  ;;  %s2541_s23 = scalar_lea.hbm %s3585_s4, 512 }
0x1470   : > { %p2538_p1 = scmp.ne.s32.totalorder %s3530_s14, %s2537_s29  ;;  %p2542_p11 = scmp.lt.u32.totalorder %s3530_s14, %s3585_s4 }
0x1471   : > { %p2543_p12 = scmp.lt.u32.totalorder %s2541_s23, %s2537_s29  ;;  %p2545_p8 = scmp.lt.u32.totalorder %s2537_s29, %s3530_s14 }
0x1472   : > { %p2539_p3 = pnand %p2538_p1, %p3600_p10 }
0x1473   : > { %p2544_p13 = por %p2543_p12, %p2542_p11 }
0x1474   : > { %p2540_p6 = pneg %p2539_p3 }
0x1475   : > { %p2546_p0 = por %p2545_p8, %p2544_p13 }
0x1477   : > { %p2547_p2 = pnand %p2546_p0, %p2540_p6 }
0x1479   : > { %2550 = shalt.err (!%p2547_p2)
}
0x147a   : > { %s2716_s6 = smov 128   ;;  %s2717_s30 = smov 8  }
0x147b   : > { %2197 = dma.vmem_to_hbm [thread:$0]  (%p3600_p10), %s3537_s20, 256, %s3530_s14, %s2035_s22, %s2716_s6, %s2716_s6, %s2717_s30  }
0x147c PF: > { %s2063_s7 = sand.u32 1, %s2621_s15   ;;  %p3601_p4 = scmp.ne.s32.totalorder %s3590_s28, 0 }
0x147d   : > { %p3602_p5 = scmp.ge.s32.totalorder %s2633_s18, 2  ;;  %s2064_s9 = scalar_lea.sflag [#allocation4], %s2063_s7 }
0x147f   : > { %p2204_p7 = pnand %p3602_p5, %p3601_p4 }
0x1481   : > { %2616 = dma.done.wait (!%p2204_p7), %s2064_s9, 256  }
0x1482   : > { %2618 = vsyncadd (!%p2204_p7), %s2064_s9, 4294967040  ;;  %p17_p9 = scmp.ge.s32.totalorder %s2768_s21, 4   ;;  %s3603_s15 = smov %s2625_s16 }
0x1483   : > { %s3604_s16 = smov %s2629_s17  ;;  %s3605_s17 = smov %s2780_s24 }
0x1484   : > { %s3606_s18 = smov %s2768_s21  ;;  %19 = sbr.rel (!%p17_p9) target bundleno = 5 (0x5), region = 99 }
0x148b   :  { %2069 = vsyncpa [#allocation3], 1 }
0x148c   :  { %2071 = vsyncpa [#allocation3 + $0x1], 1 }
0x148d   :  { %2072 = vsyncpa [#allocation4], 1 }
0x148e   :  { %2074 = vsyncpa [#allocation4 + $0x1], 1 }

</bundles_post_ra>
